<compile_context>
chip_gen: v5e
topology: v5e:2x2
jax: 0.10.0
libtpu: 0.0.40
codegen_flags: <defaults>
</compile_context>

<pallas_src>
from functools import partial

import jax
import jax.numpy as jnp
import numpy as np
from jax.experimental import pallas as pl
from jax.experimental.pallas import tpu as pltpu


# ----------------------------- Pallas kernel ---------------------------------

def _make_fused_lstm_kernel(T, Bp, H_list, Cp):
    """Builds the fused kernel for fixed (T, padded batch, hidden sizes, padded classes)."""
    n_layers = len(H_list)

    def kernel(*refs):
        # refs = [x, (w_ih, w_hh, b) * n_layers, w_fc, b_fc, out]
        x_ref = refs[0]
        layer_refs = refs[1:1 + 3 * n_layers]
        wfc_ref = refs[1 + 3 * n_layers]
        bfc_ref = refs[2 + 3 * n_layers]
        out_ref = refs[3 + 3 * n_layers]

        seq = x_ref[...]                              # (T*Bp, Dp) bf16, time-major
        for l in range(n_layers):
            H = H_list[l]
            wih = layer_refs[3 * l][...]              # (D_in, 4H) bf16, [i,f,g,o], g-cols x2
            whh = layer_refs[3 * l + 1][...]          # (H, 4H)   bf16, g-cols x2
            b = layer_refs[3 * l + 2][...]            # (1, 4H)   f32,  g-block x2

            # Hoisted input projection + bias: one matmul per layer, outside
            # the recurrence (f32 accumulation).
            gates_x = jnp.dot(seq, wih, preferred_element_type=jnp.float32) + b

            h = jnp.zeros((Bp, H), jnp.float32)
            c = jnp.zeros((Bp, H), jnp.float32)
            hs = []
            # Fully-unrolled recurrence: T is small & static, slices static and
            # 8-sublane aligned.
            for t in range(T):
                gx = gates_x[t * Bp:(t + 1) * Bp, :]
                if t == 0:
                    g = gx                            # h == 0: skip the dead matmul
                else:
                    g = gx + jnp.dot(h.astype(jnp.bfloat16), whh,
                                     preferred_element_type=jnp.float32)
                # Single whole-slab (256-lane) sigmoid launch; the g-gate
                # pre-activation was pre-scaled by 2, so tanh(g) = 2*sig - 1.
                sig = jax.nn.sigmoid(g)
                i_g = sig[:, 0 * H:1 * H]
                f_g = sig[:, 1 * H:2 * H]
                g_g = 2.0 * sig[:, 2 * H:3 * H] - 1.0
                o_g = sig[:, 3 * H:4 * H]
                c = f_g * c + i_g * g_g
                h = o_g * jnp.tanh(c)
                hs.append(h)
            # Next layer input: one concat per layer instead of masked scratch stores.
            seq = jnp.concatenate(hs, axis=0).astype(jnp.bfloat16)

        # FC head on the full sequence, lane-dense (Cp = 128) output store.
        out_ref[...] = (jnp.dot(seq, wfc_ref[...],
                                preferred_element_type=jnp.float32)
                        + bfc_ref[...]).astype(out_ref.dtype)

    return kernel


# ------------------------- one-time weight prep --------------------------------

def prepare_params(params):
    """One-time (outside the jitted per-call path) weight preprocessing.

    - gate order kept as PyTorch's [i, f, g, o]
    - x2 folded into the g-gate block of W_ih / W_hh / bias (for the
      tanh(g) = 2*sigmoid(2g) - 1 identity in the kernel)
    - transpose to (in, 4H), layer-0 contraction dim zero-padded to 128
    - matmul operands cast to bf16, biases kept f32
    - FC head padded to 128 output lanes
    """
    layers = []
    for li, layer in enumerate(params["lstm"]):
        w_ih = np.asarray(layer["w_ih"], np.float32)          # (4H, D_in)
        w_hh = np.asarray(layer["w_hh"], np.float32)          # (4H, H)
        b = (np.asarray(layer["b_ih"], np.float32)
             + np.asarray(layer["b_hh"], np.float32))         # (4H,)
        H = w_hh.shape[1]

        scale = np.ones((4 * H, 1), np.float32)
        scale[2 * H:3 * H] = 2.0                              # g-gate block x2
        w_ih = w_ih * scale
        w_hh = w_hh * scale
        b = b * scale[:, 0]

        wih_t = w_ih.T                                        # (D_in, 4H)
        if li == 0:
            D = wih_t.shape[0]
            Dp = -(-D // 128) * 128
            wih_t = np.pad(wih_t, ((0, Dp - D), (0, 0)))      # pad contraction dim
        layers.append((jnp.asarray(wih_t, jnp.bfloat16),
                       jnp.asarray(w_hh.T, jnp.bfloat16),
                       jnp.asarray(b.reshape(1, 4 * H), jnp.float32)))

    fc_w = np.asarray(params["fc_w"], np.float32)             # (C, H_last)
    fc_b = np.asarray(params["fc_b"], np.float32)             # (C,)
    C = fc_w.shape[0]
    Cp = -(-C // 128) * 128
    fc_w_t = np.pad(fc_w.T, ((0, 0), (0, Cp - C)))            # (H_last, Cp)
    fc_b_p = np.pad(fc_b, (0, Cp - C)).reshape(1, Cp)

    return {
        "layers": layers,
        "fc_w": jnp.asarray(fc_w_t, jnp.bfloat16),
        "fc_b": jnp.asarray(fc_b_p, jnp.float32),
    }


# ------------------------------ forward ---------------------------------------

@partial(jax.jit, static_argnames=("num_classes",))
def lstm_model_forward(x_btd, prepped, num_classes):
    """Full LSTMModel forward. x_btd: (B, T, input_size). Returns (B, T, num_classes)."""
    B, T, D = x_btd.shape
    layers = prepped["layers"]
    H_list = tuple(int(whh.shape[0]) for (_, whh, _) in layers)
    Dp = layers[0][0].shape[0]
    Cp = prepped["fc_w"].shape[1]
    Bp = -(-B // 8) * 8                                       # pad batch to sublane multiple

    x = jnp.asarray(x_btd, jnp.float32)
    x = jnp.pad(x, ((0, Bp - B), (0, 0), (0, Dp - D)))        # (Bp, T, Dp)
    x2d = jnp.transpose(x, (1, 0, 2)).reshape(T * Bp, Dp).astype(jnp.bfloat16)

    flat = []
    for (wih, whh, b) in layers:
        flat += [wih, whh, b]
    flat += [prepped["fc_w"], prepped["fc_b"]]

    kernel = _make_fused_lstm_kernel(T, Bp, H_list, Cp)
    out2d = pl.pallas_call(
        kernel,
        out_shape=jax.ShapeDtypeStruct((T * Bp, Cp), jnp.float32),
        in_specs=[pl.BlockSpec(memory_space=pltpu.MemorySpace.VMEM)] * (1 + len(flat)),
        out_specs=pl.BlockSpec(memory_space=pltpu.MemorySpace.VMEM),
    )(x2d, *flat)

    out = out2d.reshape(T, Bp, Cp)[:, :B, :num_classes]       # drop batch/class padding
    return jnp.transpose(out, (1, 0, 2))                      # (B, T, C) batch-first


# ------------------------- params / reference ---------------------------------

def init_params(key, input_size, units, num_classes):
    """Deterministic init matching PyTorch's default U(-1/sqrt(H), 1/sqrt(H))."""
    params = {"lstm": []}
    in_sizes = [input_size] + list(units[:-1])
    for i, h in enumerate(units):
        k = 1.0 / np.sqrt(h)
        key, k1, k2, k3, k4 = jax.random.split(key, 5)
        params["lstm"].append({
            "w_ih": jax.random.uniform(k1, (4 * h, in_sizes[i]), jnp.float32, -k, k),
            "w_hh": jax.random.uniform(k2, (4 * h, h), jnp.float32, -k, k),
            "b_ih": jax.random.uniform(k3, (4 * h,), jnp.float32, -k, k),
            "b_hh": jax.random.uniform(k4, (4 * h,), jnp.float32, -k, k),
        })
    kf = 1.0 / np.sqrt(units[-1])
    key, k1, k2 = jax.random.split(key, 3)
    params["fc_w"] = jax.random.uniform(k1, (num_classes, units[-1]), jnp.float32, -kf, kf)
    params["fc_b"] = jax.random.uniform(k2, (num_classes,), jnp.float32, -kf, kf)
    return params


def reference_forward(x_btd, params):
    """Pure-JAX f32 reference (lax.scan) mirroring torch.nn.LSTM semantics."""
    def one_layer(x_tbd, layer):
        H = layer["w_hh"].shape[1]
        wih_t = layer["w_ih"].T
        whh_t = layer["w_hh"].T
        b = layer["b_ih"] + layer["b_hh"]

        def step(carry, x_t):
            h, c = carry
            gates = x_t @ wih_t + h @ whh_t + b
            i = jax.nn.sigmoid(gates[:, 0 * H:1 * H])
            f = jax.nn.sigmoid(gates[:, 1 * H:2 * H])
            g = jnp.tanh(gates[:, 2 * H:3 * H])
            o = jax.nn.sigmoid(gates[:, 3 * H:4 * H])
            c = f * c + i * g
            h = o * jnp.tanh(c)
            return (h, c), h

        B = x_tbd.shape[1]
        init = (jnp.zeros((B, H), jnp.float32), jnp.zeros((B, H), jnp.float32))
        _, hs = jax.lax.scan(step, init, x_tbd)
        return hs

    x = jnp.transpose(x_btd, (1, 0, 2))
    for layer in params["lstm"]:
        x = one_layer(x, layer)
    out = x @ params["fc_w"].T + params["fc_b"]
    return jnp.transpose(out, (1, 0, 2))


# ---------------------------------- main ---------------------------------------

if __name__ == "__main__":
    B, T = 4, 8
    INPUT_SIZE = 72
    UNITS = [64, 64, 64]
    NUM_CLASSES = 8

    root = jax.random.PRNGKey(0)
    k_params, k_x = jax.random.split(root)
    params = init_params(k_params, INPUT_SIZE, UNITS, NUM_CLASSES)
    x = jax.random.normal(k_x, (B, T, INPUT_SIZE), jnp.float32)

    prepped = prepare_params(params)              # one-time, outside the jitted path

    out = lstm_model_forward(x, prepped, num_classes=NUM_CLASSES)
    out = jax.block_until_ready(out)

    assert out.shape == (B, T, NUM_CLASSES), out.shape

    ref = jax.block_until_ready(reference_forward(x, params))
    # bf16 matmul operands (f32 accumulate) -> relaxed tolerance vs f32 reference.
    np.testing.assert_allclose(np.asarray(out), np.asarray(ref),
                               rtol=5e-2, atol=5e-2)

    print("KERNEL_OK")
</pallas_src>

<mosaic_0001>
module attributes {stable_mosaic.version = 11 : i64} {
  func.func @kernel(%arg0: memref<64x128xbf16, #tpu.memory_space<vmem>>, %arg1: memref<128x256xbf16, #tpu.memory_space<vmem>>, %arg2: memref<64x256xbf16, #tpu.memory_space<vmem>>, %arg3: memref<1x256xf32, #tpu.memory_space<vmem>>, %arg4: memref<64x256xbf16, #tpu.memory_space<vmem>>, %arg5: memref<64x256xbf16, #tpu.memory_space<vmem>>, %arg6: memref<1x256xf32, #tpu.memory_space<vmem>>, %arg7: memref<64x256xbf16, #tpu.memory_space<vmem>>, %arg8: memref<64x256xbf16, #tpu.memory_space<vmem>>, %arg9: memref<1x256xf32, #tpu.memory_space<vmem>>, %arg10: memref<64x128xbf16, #tpu.memory_space<vmem>>, %arg11: memref<1x128xf32, #tpu.memory_space<vmem>>, %arg12: memref<64x128xf32, #tpu.memory_space<vmem>>) attributes {dimension_semantics = [], scalar_prefetch = 0 : i64, scratch_operands = 0 : i64, tpu.core_type = #tpu.core_type<tc>} {
    %c0 = arith.constant 0 : index
    %c0_0 = arith.constant 0 : index
    %0 = vector.load %arg0[%c0, %c0_0] : memref<64x128xbf16, #tpu.memory_space<vmem>>, vector<64x128xbf16>
    %c0_1 = arith.constant 0 : index
    %c0_2 = arith.constant 0 : index
    %1 = vector.load %arg1[%c0_1, %c0_2] : memref<128x256xbf16, #tpu.memory_space<vmem>>, vector<128x256xbf16>
    %c0_3 = arith.constant 0 : index
    %c0_4 = arith.constant 0 : index
    %2 = vector.load %arg2[%c0_3, %c0_4] : memref<64x256xbf16, #tpu.memory_space<vmem>>, vector<64x256xbf16>
    %c0_5 = arith.constant 0 : index
    %c0_6 = arith.constant 0 : index
    %3 = vector.load %arg3[%c0_5, %c0_6] : memref<1x256xf32, #tpu.memory_space<vmem>>, vector<1x256xf32>
    %cst = arith.constant dense<0.000000e+00> : vector<64x256xf32>
    %4 = tpu.matmul %0, %1, %cst {dimension_numbers = #tpu.dot_dimension_numbers<[1], [0], [0], [1], [0, 0, 1, 1], [], []>} : vector<64x128xbf16>, vector<128x256xbf16>, vector<64x256xf32> -> vector<64x256xf32>
    %5 = vector.broadcast %3 : vector<1x256xf32> to vector<64x256xf32>
    %6 = arith.addf %4, %5 : vector<64x256xf32>
    %cst_7 = arith.constant 0.000000e+00 : f32
    %7 = vector.broadcast %cst_7 : f32 to vector<8x64xf32>
    %8 = vector.extract_strided_slice %6 {offsets = [0, 0], sizes = [8, 256], strides = [1, 1]} : vector<64x256xf32> to vector<8x256xf32>
    %9 = arith.negf %8 : vector<8x256xf32>
    %10 = math.exp %9 : vector<8x256xf32>
    %cst_8 = arith.constant 1.000000e+00 : f32
    %11 = vector.broadcast %cst_8 : f32 to vector<8x256xf32>
    %12 = arith.addf %11, %10 : vector<8x256xf32>
    %13 = arith.divf %11, %12 : vector<8x256xf32>
    %14 = vector.extract_strided_slice %13 {offsets = [0, 0], sizes = [8, 64], strides = [1, 1]} : vector<8x256xf32> to vector<8x64xf32>
    %15 = vector.extract_strided_slice %13 {offsets = [0, 64], sizes = [8, 64], strides = [1, 1]} : vector<8x256xf32> to vector<8x64xf32>
    %16 = vector.extract_strided_slice %13 {offsets = [0, 128], sizes = [8, 64], strides = [1, 1]} : vector<8x256xf32> to vector<8x64xf32>
    %cst_9 = arith.constant 2.000000e+00 : f32
    %17 = vector.broadcast %cst_9 : f32 to vector<8x64xf32>
    %18 = arith.mulf %17, %16 : vector<8x64xf32>
    %cst_10 = arith.constant 1.000000e+00 : f32
    %19 = vector.broadcast %cst_10 : f32 to vector<8x64xf32>
    %20 = arith.subf %18, %19 : vector<8x64xf32>
    %21 = vector.extract_strided_slice %13 {offsets = [0, 192], sizes = [8, 64], strides = [1, 1]} : vector<8x256xf32> to vector<8x64xf32>
    %22 = arith.mulf %15, %7 : vector<8x64xf32>
    %23 = arith.mulf %14, %20 : vector<8x64xf32>
    %24 = arith.addf %22, %23 : vector<8x64xf32>
    %25 = math.tanh %24 : vector<8x64xf32>
    %26 = arith.mulf %21, %25 : vector<8x64xf32>
    %27 = vector.extract_strided_slice %6 {offsets = [8, 0], sizes = [8, 256], strides = [1, 1]} : vector<64x256xf32> to vector<8x256xf32>
    %28 = arith.truncf %26 : vector<8x64xf32> to vector<8x64xbf16>
    %cst_11 = arith.constant dense<0.000000e+00> : vector<8x256xf32>
    %29 = tpu.matmul %28, %2, %cst_11 {dimension_numbers = #tpu.dot_dimension_numbers<[1], [0], [0], [1], [0, 0, 1, 1], [], []>} : vector<8x64xbf16>, vector<64x256xbf16>, vector<8x256xf32> -> vector<8x256xf32>
    %30 = arith.addf %27, %29 : vector<8x256xf32>
    %31 = arith.negf %30 : vector<8x256xf32>
    %32 = math.exp %31 : vector<8x256xf32>
    %cst_12 = arith.constant 1.000000e+00 : f32
    %33 = vector.broadcast %cst_12 : f32 to vector<8x256xf32>
    %34 = arith.addf %33, %32 : vector<8x256xf32>
    %35 = arith.divf %33, %34 : vector<8x256xf32>
    %36 = vector.extract_strided_slice %35 {offsets = [0, 0], sizes = [8, 64], strides = [1, 1]} : vector<8x256xf32> to vector<8x64xf32>
    %37 = vector.extract_strided_slice %35 {offsets = [0, 64], sizes = [8, 64], strides = [1, 1]} : vector<8x256xf32> to vector<8x64xf32>
    %38 = vector.extract_strided_slice %35 {offsets = [0, 128], sizes = [8, 64], strides = [1, 1]} : vector<8x256xf32> to vector<8x64xf32>
    %cst_13 = arith.constant 2.000000e+00 : f32
    %39 = vector.broadcast %cst_13 : f32 to vector<8x64xf32>
    %40 = arith.mulf %39, %38 : vector<8x64xf32>
    %cst_14 = arith.constant 1.000000e+00 : f32
    %41 = vector.broadcast %cst_14 : f32 to vector<8x64xf32>
    %42 = arith.subf %40, %41 : vector<8x64xf32>
    %43 = vector.extract_strided_slice %35 {offsets = [0, 192], sizes = [8, 64], strides = [1, 1]} : vector<8x256xf32> to vector<8x64xf32>
    %44 = arith.mulf %37, %24 : vector<8x64xf32>
    %45 = arith.mulf %36, %42 : vector<8x64xf32>
    %46 = arith.addf %44, %45 : vector<8x64xf32>
    %47 = math.tanh %46 : vector<8x64xf32>
    %48 = arith.mulf %43, %47 : vector<8x64xf32>
    %49 = vector.extract_strided_slice %6 {offsets = [16, 0], sizes = [8, 256], strides = [1, 1]} : vector<64x256xf32> to vector<8x256xf32>
    %50 = arith.truncf %48 : vector<8x64xf32> to vector<8x64xbf16>
    %cst_15 = arith.constant dense<0.000000e+00> : vector<8x256xf32>
    %51 = tpu.matmul %50, %2, %cst_15 {dimension_numbers = #tpu.dot_dimension_numbers<[1], [0], [0], [1], [0, 0, 1, 1], [], []>} : vector<8x64xbf16>, vector<64x256xbf16>, vector<8x256xf32> -> vector<8x256xf32>
    %52 = arith.addf %49, %51 : vector<8x256xf32>
    %53 = arith.negf %52 : vector<8x256xf32>
    %54 = math.exp %53 : vector<8x256xf32>
    %cst_16 = arith.constant 1.000000e+00 : f32
    %55 = vector.broadcast %cst_16 : f32 to vector<8x256xf32>
    %56 = arith.addf %55, %54 : vector<8x256xf32>
    %57 = arith.divf %55, %56 : vector<8x256xf32>
    %58 = vector.extract_strided_slice %57 {offsets = [0, 0], sizes = [8, 64], strides = [1, 1]} : vector<8x256xf32> to vector<8x64xf32>
    %59 = vector.extract_strided_slice %57 {offsets = [0, 64], sizes = [8, 64], strides = [1, 1]} : vector<8x256xf32> to vector<8x64xf32>
    %60 = vector.extract_strided_slice %57 {offsets = [0, 128], sizes = [8, 64], strides = [1, 1]} : vector<8x256xf32> to vector<8x64xf32>
    %cst_17 = arith.constant 2.000000e+00 : f32
    %61 = vector.broadcast %cst_17 : f32 to vector<8x64xf32>
    %62 = arith.mulf %61, %60 : vector<8x64xf32>
    %cst_18 = arith.constant 1.000000e+00 : f32
    %63 = vector.broadcast %cst_18 : f32 to vector<8x64xf32>
    %64 = arith.subf %62, %63 : vector<8x64xf32>
    %65 = vector.extract_strided_slice %57 {offsets = [0, 192], sizes = [8, 64], strides = [1, 1]} : vector<8x256xf32> to vector<8x64xf32>
    %66 = arith.mulf %59, %46 : vector<8x64xf32>
    %67 = arith.mulf %58, %64 : vector<8x64xf32>
    %68 = arith.addf %66, %67 : vector<8x64xf32>
    %69 = math.tanh %68 : vector<8x64xf32>
    %70 = arith.mulf %65, %69 : vector<8x64xf32>
    %71 = vector.extract_strided_slice %6 {offsets = [24, 0], sizes = [8, 256], strides = [1, 1]} : vector<64x256xf32> to vector<8x256xf32>
    %72 = arith.truncf %70 : vector<8x64xf32> to vector<8x64xbf16>
    %cst_19 = arith.constant dense<0.000000e+00> : vector<8x256xf32>
    %73 = tpu.matmul %72, %2, %cst_19 {dimension_numbers = #tpu.dot_dimension_numbers<[1], [0], [0], [1], [0, 0, 1, 1], [], []>} : vector<8x64xbf16>, vector<64x256xbf16>, vector<8x256xf32> -> vector<8x256xf32>
    %74 = arith.addf %71, %73 : vector<8x256xf32>
    %75 = arith.negf %74 : vector<8x256xf32>
    %76 = math.exp %75 : vector<8x256xf32>
    %cst_20 = arith.constant 1.000000e+00 : f32
    %77 = vector.broadcast %cst_20 : f32 to vector<8x256xf32>
    %78 = arith.addf %77, %76 : vector<8x256xf32>
    %79 = arith.divf %77, %78 : vector<8x256xf32>
    %80 = vector.extract_strided_slice %79 {offsets = [0, 0], sizes = [8, 64], strides = [1, 1]} : vector<8x256xf32> to vector<8x64xf32>
    %81 = vector.extract_strided_slice %79 {offsets = [0, 64], sizes = [8, 64], strides = [1, 1]} : vector<8x256xf32> to vector<8x64xf32>
    %82 = vector.extract_strided_slice %79 {offsets = [0, 128], sizes = [8, 64], strides = [1, 1]} : vector<8x256xf32> to vector<8x64xf32>
    %cst_21 = arith.constant 2.000000e+00 : f32
    %83 = vector.broadcast %cst_21 : f32 to vector<8x64xf32>
    %84 = arith.mulf %83, %82 : vector<8x64xf32>
    %cst_22 = arith.constant 1.000000e+00 : f32
    %85 = vector.broadcast %cst_22 : f32 to vector<8x64xf32>
    %86 = arith.subf %84, %85 : vector<8x64xf32>
    %87 = vector.extract_strided_slice %79 {offsets = [0, 192], sizes = [8, 64], strides = [1, 1]} : vector<8x256xf32> to vector<8x64xf32>
    %88 = arith.mulf %81, %68 : vector<8x64xf32>
    %89 = arith.mulf %80, %86 : vector<8x64xf32>
    %90 = arith.addf %88, %89 : vector<8x64xf32>
    %91 = math.tanh %90 : vector<8x64xf32>
    %92 = arith.mulf %87, %91 : vector<8x64xf32>
    %93 = vector.extract_strided_slice %6 {offsets = [32, 0], sizes = [8, 256], strides = [1, 1]} : vector<64x256xf32> to vector<8x256xf32>
    %94 = arith.truncf %92 : vector<8x64xf32> to vector<8x64xbf16>
    %cst_23 = arith.constant dense<0.000000e+00> : vector<8x256xf32>
    %95 = tpu.matmul %94, %2, %cst_23 {dimension_numbers = #tpu.dot_dimension_numbers<[1], [0], [0], [1], [0, 0, 1, 1], [], []>} : vector<8x64xbf16>, vector<64x256xbf16>, vector<8x256xf32> -> vector<8x256xf32>
    %96 = arith.addf %93, %95 : vector<8x256xf32>
    %97 = arith.negf %96 : vector<8x256xf32>
    %98 = math.exp %97 : vector<8x256xf32>
    %cst_24 = arith.constant 1.000000e+00 : f32
    %99 = vector.broadcast %cst_24 : f32 to vector<8x256xf32>
    %100 = arith.addf %99, %98 : vector<8x256xf32>
    %101 = arith.divf %99, %100 : vector<8x256xf32>
    %102 = vector.extract_strided_slice %101 {offsets = [0, 0], sizes = [8, 64], strides = [1, 1]} : vector<8x256xf32> to vector<8x64xf32>
    %103 = vector.extract_strided_slice %101 {offsets = [0, 64], sizes = [8, 64], strides = [1, 1]} : vector<8x256xf32> to vector<8x64xf32>
    %104 = vector.extract_strided_slice %101 {offsets = [0, 128], sizes = [8, 64], strides = [1, 1]} : vector<8x256xf32> to vector<8x64xf32>
    %cst_25 = arith.constant 2.000000e+00 : f32
    %105 = vector.broadcast %cst_25 : f32 to vector<8x64xf32>
    %106 = arith.mulf %105, %104 : vector<8x64xf32>
    %cst_26 = arith.constant 1.000000e+00 : f32
    %107 = vector.broadcast %cst_26 : f32 to vector<8x64xf32>
    %108 = arith.subf %106, %107 : vector<8x64xf32>
    %109 = vector.extract_strided_slice %101 {offsets = [0, 192], sizes = [8, 64], strides = [1, 1]} : vector<8x256xf32> to vector<8x64xf32>
    %110 = arith.mulf %103, %90 : vector<8x64xf32>
    %111 = arith.mulf %102, %108 : vector<8x64xf32>
    %112 = arith.addf %110, %111 : vector<8x64xf32>
    %113 = math.tanh %112 : vector<8x64xf32>
    %114 = arith.mulf %109, %113 : vector<8x64xf32>
    %115 = vector.extract_strided_slice %6 {offsets = [40, 0], sizes = [8, 256], strides = [1, 1]} : vector<64x256xf32> to vector<8x256xf32>
    %116 = arith.truncf %114 : vector<8x64xf32> to vector<8x64xbf16>
    %cst_27 = arith.constant dense<0.000000e+00> : vector<8x256xf32>
    %117 = tpu.matmul %116, %2, %cst_27 {dimension_numbers = #tpu.dot_dimension_numbers<[1], [0], [0], [1], [0, 0, 1, 1], [], []>} : vector<8x64xbf16>, vector<64x256xbf16>, vector<8x256xf32> -> vector<8x256xf32>
    %118 = arith.addf %115, %117 : vector<8x256xf32>
    %119 = arith.negf %118 : vector<8x256xf32>
    %120 = math.exp %119 : vector<8x256xf32>
    %cst_28 = arith.constant 1.000000e+00 : f32
    %121 = vector.broadcast %cst_28 : f32 to vector<8x256xf32>
    %122 = arith.addf %121, %120 : vector<8x256xf32>
    %123 = arith.divf %121, %122 : vector<8x256xf32>
    %124 = vector.extract_strided_slice %123 {offsets = [0, 0], sizes = [8, 64], strides = [1, 1]} : vector<8x256xf32> to vector<8x64xf32>
    %125 = vector.extract_strided_slice %123 {offsets = [0, 64], sizes = [8, 64], strides = [1, 1]} : vector<8x256xf32> to vector<8x64xf32>
    %126 = vector.extract_strided_slice %123 {offsets = [0, 128], sizes = [8, 64], strides = [1, 1]} : vector<8x256xf32> to vector<8x64xf32>
    %cst_29 = arith.constant 2.000000e+00 : f32
    %127 = vector.broadcast %cst_29 : f32 to vector<8x64xf32>
    %128 = arith.mulf %127, %126 : vector<8x64xf32>
    %cst_30 = arith.constant 1.000000e+00 : f32
    %129 = vector.broadcast %cst_30 : f32 to vector<8x64xf32>
    %130 = arith.subf %128, %129 : vector<8x64xf32>
    %131 = vector.extract_strided_slice %123 {offsets = [0, 192], sizes = [8, 64], strides = [1, 1]} : vector<8x256xf32> to vector<8x64xf32>
    %132 = arith.mulf %125, %112 : vector<8x64xf32>
    %133 = arith.mulf %124, %130 : vector<8x64xf32>
    %134 = arith.addf %132, %133 : vector<8x64xf32>
    %135 = math.tanh %134 : vector<8x64xf32>
    %136 = arith.mulf %131, %135 : vector<8x64xf32>
    %137 = vector.extract_strided_slice %6 {offsets = [48, 0], sizes = [8, 256], strides = [1, 1]} : vector<64x256xf32> to vector<8x256xf32>
    %138 = arith.truncf %136 : vector<8x64xf32> to vector<8x64xbf16>
    %cst_31 = arith.constant dense<0.000000e+00> : vector<8x256xf32>
    %139 = tpu.matmul %138, %2, %cst_31 {dimension_numbers = #tpu.dot_dimension_numbers<[1], [0], [0], [1], [0, 0, 1, 1], [], []>} : vector<8x64xbf16>, vector<64x256xbf16>, vector<8x256xf32> -> vector<8x256xf32>
    %140 = arith.addf %137, %139 : vector<8x256xf32>
    %141 = arith.negf %140 : vector<8x256xf32>
    %142 = math.exp %141 : vector<8x256xf32>
    %cst_32 = arith.constant 1.000000e+00 : f32
    %143 = vector.broadcast %cst_32 : f32 to vector<8x256xf32>
    %144 = arith.addf %143, %142 : vector<8x256xf32>
    %145 = arith.divf %143, %144 : vector<8x256xf32>
    %146 = vector.extract_strided_slice %145 {offsets = [0, 0], sizes = [8, 64], strides = [1, 1]} : vector<8x256xf32> to vector<8x64xf32>
    %147 = vector.extract_strided_slice %145 {offsets = [0, 64], sizes = [8, 64], strides = [1, 1]} : vector<8x256xf32> to vector<8x64xf32>
    %148 = vector.extract_strided_slice %145 {offsets = [0, 128], sizes = [8, 64], strides = [1, 1]} : vector<8x256xf32> to vector<8x64xf32>
    %cst_33 = arith.constant 2.000000e+00 : f32
    %149 = vector.broadcast %cst_33 : f32 to vector<8x64xf32>
    %150 = arith.mulf %149, %148 : vector<8x64xf32>
    %cst_34 = arith.constant 1.000000e+00 : f32
    %151 = vector.broadcast %cst_34 : f32 to vector<8x64xf32>
    %152 = arith.subf %150, %151 : vector<8x64xf32>
    %153 = vector.extract_strided_slice %145 {offsets = [0, 192], sizes = [8, 64], strides = [1, 1]} : vector<8x256xf32> to vector<8x64xf32>
    %154 = arith.mulf %147, %134 : vector<8x64xf32>
    %155 = arith.mulf %146, %152 : vector<8x64xf32>
    %156 = arith.addf %154, %155 : vector<8x64xf32>
    %157 = math.tanh %156 : vector<8x64xf32>
    %158 = arith.mulf %153, %157 : vector<8x64xf32>
    %159 = vector.extract_strided_slice %6 {offsets = [56, 0], sizes = [8, 256], strides = [1, 1]} : vector<64x256xf32> to vector<8x256xf32>
    %160 = arith.truncf %158 : vector<8x64xf32> to vector<8x64xbf16>
    %cst_35 = arith.constant dense<0.000000e+00> : vector<8x256xf32>
    %161 = tpu.matmul %160, %2, %cst_35 {dimension_numbers = #tpu.dot_dimension_numbers<[1], [0], [0], [1], [0, 0, 1, 1], [], []>} : vector<8x64xbf16>, vector<64x256xbf16>, vector<8x256xf32> -> vector<8x256xf32>
    %162 = arith.addf %159, %161 : vector<8x256xf32>
    %163 = arith.negf %162 : vector<8x256xf32>
    %164 = math.exp %163 : vector<8x256xf32>
    %cst_36 = arith.constant 1.000000e+00 : f32
    %165 = vector.broadcast %cst_36 : f32 to vector<8x256xf32>
    %166 = arith.addf %165, %164 : vector<8x256xf32>
    %167 = arith.divf %165, %166 : vector<8x256xf32>
    %168 = vector.extract_strided_slice %167 {offsets = [0, 0], sizes = [8, 64], strides = [1, 1]} : vector<8x256xf32> to vector<8x64xf32>
    %169 = vector.extract_strided_slice %167 {offsets = [0, 64], sizes = [8, 64], strides = [1, 1]} : vector<8x256xf32> to vector<8x64xf32>
    %170 = vector.extract_strided_slice %167 {offsets = [0, 128], sizes = [8, 64], strides = [1, 1]} : vector<8x256xf32> to vector<8x64xf32>
    %cst_37 = arith.constant 2.000000e+00 : f32
    %171 = vector.broadcast %cst_37 : f32 to vector<8x64xf32>
    %172 = arith.mulf %171, %170 : vector<8x64xf32>
    %cst_38 = arith.constant 1.000000e+00 : f32
    %173 = vector.broadcast %cst_38 : f32 to vector<8x64xf32>
    %174 = arith.subf %172, %173 : vector<8x64xf32>
    %175 = vector.extract_strided_slice %167 {offsets = [0, 192], sizes = [8, 64], strides = [1, 1]} : vector<8x256xf32> to vector<8x64xf32>
    %176 = arith.mulf %169, %156 : vector<8x64xf32>
    %177 = arith.mulf %168, %174 : vector<8x64xf32>
    %178 = arith.addf %176, %177 : vector<8x64xf32>
    %179 = math.tanh %178 : vector<8x64xf32>
    %180 = arith.mulf %175, %179 : vector<8x64xf32>
    %181 = tpu.concatenate %26, %48, %70, %92, %114, %136, %158, %180 in 0 : vector<8x64xf32>, vector<8x64xf32>, vector<8x64xf32>, vector<8x64xf32>, vector<8x64xf32>, vector<8x64xf32>, vector<8x64xf32>, vector<8x64xf32> -> vector<64x64xf32>
    %182 = arith.truncf %181 : vector<64x64xf32> to vector<64x64xbf16>
    %c0_39 = arith.constant 0 : index
    %c0_40 = arith.constant 0 : index
    %183 = vector.load %arg4[%c0_39, %c0_40] : memref<64x256xbf16, #tpu.memory_space<vmem>>, vector<64x256xbf16>
    %c0_41 = arith.constant 0 : index
    %c0_42 = arith.constant 0 : index
    %184 = vector.load %arg5[%c0_41, %c0_42] : memref<64x256xbf16, #tpu.memory_space<vmem>>, vector<64x256xbf16>
    %c0_43 = arith.constant 0 : index
    %c0_44 = arith.constant 0 : index
    %185 = vector.load %arg6[%c0_43, %c0_44] : memref<1x256xf32, #tpu.memory_space<vmem>>, vector<1x256xf32>
    %cst_45 = arith.constant dense<0.000000e+00> : vector<64x256xf32>
    %186 = tpu.matmul %182, %183, %cst_45 {dimension_numbers = #tpu.dot_dimension_numbers<[1], [0], [0], [1], [0, 0, 1, 1], [], []>} : vector<64x64xbf16>, vector<64x256xbf16>, vector<64x256xf32> -> vector<64x256xf32>
    %187 = vector.broadcast %185 : vector<1x256xf32> to vector<64x256xf32>
    %188 = arith.addf %186, %187 : vector<64x256xf32>
    %cst_46 = arith.constant 0.000000e+00 : f32
    %189 = vector.broadcast %cst_46 : f32 to vector<8x64xf32>
    %190 = vector.extract_strided_slice %188 {offsets = [0, 0], sizes = [8, 256], strides = [1, 1]} : vector<64x256xf32> to vector<8x256xf32>
    %191 = arith.negf %190 : vector<8x256xf32>
    %192 = math.exp %191 : vector<8x256xf32>
    %cst_47 = arith.constant 1.000000e+00 : f32
    %193 = vector.broadcast %cst_47 : f32 to vector<8x256xf32>
    %194 = arith.addf %193, %192 : vector<8x256xf32>
    %195 = arith.divf %193, %194 : vector<8x256xf32>
    %196 = vector.extract_strided_slice %195 {offsets = [0, 0], sizes = [8, 64], strides = [1, 1]} : vector<8x256xf32> to vector<8x64xf32>
    %197 = vector.extract_strided_slice %195 {offsets = [0, 64], sizes = [8, 64], strides = [1, 1]} : vector<8x256xf32> to vector<8x64xf32>
    %198 = vector.extract_strided_slice %195 {offsets = [0, 128], sizes = [8, 64], strides = [1, 1]} : vector<8x256xf32> to vector<8x64xf32>
    %cst_48 = arith.constant 2.000000e+00 : f32
    %199 = vector.broadcast %cst_48 : f32 to vector<8x64xf32>
    %200 = arith.mulf %199, %198 : vector<8x64xf32>
    %cst_49 = arith.constant 1.000000e+00 : f32
    %201 = vector.broadcast %cst_49 : f32 to vector<8x64xf32>
    %202 = arith.subf %200, %201 : vector<8x64xf32>
    %203 = vector.extract_strided_slice %195 {offsets = [0, 192], sizes = [8, 64], strides = [1, 1]} : vector<8x256xf32> to vector<8x64xf32>
    %204 = arith.mulf %197, %189 : vector<8x64xf32>
    %205 = arith.mulf %196, %202 : vector<8x64xf32>
    %206 = arith.addf %204, %205 : vector<8x64xf32>
    %207 = math.tanh %206 : vector<8x64xf32>
    %208 = arith.mulf %203, %207 : vector<8x64xf32>
    %209 = vector.extract_strided_slice %188 {offsets = [8, 0], sizes = [8, 256], strides = [1, 1]} : vector<64x256xf32> to vector<8x256xf32>
    %210 = arith.truncf %208 : vector<8x64xf32> to vector<8x64xbf16>
    %cst_50 = arith.constant dense<0.000000e+00> : vector<8x256xf32>
    %211 = tpu.matmul %210, %184, %cst_50 {dimension_numbers = #tpu.dot_dimension_numbers<[1], [0], [0], [1], [0, 0, 1, 1], [], []>} : vector<8x64xbf16>, vector<64x256xbf16>, vector<8x256xf32> -> vector<8x256xf32>
    %212 = arith.addf %209, %211 : vector<8x256xf32>
    %213 = arith.negf %212 : vector<8x256xf32>
    %214 = math.exp %213 : vector<8x256xf32>
    %cst_51 = arith.constant 1.000000e+00 : f32
    %215 = vector.broadcast %cst_51 : f32 to vector<8x256xf32>
    %216 = arith.addf %215, %214 : vector<8x256xf32>
    %217 = arith.divf %215, %216 : vector<8x256xf32>
    %218 = vector.extract_strided_slice %217 {offsets = [0, 0], sizes = [8, 64], strides = [1, 1]} : vector<8x256xf32> to vector<8x64xf32>
    %219 = vector.extract_strided_slice %217 {offsets = [0, 64], sizes = [8, 64], strides = [1, 1]} : vector<8x256xf32> to vector<8x64xf32>
    %220 = vector.extract_strided_slice %217 {offsets = [0, 128], sizes = [8, 64], strides = [1, 1]} : vector<8x256xf32> to vector<8x64xf32>
    %cst_52 = arith.constant 2.000000e+00 : f32
    %221 = vector.broadcast %cst_52 : f32 to vector<8x64xf32>
    %222 = arith.mulf %221, %220 : vector<8x64xf32>
    %cst_53 = arith.constant 1.000000e+00 : f32
    %223 = vector.broadcast %cst_53 : f32 to vector<8x64xf32>
    %224 = arith.subf %222, %223 : vector<8x64xf32>
    %225 = vector.extract_strided_slice %217 {offsets = [0, 192], sizes = [8, 64], strides = [1, 1]} : vector<8x256xf32> to vector<8x64xf32>
    %226 = arith.mulf %219, %206 : vector<8x64xf32>
    %227 = arith.mulf %218, %224 : vector<8x64xf32>
    %228 = arith.addf %226, %227 : vector<8x64xf32>
    %229 = math.tanh %228 : vector<8x64xf32>
    %230 = arith.mulf %225, %229 : vector<8x64xf32>
    %231 = vector.extract_strided_slice %188 {offsets = [16, 0], sizes = [8, 256], strides = [1, 1]} : vector<64x256xf32> to vector<8x256xf32>
    %232 = arith.truncf %230 : vector<8x64xf32> to vector<8x64xbf16>
    %cst_54 = arith.constant dense<0.000000e+00> : vector<8x256xf32>
    %233 = tpu.matmul %232, %184, %cst_54 {dimension_numbers = #tpu.dot_dimension_numbers<[1], [0], [0], [1], [0, 0, 1, 1], [], []>} : vector<8x64xbf16>, vector<64x256xbf16>, vector<8x256xf32> -> vector<8x256xf32>
    %234 = arith.addf %231, %233 : vector<8x256xf32>
    %235 = arith.negf %234 : vector<8x256xf32>
    %236 = math.exp %235 : vector<8x256xf32>
    %cst_55 = arith.constant 1.000000e+00 : f32
    %237 = vector.broadcast %cst_55 : f32 to vector<8x256xf32>
    %238 = arith.addf %237, %236 : vector<8x256xf32>
    %239 = arith.divf %237, %238 : vector<8x256xf32>
    %240 = vector.extract_strided_slice %239 {offsets = [0, 0], sizes = [8, 64], strides = [1, 1]} : vector<8x256xf32> to vector<8x64xf32>
    %241 = vector.extract_strided_slice %239 {offsets = [0, 64], sizes = [8, 64], strides = [1, 1]} : vector<8x256xf32> to vector<8x64xf32>
    %242 = vector.extract_strided_slice %239 {offsets = [0, 128], sizes = [8, 64], strides = [1, 1]} : vector<8x256xf32> to vector<8x64xf32>
    %cst_56 = arith.constant 2.000000e+00 : f32
    %243 = vector.broadcast %cst_56 : f32 to vector<8x64xf32>
    %244 = arith.mulf %243, %242 : vector<8x64xf32>
    %cst_57 = arith.constant 1.000000e+00 : f32
    %245 = vector.broadcast %cst_57 : f32 to vector<8x64xf32>
    %246 = arith.subf %244, %245 : vector<8x64xf32>
    %247 = vector.extract_strided_slice %239 {offsets = [0, 192], sizes = [8, 64], strides = [1, 1]} : vector<8x256xf32> to vector<8x64xf32>
    %248 = arith.mulf %241, %228 : vector<8x64xf32>
    %249 = arith.mulf %240, %246 : vector<8x64xf32>
    %250 = arith.addf %248, %249 : vector<8x64xf32>
    %251 = math.tanh %250 : vector<8x64xf32>
    %252 = arith.mulf %247, %251 : vector<8x64xf32>
    %253 = vector.extract_strided_slice %188 {offsets = [24, 0], sizes = [8, 256], strides = [1, 1]} : vector<64x256xf32> to vector<8x256xf32>
    %254 = arith.truncf %252 : vector<8x64xf32> to vector<8x64xbf16>
    %cst_58 = arith.constant dense<0.000000e+00> : vector<8x256xf32>
    %255 = tpu.matmul %254, %184, %cst_58 {dimension_numbers = #tpu.dot_dimension_numbers<[1], [0], [0], [1], [0, 0, 1, 1], [], []>} : vector<8x64xbf16>, vector<64x256xbf16>, vector<8x256xf32> -> vector<8x256xf32>
    %256 = arith.addf %253, %255 : vector<8x256xf32>
    %257 = arith.negf %256 : vector<8x256xf32>
    %258 = math.exp %257 : vector<8x256xf32>
    %cst_59 = arith.constant 1.000000e+00 : f32
    %259 = vector.broadcast %cst_59 : f32 to vector<8x256xf32>
    %260 = arith.addf %259, %258 : vector<8x256xf32>
    %261 = arith.divf %259, %260 : vector<8x256xf32>
    %262 = vector.extract_strided_slice %261 {offsets = [0, 0], sizes = [8, 64], strides = [1, 1]} : vector<8x256xf32> to vector<8x64xf32>
    %263 = vector.extract_strided_slice %261 {offsets = [0, 64], sizes = [8, 64], strides = [1, 1]} : vector<8x256xf32> to vector<8x64xf32>
    %264 = vector.extract_strided_slice %261 {offsets = [0, 128], sizes = [8, 64], strides = [1, 1]} : vector<8x256xf32> to vector<8x64xf32>
    %cst_60 = arith.constant 2.000000e+00 : f32
    %265 = vector.broadcast %cst_60 : f32 to vector<8x64xf32>
    %266 = arith.mulf %265, %264 : vector<8x64xf32>
    %cst_61 = arith.constant 1.000000e+00 : f32
    %267 = vector.broadcast %cst_61 : f32 to vector<8x64xf32>
    %268 = arith.subf %266, %267 : vector<8x64xf32>
    %269 = vector.extract_strided_slice %261 {offsets = [0, 192], sizes = [8, 64], strides = [1, 1]} : vector<8x256xf32> to vector<8x64xf32>
    %270 = arith.mulf %263, %250 : vector<8x64xf32>
    %271 = arith.mulf %262, %268 : vector<8x64xf32>
    %272 = arith.addf %270, %271 : vector<8x64xf32>
    %273 = math.tanh %272 : vector<8x64xf32>
    %274 = arith.mulf %269, %273 : vector<8x64xf32>
    %275 = vector.extract_strided_slice %188 {offsets = [32, 0], sizes = [8, 256], strides = [1, 1]} : vector<64x256xf32> to vector<8x256xf32>
    %276 = arith.truncf %274 : vector<8x64xf32> to vector<8x64xbf16>
    %cst_62 = arith.constant dense<0.000000e+00> : vector<8x256xf32>
    %277 = tpu.matmul %276, %184, %cst_62 {dimension_numbers = #tpu.dot_dimension_numbers<[1], [0], [0], [1], [0, 0, 1, 1], [], []>} : vector<8x64xbf16>, vector<64x256xbf16>, vector<8x256xf32> -> vector<8x256xf32>
    %278 = arith.addf %275, %277 : vector<8x256xf32>
    %279 = arith.negf %278 : vector<8x256xf32>
    %280 = math.exp %279 : vector<8x256xf32>
    %cst_63 = arith.constant 1.000000e+00 : f32
    %281 = vector.broadcast %cst_63 : f32 to vector<8x256xf32>
    %282 = arith.addf %281, %280 : vector<8x256xf32>
    %283 = arith.divf %281, %282 : vector<8x256xf32>
    %284 = vector.extract_strided_slice %283 {offsets = [0, 0], sizes = [8, 64], strides = [1, 1]} : vector<8x256xf32> to vector<8x64xf32>
    %285 = vector.extract_strided_slice %283 {offsets = [0, 64], sizes = [8, 64], strides = [1, 1]} : vector<8x256xf32> to vector<8x64xf32>
    %286 = vector.extract_strided_slice %283 {offsets = [0, 128], sizes = [8, 64], strides = [1, 1]} : vector<8x256xf32> to vector<8x64xf32>
    %cst_64 = arith.constant 2.000000e+00 : f32
    %287 = vector.broadcast %cst_64 : f32 to vector<8x64xf32>
    %288 = arith.mulf %287, %286 : vector<8x64xf32>
    %cst_65 = arith.constant 1.000000e+00 : f32
    %289 = vector.broadcast %cst_65 : f32 to vector<8x64xf32>
    %290 = arith.subf %288, %289 : vector<8x64xf32>
    %291 = vector.extract_strided_slice %283 {offsets = [0, 192], sizes = [8, 64], strides = [1, 1]} : vector<8x256xf32> to vector<8x64xf32>
    %292 = arith.mulf %285, %272 : vector<8x64xf32>
    %293 = arith.mulf %284, %290 : vector<8x64xf32>
    %294 = arith.addf %292, %293 : vector<8x64xf32>
    %295 = math.tanh %294 : vector<8x64xf32>
    %296 = arith.mulf %291, %295 : vector<8x64xf32>
    %297 = vector.extract_strided_slice %188 {offsets = [40, 0], sizes = [8, 256], strides = [1, 1]} : vector<64x256xf32> to vector<8x256xf32>
    %298 = arith.truncf %296 : vector<8x64xf32> to vector<8x64xbf16>
    %cst_66 = arith.constant dense<0.000000e+00> : vector<8x256xf32>
    %299 = tpu.matmul %298, %184, %cst_66 {dimension_numbers = #tpu.dot_dimension_numbers<[1], [0], [0], [1], [0, 0, 1, 1], [], []>} : vector<8x64xbf16>, vector<64x256xbf16>, vector<8x256xf32> -> vector<8x256xf32>
    %300 = arith.addf %297, %299 : vector<8x256xf32>
    %301 = arith.negf %300 : vector<8x256xf32>
    %302 = math.exp %301 : vector<8x256xf32>
    %cst_67 = arith.constant 1.000000e+00 : f32
    %303 = vector.broadcast %cst_67 : f32 to vector<8x256xf32>
    %304 = arith.addf %303, %302 : vector<8x256xf32>
    %305 = arith.divf %303, %304 : vector<8x256xf32>
    %306 = vector.extract_strided_slice %305 {offsets = [0, 0], sizes = [8, 64], strides = [1, 1]} : vector<8x256xf32> to vector<8x64xf32>
    %307 = vector.extract_strided_slice %305 {offsets = [0, 64], sizes = [8, 64], strides = [1, 1]} : vector<8x256xf32> to vector<8x64xf32>
    %308 = vector.extract_strided_slice %305 {offsets = [0, 128], sizes = [8, 64], strides = [1, 1]} : vector<8x256xf32> to vector<8x64xf32>
    %cst_68 = arith.constant 2.000000e+00 : f32
    %309 = vector.broadcast %cst_68 : f32 to vector<8x64xf32>
    %310 = arith.mulf %309, %308 : vector<8x64xf32>
    %cst_69 = arith.constant 1.000000e+00 : f32
    %311 = vector.broadcast %cst_69 : f32 to vector<8x64xf32>
    %312 = arith.subf %310, %311 : vector<8x64xf32>
    %313 = vector.extract_strided_slice %305 {offsets = [0, 192], sizes = [8, 64], strides = [1, 1]} : vector<8x256xf32> to vector<8x64xf32>
    %314 = arith.mulf %307, %294 : vector<8x64xf32>
    %315 = arith.mulf %306, %312 : vector<8x64xf32>
    %316 = arith.addf %314, %315 : vector<8x64xf32>
    %317 = math.tanh %316 : vector<8x64xf32>
    %318 = arith.mulf %313, %317 : vector<8x64xf32>
    %319 = vector.extract_strided_slice %188 {offsets = [48, 0], sizes = [8, 256], strides = [1, 1]} : vector<64x256xf32> to vector<8x256xf32>
    %320 = arith.truncf %318 : vector<8x64xf32> to vector<8x64xbf16>
    %cst_70 = arith.constant dense<0.000000e+00> : vector<8x256xf32>
    %321 = tpu.matmul %320, %184, %cst_70 {dimension_numbers = #tpu.dot_dimension_numbers<[1], [0], [0], [1], [0, 0, 1, 1], [], []>} : vector<8x64xbf16>, vector<64x256xbf16>, vector<8x256xf32> -> vector<8x256xf32>
    %322 = arith.addf %319, %321 : vector<8x256xf32>
    %323 = arith.negf %322 : vector<8x256xf32>
    %324 = math.exp %323 : vector<8x256xf32>
    %cst_71 = arith.constant 1.000000e+00 : f32
    %325 = vector.broadcast %cst_71 : f32 to vector<8x256xf32>
    %326 = arith.addf %325, %324 : vector<8x256xf32>
    %327 = arith.divf %325, %326 : vector<8x256xf32>
    %328 = vector.extract_strided_slice %327 {offsets = [0, 0], sizes = [8, 64], strides = [1, 1]} : vector<8x256xf32> to vector<8x64xf32>
    %329 = vector.extract_strided_slice %327 {offsets = [0, 64], sizes = [8, 64], strides = [1, 1]} : vector<8x256xf32> to vector<8x64xf32>
    %330 = vector.extract_strided_slice %327 {offsets = [0, 128], sizes = [8, 64], strides = [1, 1]} : vector<8x256xf32> to vector<8x64xf32>
    %cst_72 = arith.constant 2.000000e+00 : f32
    %331 = vector.broadcast %cst_72 : f32 to vector<8x64xf32>
    %332 = arith.mulf %331, %330 : vector<8x64xf32>
    %cst_73 = arith.constant 1.000000e+00 : f32
    %333 = vector.broadcast %cst_73 : f32 to vector<8x64xf32>
    %334 = arith.subf %332, %333 : vector<8x64xf32>
    %335 = vector.extract_strided_slice %327 {offsets = [0, 192], sizes = [8, 64], strides = [1, 1]} : vector<8x256xf32> to vector<8x64xf32>
    %336 = arith.mulf %329, %316 : vector<8x64xf32>
    %337 = arith.mulf %328, %334 : vector<8x64xf32>
    %338 = arith.addf %336, %337 : vector<8x64xf32>
    %339 = math.tanh %338 : vector<8x64xf32>
    %340 = arith.mulf %335, %339 : vector<8x64xf32>
    %341 = vector.extract_strided_slice %188 {offsets = [56, 0], sizes = [8, 256], strides = [1, 1]} : vector<64x256xf32> to vector<8x256xf32>
    %342 = arith.truncf %340 : vector<8x64xf32> to vector<8x64xbf16>
    %cst_74 = arith.constant dense<0.000000e+00> : vector<8x256xf32>
    %343 = tpu.matmul %342, %184, %cst_74 {dimension_numbers = #tpu.dot_dimension_numbers<[1], [0], [0], [1], [0, 0, 1, 1], [], []>} : vector<8x64xbf16>, vector<64x256xbf16>, vector<8x256xf32> -> vector<8x256xf32>
    %344 = arith.addf %341, %343 : vector<8x256xf32>
    %345 = arith.negf %344 : vector<8x256xf32>
    %346 = math.exp %345 : vector<8x256xf32>
    %cst_75 = arith.constant 1.000000e+00 : f32
    %347 = vector.broadcast %cst_75 : f32 to vector<8x256xf32>
    %348 = arith.addf %347, %346 : vector<8x256xf32>
    %349 = arith.divf %347, %348 : vector<8x256xf32>
    %350 = vector.extract_strided_slice %349 {offsets = [0, 0], sizes = [8, 64], strides = [1, 1]} : vector<8x256xf32> to vector<8x64xf32>
    %351 = vector.extract_strided_slice %349 {offsets = [0, 64], sizes = [8, 64], strides = [1, 1]} : vector<8x256xf32> to vector<8x64xf32>
    %352 = vector.extract_strided_slice %349 {offsets = [0, 128], sizes = [8, 64], strides = [1, 1]} : vector<8x256xf32> to vector<8x64xf32>
    %cst_76 = arith.constant 2.000000e+00 : f32
    %353 = vector.broadcast %cst_76 : f32 to vector<8x64xf32>
    %354 = arith.mulf %353, %352 : vector<8x64xf32>
    %cst_77 = arith.constant 1.000000e+00 : f32
    %355 = vector.broadcast %cst_77 : f32 to vector<8x64xf32>
    %356 = arith.subf %354, %355 : vector<8x64xf32>
    %357 = vector.extract_strided_slice %349 {offsets = [0, 192], sizes = [8, 64], strides = [1, 1]} : vector<8x256xf32> to vector<8x64xf32>
    %358 = arith.mulf %351, %338 : vector<8x64xf32>
    %359 = arith.mulf %350, %356 : vector<8x64xf32>
    %360 = arith.addf %358, %359 : vector<8x64xf32>
    %361 = math.tanh %360 : vector<8x64xf32>
    %362 = arith.mulf %357, %361 : vector<8x64xf32>
    %363 = tpu.concatenate %208, %230, %252, %274, %296, %318, %340, %362 in 0 : vector<8x64xf32>, vector<8x64xf32>, vector<8x64xf32>, vector<8x64xf32>, vector<8x64xf32>, vector<8x64xf32>, vector<8x64xf32>, vector<8x64xf32> -> vector<64x64xf32>
    %364 = arith.truncf %363 : vector<64x64xf32> to vector<64x64xbf16>
    %c0_78 = arith.constant 0 : index
    %c0_79 = arith.constant 0 : index
    %365 = vector.load %arg7[%c0_78, %c0_79] : memref<64x256xbf16, #tpu.memory_space<vmem>>, vector<64x256xbf16>
    %c0_80 = arith.constant 0 : index
    %c0_81 = arith.constant 0 : index
    %366 = vector.load %arg8[%c0_80, %c0_81] : memref<64x256xbf16, #tpu.memory_space<vmem>>, vector<64x256xbf16>
    %c0_82 = arith.constant 0 : index
    %c0_83 = arith.constant 0 : index
    %367 = vector.load %arg9[%c0_82, %c0_83] : memref<1x256xf32, #tpu.memory_space<vmem>>, vector<1x256xf32>
    %cst_84 = arith.constant dense<0.000000e+00> : vector<64x256xf32>
    %368 = tpu.matmul %364, %365, %cst_84 {dimension_numbers = #tpu.dot_dimension_numbers<[1], [0], [0], [1], [0, 0, 1, 1], [], []>} : vector<64x64xbf16>, vector<64x256xbf16>, vector<64x256xf32> -> vector<64x256xf32>
    %369 = vector.broadcast %367 : vector<1x256xf32> to vector<64x256xf32>
    %370 = arith.addf %368, %369 : vector<64x256xf32>
    %cst_85 = arith.constant 0.000000e+00 : f32
    %371 = vector.broadcast %cst_85 : f32 to vector<8x64xf32>
    %372 = vector.extract_strided_slice %370 {offsets = [0, 0], sizes = [8, 256], strides = [1, 1]} : vector<64x256xf32> to vector<8x256xf32>
    %373 = arith.negf %372 : vector<8x256xf32>
    %374 = math.exp %373 : vector<8x256xf32>
    %cst_86 = arith.constant 1.000000e+00 : f32
    %375 = vector.broadcast %cst_86 : f32 to vector<8x256xf32>
    %376 = arith.addf %375, %374 : vector<8x256xf32>
    %377 = arith.divf %375, %376 : vector<8x256xf32>
    %378 = vector.extract_strided_slice %377 {offsets = [0, 0], sizes = [8, 64], strides = [1, 1]} : vector<8x256xf32> to vector<8x64xf32>
    %379 = vector.extract_strided_slice %377 {offsets = [0, 64], sizes = [8, 64], strides = [1, 1]} : vector<8x256xf32> to vector<8x64xf32>
    %380 = vector.extract_strided_slice %377 {offsets = [0, 128], sizes = [8, 64], strides = [1, 1]} : vector<8x256xf32> to vector<8x64xf32>
    %cst_87 = arith.constant 2.000000e+00 : f32
    %381 = vector.broadcast %cst_87 : f32 to vector<8x64xf32>
    %382 = arith.mulf %381, %380 : vector<8x64xf32>
    %cst_88 = arith.constant 1.000000e+00 : f32
    %383 = vector.broadcast %cst_88 : f32 to vector<8x64xf32>
    %384 = arith.subf %382, %383 : vector<8x64xf32>
    %385 = vector.extract_strided_slice %377 {offsets = [0, 192], sizes = [8, 64], strides = [1, 1]} : vector<8x256xf32> to vector<8x64xf32>
    %386 = arith.mulf %379, %371 : vector<8x64xf32>
    %387 = arith.mulf %378, %384 : vector<8x64xf32>
    %388 = arith.addf %386, %387 : vector<8x64xf32>
    %389 = math.tanh %388 : vector<8x64xf32>
    %390 = arith.mulf %385, %389 : vector<8x64xf32>
    %391 = vector.extract_strided_slice %370 {offsets = [8, 0], sizes = [8, 256], strides = [1, 1]} : vector<64x256xf32> to vector<8x256xf32>
    %392 = arith.truncf %390 : vector<8x64xf32> to vector<8x64xbf16>
    %cst_89 = arith.constant dense<0.000000e+00> : vector<8x256xf32>
    %393 = tpu.matmul %392, %366, %cst_89 {dimension_numbers = #tpu.dot_dimension_numbers<[1], [0], [0], [1], [0, 0, 1, 1], [], []>} : vector<8x64xbf16>, vector<64x256xbf16>, vector<8x256xf32> -> vector<8x256xf32>
    %394 = arith.addf %391, %393 : vector<8x256xf32>
    %395 = arith.negf %394 : vector<8x256xf32>
    %396 = math.exp %395 : vector<8x256xf32>
    %cst_90 = arith.constant 1.000000e+00 : f32
    %397 = vector.broadcast %cst_90 : f32 to vector<8x256xf32>
    %398 = arith.addf %397, %396 : vector<8x256xf32>
    %399 = arith.divf %397, %398 : vector<8x256xf32>
    %400 = vector.extract_strided_slice %399 {offsets = [0, 0], sizes = [8, 64], strides = [1, 1]} : vector<8x256xf32> to vector<8x64xf32>
    %401 = vector.extract_strided_slice %399 {offsets = [0, 64], sizes = [8, 64], strides = [1, 1]} : vector<8x256xf32> to vector<8x64xf32>
    %402 = vector.extract_strided_slice %399 {offsets = [0, 128], sizes = [8, 64], strides = [1, 1]} : vector<8x256xf32> to vector<8x64xf32>
    %cst_91 = arith.constant 2.000000e+00 : f32
    %403 = vector.broadcast %cst_91 : f32 to vector<8x64xf32>
    %404 = arith.mulf %403, %402 : vector<8x64xf32>
    %cst_92 = arith.constant 1.000000e+00 : f32
    %405 = vector.broadcast %cst_92 : f32 to vector<8x64xf32>
    %406 = arith.subf %404, %405 : vector<8x64xf32>
    %407 = vector.extract_strided_slice %399 {offsets = [0, 192], sizes = [8, 64], strides = [1, 1]} : vector<8x256xf32> to vector<8x64xf32>
    %408 = arith.mulf %401, %388 : vector<8x64xf32>
    %409 = arith.mulf %400, %406 : vector<8x64xf32>
    %410 = arith.addf %408, %409 : vector<8x64xf32>
    %411 = math.tanh %410 : vector<8x64xf32>
    %412 = arith.mulf %407, %411 : vector<8x64xf32>
    %413 = vector.extract_strided_slice %370 {offsets = [16, 0], sizes = [8, 256], strides = [1, 1]} : vector<64x256xf32> to vector<8x256xf32>
    %414 = arith.truncf %412 : vector<8x64xf32> to vector<8x64xbf16>
    %cst_93 = arith.constant dense<0.000000e+00> : vector<8x256xf32>
    %415 = tpu.matmul %414, %366, %cst_93 {dimension_numbers = #tpu.dot_dimension_numbers<[1], [0], [0], [1], [0, 0, 1, 1], [], []>} : vector<8x64xbf16>, vector<64x256xbf16>, vector<8x256xf32> -> vector<8x256xf32>
    %416 = arith.addf %413, %415 : vector<8x256xf32>
    %417 = arith.negf %416 : vector<8x256xf32>
    %418 = math.exp %417 : vector<8x256xf32>
    %cst_94 = arith.constant 1.000000e+00 : f32
    %419 = vector.broadcast %cst_94 : f32 to vector<8x256xf32>
    %420 = arith.addf %419, %418 : vector<8x256xf32>
    %421 = arith.divf %419, %420 : vector<8x256xf32>
    %422 = vector.extract_strided_slice %421 {offsets = [0, 0], sizes = [8, 64], strides = [1, 1]} : vector<8x256xf32> to vector<8x64xf32>
    %423 = vector.extract_strided_slice %421 {offsets = [0, 64], sizes = [8, 64], strides = [1, 1]} : vector<8x256xf32> to vector<8x64xf32>
    %424 = vector.extract_strided_slice %421 {offsets = [0, 128], sizes = [8, 64], strides = [1, 1]} : vector<8x256xf32> to vector<8x64xf32>
    %cst_95 = arith.constant 2.000000e+00 : f32
    %425 = vector.broadcast %cst_95 : f32 to vector<8x64xf32>
    %426 = arith.mulf %425, %424 : vector<8x64xf32>
    %cst_96 = arith.constant 1.000000e+00 : f32
    %427 = vector.broadcast %cst_96 : f32 to vector<8x64xf32>
    %428 = arith.subf %426, %427 : vector<8x64xf32>
    %429 = vector.extract_strided_slice %421 {offsets = [0, 192], sizes = [8, 64], strides = [1, 1]} : vector<8x256xf32> to vector<8x64xf32>
    %430 = arith.mulf %423, %410 : vector<8x64xf32>
    %431 = arith.mulf %422, %428 : vector<8x64xf32>
    %432 = arith.addf %430, %431 : vector<8x64xf32>
    %433 = math.tanh %432 : vector<8x64xf32>
    %434 = arith.mulf %429, %433 : vector<8x64xf32>
    %435 = vector.extract_strided_slice %370 {offsets = [24, 0], sizes = [8, 256], strides = [1, 1]} : vector<64x256xf32> to vector<8x256xf32>
    %436 = arith.truncf %434 : vector<8x64xf32> to vector<8x64xbf16>
    %cst_97 = arith.constant dense<0.000000e+00> : vector<8x256xf32>
    %437 = tpu.matmul %436, %366, %cst_97 {dimension_numbers = #tpu.dot_dimension_numbers<[1], [0], [0], [1], [0, 0, 1, 1], [], []>} : vector<8x64xbf16>, vector<64x256xbf16>, vector<8x256xf32> -> vector<8x256xf32>
    %438 = arith.addf %435, %437 : vector<8x256xf32>
    %439 = arith.negf %438 : vector<8x256xf32>
    %440 = math.exp %439 : vector<8x256xf32>
    %cst_98 = arith.constant 1.000000e+00 : f32
    %441 = vector.broadcast %cst_98 : f32 to vector<8x256xf32>
    %442 = arith.addf %441, %440 : vector<8x256xf32>
    %443 = arith.divf %441, %442 : vector<8x256xf32>
    %444 = vector.extract_strided_slice %443 {offsets = [0, 0], sizes = [8, 64], strides = [1, 1]} : vector<8x256xf32> to vector<8x64xf32>
    %445 = vector.extract_strided_slice %443 {offsets = [0, 64], sizes = [8, 64], strides = [1, 1]} : vector<8x256xf32> to vector<8x64xf32>
    %446 = vector.extract_strided_slice %443 {offsets = [0, 128], sizes = [8, 64], strides = [1, 1]} : vector<8x256xf32> to vector<8x64xf32>
    %cst_99 = arith.constant 2.000000e+00 : f32
    %447 = vector.broadcast %cst_99 : f32 to vector<8x64xf32>
    %448 = arith.mulf %447, %446 : vector<8x64xf32>
    %cst_100 = arith.constant 1.000000e+00 : f32
    %449 = vector.broadcast %cst_100 : f32 to vector<8x64xf32>
    %450 = arith.subf %448, %449 : vector<8x64xf32>
    %451 = vector.extract_strided_slice %443 {offsets = [0, 192], sizes = [8, 64], strides = [1, 1]} : vector<8x256xf32> to vector<8x64xf32>
    %452 = arith.mulf %445, %432 : vector<8x64xf32>
    %453 = arith.mulf %444, %450 : vector<8x64xf32>
    %454 = arith.addf %452, %453 : vector<8x64xf32>
    %455 = math.tanh %454 : vector<8x64xf32>
    %456 = arith.mulf %451, %455 : vector<8x64xf32>
    %457 = vector.extract_strided_slice %370 {offsets = [32, 0], sizes = [8, 256], strides = [1, 1]} : vector<64x256xf32> to vector<8x256xf32>
    %458 = arith.truncf %456 : vector<8x64xf32> to vector<8x64xbf16>
    %cst_101 = arith.constant dense<0.000000e+00> : vector<8x256xf32>
    %459 = tpu.matmul %458, %366, %cst_101 {dimension_numbers = #tpu.dot_dimension_numbers<[1], [0], [0], [1], [0, 0, 1, 1], [], []>} : vector<8x64xbf16>, vector<64x256xbf16>, vector<8x256xf32> -> vector<8x256xf32>
    %460 = arith.addf %457, %459 : vector<8x256xf32>
    %461 = arith.negf %460 : vector<8x256xf32>
    %462 = math.exp %461 : vector<8x256xf32>
    %cst_102 = arith.constant 1.000000e+00 : f32
    %463 = vector.broadcast %cst_102 : f32 to vector<8x256xf32>
    %464 = arith.addf %463, %462 : vector<8x256xf32>
    %465 = arith.divf %463, %464 : vector<8x256xf32>
    %466 = vector.extract_strided_slice %465 {offsets = [0, 0], sizes = [8, 64], strides = [1, 1]} : vector<8x256xf32> to vector<8x64xf32>
    %467 = vector.extract_strided_slice %465 {offsets = [0, 64], sizes = [8, 64], strides = [1, 1]} : vector<8x256xf32> to vector<8x64xf32>
    %468 = vector.extract_strided_slice %465 {offsets = [0, 128], sizes = [8, 64], strides = [1, 1]} : vector<8x256xf32> to vector<8x64xf32>
    %cst_103 = arith.constant 2.000000e+00 : f32
    %469 = vector.broadcast %cst_103 : f32 to vector<8x64xf32>
    %470 = arith.mulf %469, %468 : vector<8x64xf32>
    %cst_104 = arith.constant 1.000000e+00 : f32
    %471 = vector.broadcast %cst_104 : f32 to vector<8x64xf32>
    %472 = arith.subf %470, %471 : vector<8x64xf32>
    %473 = vector.extract_strided_slice %465 {offsets = [0, 192], sizes = [8, 64], strides = [1, 1]} : vector<8x256xf32> to vector<8x64xf32>
    %474 = arith.mulf %467, %454 : vector<8x64xf32>
    %475 = arith.mulf %466, %472 : vector<8x64xf32>
    %476 = arith.addf %474, %475 : vector<8x64xf32>
    %477 = math.tanh %476 : vector<8x64xf32>
    %478 = arith.mulf %473, %477 : vector<8x64xf32>
    %479 = vector.extract_strided_slice %370 {offsets = [40, 0], sizes = [8, 256], strides = [1, 1]} : vector<64x256xf32> to vector<8x256xf32>
    %480 = arith.truncf %478 : vector<8x64xf32> to vector<8x64xbf16>
    %cst_105 = arith.constant dense<0.000000e+00> : vector<8x256xf32>
    %481 = tpu.matmul %480, %366, %cst_105 {dimension_numbers = #tpu.dot_dimension_numbers<[1], [0], [0], [1], [0, 0, 1, 1], [], []>} : vector<8x64xbf16>, vector<64x256xbf16>, vector<8x256xf32> -> vector<8x256xf32>
    %482 = arith.addf %479, %481 : vector<8x256xf32>
    %483 = arith.negf %482 : vector<8x256xf32>
    %484 = math.exp %483 : vector<8x256xf32>
    %cst_106 = arith.constant 1.000000e+00 : f32
    %485 = vector.broadcast %cst_106 : f32 to vector<8x256xf32>
    %486 = arith.addf %485, %484 : vector<8x256xf32>
    %487 = arith.divf %485, %486 : vector<8x256xf32>
    %488 = vector.extract_strided_slice %487 {offsets = [0, 0], sizes = [8, 64], strides = [1, 1]} : vector<8x256xf32> to vector<8x64xf32>
    %489 = vector.extract_strided_slice %487 {offsets = [0, 64], sizes = [8, 64], strides = [1, 1]} : vector<8x256xf32> to vector<8x64xf32>
    %490 = vector.extract_strided_slice %487 {offsets = [0, 128], sizes = [8, 64], strides = [1, 1]} : vector<8x256xf32> to vector<8x64xf32>
    %cst_107 = arith.constant 2.000000e+00 : f32
    %491 = vector.broadcast %cst_107 : f32 to vector<8x64xf32>
    %492 = arith.mulf %491, %490 : vector<8x64xf32>
    %cst_108 = arith.constant 1.000000e+00 : f32
    %493 = vector.broadcast %cst_108 : f32 to vector<8x64xf32>
    %494 = arith.subf %492, %493 : vector<8x64xf32>
    %495 = vector.extract_strided_slice %487 {offsets = [0, 192], sizes = [8, 64], strides = [1, 1]} : vector<8x256xf32> to vector<8x64xf32>
    %496 = arith.mulf %489, %476 : vector<8x64xf32>
    %497 = arith.mulf %488, %494 : vector<8x64xf32>
    %498 = arith.addf %496, %497 : vector<8x64xf32>
    %499 = math.tanh %498 : vector<8x64xf32>
    %500 = arith.mulf %495, %499 : vector<8x64xf32>
    %501 = vector.extract_strided_slice %370 {offsets = [48, 0], sizes = [8, 256], strides = [1, 1]} : vector<64x256xf32> to vector<8x256xf32>
    %502 = arith.truncf %500 : vector<8x64xf32> to vector<8x64xbf16>
    %cst_109 = arith.constant dense<0.000000e+00> : vector<8x256xf32>
    %503 = tpu.matmul %502, %366, %cst_109 {dimension_numbers = #tpu.dot_dimension_numbers<[1], [0], [0], [1], [0, 0, 1, 1], [], []>} : vector<8x64xbf16>, vector<64x256xbf16>, vector<8x256xf32> -> vector<8x256xf32>
    %504 = arith.addf %501, %503 : vector<8x256xf32>
    %505 = arith.negf %504 : vector<8x256xf32>
    %506 = math.exp %505 : vector<8x256xf32>
    %cst_110 = arith.constant 1.000000e+00 : f32
    %507 = vector.broadcast %cst_110 : f32 to vector<8x256xf32>
    %508 = arith.addf %507, %506 : vector<8x256xf32>
    %509 = arith.divf %507, %508 : vector<8x256xf32>
    %510 = vector.extract_strided_slice %509 {offsets = [0, 0], sizes = [8, 64], strides = [1, 1]} : vector<8x256xf32> to vector<8x64xf32>
    %511 = vector.extract_strided_slice %509 {offsets = [0, 64], sizes = [8, 64], strides = [1, 1]} : vector<8x256xf32> to vector<8x64xf32>
    %512 = vector.extract_strided_slice %509 {offsets = [0, 128], sizes = [8, 64], strides = [1, 1]} : vector<8x256xf32> to vector<8x64xf32>
    %cst_111 = arith.constant 2.000000e+00 : f32
    %513 = vector.broadcast %cst_111 : f32 to vector<8x64xf32>
    %514 = arith.mulf %513, %512 : vector<8x64xf32>
    %cst_112 = arith.constant 1.000000e+00 : f32
    %515 = vector.broadcast %cst_112 : f32 to vector<8x64xf32>
    %516 = arith.subf %514, %515 : vector<8x64xf32>
    %517 = vector.extract_strided_slice %509 {offsets = [0, 192], sizes = [8, 64], strides = [1, 1]} : vector<8x256xf32> to vector<8x64xf32>
    %518 = arith.mulf %511, %498 : vector<8x64xf32>
    %519 = arith.mulf %510, %516 : vector<8x64xf32>
    %520 = arith.addf %518, %519 : vector<8x64xf32>
    %521 = math.tanh %520 : vector<8x64xf32>
    %522 = arith.mulf %517, %521 : vector<8x64xf32>
    %523 = vector.extract_strided_slice %370 {offsets = [56, 0], sizes = [8, 256], strides = [1, 1]} : vector<64x256xf32> to vector<8x256xf32>
    %524 = arith.truncf %522 : vector<8x64xf32> to vector<8x64xbf16>
    %cst_113 = arith.constant dense<0.000000e+00> : vector<8x256xf32>
    %525 = tpu.matmul %524, %366, %cst_113 {dimension_numbers = #tpu.dot_dimension_numbers<[1], [0], [0], [1], [0, 0, 1, 1], [], []>} : vector<8x64xbf16>, vector<64x256xbf16>, vector<8x256xf32> -> vector<8x256xf32>
    %526 = arith.addf %523, %525 : vector<8x256xf32>
    %527 = arith.negf %526 : vector<8x256xf32>
    %528 = math.exp %527 : vector<8x256xf32>
    %cst_114 = arith.constant 1.000000e+00 : f32
    %529 = vector.broadcast %cst_114 : f32 to vector<8x256xf32>
    %530 = arith.addf %529, %528 : vector<8x256xf32>
    %531 = arith.divf %529, %530 : vector<8x256xf32>
    %532 = vector.extract_strided_slice %531 {offsets = [0, 0], sizes = [8, 64], strides = [1, 1]} : vector<8x256xf32> to vector<8x64xf32>
    %533 = vector.extract_strided_slice %531 {offsets = [0, 64], sizes = [8, 64], strides = [1, 1]} : vector<8x256xf32> to vector<8x64xf32>
    %534 = vector.extract_strided_slice %531 {offsets = [0, 128], sizes = [8, 64], strides = [1, 1]} : vector<8x256xf32> to vector<8x64xf32>
    %cst_115 = arith.constant 2.000000e+00 : f32
    %535 = vector.broadcast %cst_115 : f32 to vector<8x64xf32>
    %536 = arith.mulf %535, %534 : vector<8x64xf32>
    %cst_116 = arith.constant 1.000000e+00 : f32
    %537 = vector.broadcast %cst_116 : f32 to vector<8x64xf32>
    %538 = arith.subf %536, %537 : vector<8x64xf32>
    %539 = vector.extract_strided_slice %531 {offsets = [0, 192], sizes = [8, 64], strides = [1, 1]} : vector<8x256xf32> to vector<8x64xf32>
    %540 = arith.mulf %533, %520 : vector<8x64xf32>
    %541 = arith.mulf %532, %538 : vector<8x64xf32>
    %542 = arith.addf %540, %541 : vector<8x64xf32>
    %543 = math.tanh %542 : vector<8x64xf32>
    %544 = arith.mulf %539, %543 : vector<8x64xf32>
    %545 = tpu.concatenate %390, %412, %434, %456, %478, %500, %522, %544 in 0 : vector<8x64xf32>, vector<8x64xf32>, vector<8x64xf32>, vector<8x64xf32>, vector<8x64xf32>, vector<8x64xf32>, vector<8x64xf32>, vector<8x64xf32> -> vector<64x64xf32>
    %546 = arith.truncf %545 : vector<64x64xf32> to vector<64x64xbf16>
    %c0_117 = arith.constant 0 : index
    %c0_118 = arith.constant 0 : index
    %547 = vector.load %arg10[%c0_117, %c0_118] : memref<64x128xbf16, #tpu.memory_space<vmem>>, vector<64x128xbf16>
    %cst_119 = arith.constant dense<0.000000e+00> : vector<64x128xf32>
    %548 = tpu.matmul %546, %547, %cst_119 {dimension_numbers = #tpu.dot_dimension_numbers<[1], [0], [0], [1], [0, 0, 1, 1], [], []>} : vector<64x64xbf16>, vector<64x128xbf16>, vector<64x128xf32> -> vector<64x128xf32>
    %c0_120 = arith.constant 0 : index
    %c0_121 = arith.constant 0 : index
    %549 = vector.load %arg11[%c0_120, %c0_121] : memref<1x128xf32, #tpu.memory_space<vmem>>, vector<1x128xf32>
    %550 = vector.broadcast %549 : vector<1x128xf32> to vector<64x128xf32>
    %551 = arith.addf %548, %550 : vector<64x128xf32>
    %c0_122 = arith.constant 0 : index
    %c0_123 = arith.constant 0 : index
    %552 = vector.load %arg12[%c0_122, %c0_123] : memref<64x128xf32, #tpu.memory_space<vmem>>, vector<64x128xf32>
    tpu.vector_store %arg12[%c0_122, %c0_123], %551 {strides = array<i32>} : memref<64x128xf32, #tpu.memory_space<vmem>>, vector<64x128xf32>,
    return
  }
}

</mosaic_0001>

<bundles_post_ra>
// kernel: lstm_model_forward.1
= control target key start
LH: loop header
LB: loop body
LE: loop exit
PB: predicated region body
PF: predicated region fallthrough
CT: control target
= control target key end

     0   :  { %17 = vsyncpa [#allocation3], 0  ;;  %s4604_s0 = inlined_call_operand.vmem [shape: bf16[64,128], index: 0, kind: input, shape index: {}]   ;;  %s4605_s1 = inlined_call_operand.vmem [shape: bf16[128,256], index: 1, kind: input, shape index: {}]   ;;  %s4606_s2 = inlined_call_operand.hbm [shape: bf16[64,256], index: 2, kind: input, shape index: {}]   ;;  %s4607_s3 = inlined_call_operand.vmem [shape: f32[1,256], index: 3, kind: input, shape index: {}]   ;;  %s4608_s4 = inlined_call_operand.hbm [shape: bf16[64,256], index: 4, kind: input, shape index: {}]   ;;  %s4609_s5 = inlined_call_operand.hbm [shape: bf16[64,256], index: 5, kind: input, shape index: {}]   ;;  %s4610_s6 = inlined_call_operand.vmem [shape: f32[1,256], index: 6, kind: input, shape index: {}]   ;;  %s4611_s7 = inlined_call_operand.hbm [shape: bf16[64,256], index: 7, kind: input, shape index: {}]   ;;  %s4612_s8 = inlined_call_operand.hbm [shape: bf16[64,256], index: 8, kind: input, shape index: {}]   ;;  %s4613_s9 = inlined_call_operand.vmem [shape: f32[1,256], index: 9, kind: input, shape index: {}]   ;;  %s4614_s10 = inlined_call_operand.vmem [shape: bf16[64,128], index: 10, kind: input, shape index: {}]   ;;  %s4615_s11 = inlined_call_operand.hbm [shape: f32[1,128], index: 11, kind: input, shape index: {}]   ;;  %s4616_s12 = inlined_call_operand.vmem [shape: f32[64,128], index: 12, kind: output, shape index: {}]  }
   0x1   :  { %18 = vsyncpa [#allocation5], 0 }
   0x2   :  { %19 = vsyncpa [#allocation8], 0 }
   0x3   :  { %20 = vsyncpa [#allocation11], 0  ;;  %s44_s23 = sshll.u32 %s4608_s4, 4  ;;  %s3643_s24 = smov [#allocation4]   ;;  %s45_s23 = int_to_ptr.hbm [resolvable:$true] %s44_s23 }
   0x4   :  { %s46_s25 = sshll.u32 %s3643_s24, 4  ;;  %s72_s28 = sshll.u32 %s4611_s7, 4  ;;  %s47_s25 = int_to_ptr.vmem [resolvable:$true] %s46_s25  ;;  %s73_s28 = int_to_ptr.hbm [resolvable:$true] %s72_s28 }
   0x5   :  { %s3644_s29 = smov 128   ;;  %s3645_s30 = smov 8  }
   0x6   :  { %52 = dma.hbm_to_vmem [thread:$0]  %s45_s23, 1024, %s47_s25, [#allocation5], %s3644_s29, %s3644_s29, %s3645_s30  }
   0x7   :  { %s3646_s13 = smov [#allocation7]   ;;  %s29_s4 = sshll.u32 %s4606_s2, 4  ;;  %s30_s4 = int_to_ptr.hbm [resolvable:$true] %s29_s4 }
   0x8   :  { %s74_s14 = sshll.u32 %s3646_s13, 4  ;;  %s57_s18 = sshll.u32 %s4609_s5, 4  ;;  %s75_s14 = int_to_ptr.vmem [resolvable:$true] %s74_s14  ;;  %s58_s18 = int_to_ptr.hbm [resolvable:$true] %s57_s18 }
   0x9   :  { %80 = dma.hbm_to_vmem [thread:$0]  %s73_s28, 1024, %s75_s14, [#allocation8], %s3644_s29, %s3644_s29, %s3645_s30  }
   0xa   :  { %s3647_s19 = smov [#allocation2]   ;;  %s3648_s21 = smov [#allocation6]  }
   0xb   :  { %s31_s20 = sshll.u32 %s3647_s19, 4  ;;  %s59_s2 = sshll.u32 %s3648_s21, 4  ;;  %s32_s20 = int_to_ptr.vmem [resolvable:$true] %s31_s20  ;;  %s60_s2 = int_to_ptr.vmem [resolvable:$true] %s59_s2 }
   0xc   :  { %37 = dma.hbm_to_vmem [thread:$0]  %s30_s4, 1024, %s32_s20, [#allocation3], %s3644_s29, %s3644_s29, %s3645_s30  }
   0xd   :  { %s85_s24 = sshll.u32 %s4612_s8, 4  ;;  %s103_s26 = sshll.u32 %s4615_s11, 4  ;;  %s86_s24 = int_to_ptr.hbm [resolvable:$true] %s85_s24  ;;  %s104_s26 = int_to_ptr.hbm [resolvable:$true] %s103_s26 }
   0xe   :  { %65 = dma.hbm_to_vmem [thread:$0]  %s58_s18, 1024, %s60_s2, [#allocation5], %s3644_s29, %s3644_s29, %s3645_s30  }
   0xf   :  { %s3649_s27 = smov [#allocation9]   ;;  %s3650_s13 = smov [#allocation10]  }
  0x10   :  { %s87_s28 = sshll.u32 %s3649_s27, 4  ;;  %s105_s8 = sshll.u32 %s3650_s13, 4  ;;  %s88_s28 = int_to_ptr.vmem [resolvable:$true] %s87_s28  ;;  %s106_s8 = int_to_ptr.vmem [resolvable:$true] %s105_s8 }
  0x11   :  { %93 = dma.hbm_to_vmem [thread:$0]  %s86_s24, 1024, %s88_s28, [#allocation8], %s3644_s29, %s3644_s29, %s3645_s30  }
  0x12   :  { %108 = dma.hbm_to_vmem [thread:$0]  %s104_s26, 16, %s106_s8, [#allocation11]  }
  0x13   :  { %3635 = dma.done.wait [#allocation3], 1024  }
  0x14   :  { %3636 = vsyncadd [#allocation3], 4294966272 }
  0x15   :  { %3637 = dma.done.wait [#allocation5], 2048  }
  0x16   :  { %3638 = vsyncadd [#allocation5], 4294965248 }
  0x17   :  { %3639 = dma.done.wait [#allocation8], 2048  }
  0x18   :  { %3640 = vsyncadd [#allocation8], 4294965248 }
  0x19   :  { %3641 = dma.done.wait [#allocation11], 16  }
  0x1a   :  { %3642 = vsyncadd [#allocation11], 4294967280  ;;  %v2845_v0 = vld [vmem:[%s4605_s1 + $0x70] sm:$0xf]  ;;  %v3180_v1 = vld [vmem:[%s4605_s1 + $0x74] sm:$0xf0] }
  0x1b   :  { %v2837_v2 = vld [vmem:[%s4605_s1 + $0x60] sm:$0xf]  ;;  %v2846_v3 = vor.u32 %v3180_v1, %v2845_v0  ;;  %v3178_v4 = vld [vmem:[%s4605_s1 + $0x64] sm:$0xf0]  ;;  %v2829_v6 = vld [vmem:[%s4605_s1 + $0x50] sm:$0xf] }
  0x1c   :  { %v2838_v5 = vor.u32 %v3178_v4, %v2837_v2  ;;  %v3176_v7 = vld [vmem:[%s4605_s1 + $0x54] sm:$0xf0]  ;;  %v2821_v9 = vld [vmem:[%s4605_s1 + $0x40] sm:$0xf]  ;;  %v3174_v10 = vld [vmem:[%s4605_s1 + $0x44] sm:$0xf0] }
  0x1d   :  { %3225 = vmatpush.bf16.msra.mxu1 %v2846_v3  ;;  %276 = vmatpush.bf16.msra.mxu0 %v2846_v3  ;;  %v2830_v8 = vor.u32 %v3176_v7, %v2829_v6  ;;  %v2822_v11 = vor.u32 %v3174_v10, %v2821_v9  ;;  %v2813_v12 = vld [vmem:[%s4605_s1 + $0x30] sm:$0xf]  ;;  %v3172_v13 = vld [vmem:[%s4605_s1 + $0x34] sm:$0xf0]  ;;  %v2805_v15 = vld [vmem:[%s4605_s1 + $0x20] sm:$0xf] }
  0x1e   :  { %3226 = vmatpush.bf16.msra.mxu2 %v2846_v3  ;;  %v2814_v14 = vor.u32 %v3172_v13, %v2813_v12  ;;  %v3170_v16 = vld [vmem:[%s4605_s1 + $0x24] sm:$0xf0]  ;;  %v2797_v18 = vld [vmem:[%s4605_s1 + $0x10] sm:$0xf]  ;;  %v3168_v19 = vld [vmem:[%s4605_s1 + $0x14] sm:$0xf0] }
  0x1f   :  { %v2806_v17 = vor.u32 %v3170_v16, %v2805_v15  ;;  %v2798_v20 = vor.u32 %v3168_v19, %v2797_v18  ;;  %v2789_v21 = vld [vmem:[%s4605_s1] sm:$0xf]  ;;  %v3166_v22 = vld [vmem:[%s4605_s1 + $0x4] sm:$0xf0]  ;;  %v3179_v23 = vld [vmem:[%s4605_s1 + $0x74] sm:$0xf] }
  0x20   :  { %v2847_v24 = vld [vmem:[%s4605_s1 + $0x78] sm:$0xf0]  ;;  %v2790_v25 = vor.u32 %v3166_v22, %v2789_v21  ;;  %v3177_v27 = vld [vmem:[%s4605_s1 + $0x64] sm:$0xf]  ;;  %v2839_v28 = vld [vmem:[%s4605_s1 + $0x68] sm:$0xf0] }
  0x21   :  { %3227 = vmatpush.bf16.msra.mxu1 %v2838_v5  ;;  %277 = vmatpush.bf16.msra.mxu0 %v2838_v5  ;;  %v2850_v26 = vor.u32 %v3179_v23, %v2847_v24  ;;  %v3162_v29 = vld [vmem:[%s4604_s0 + $0x8] sm:$0xff]  ;;  %v3161_v30 = vld [vmem:[%s4604_s0] sm:$0xff]  ;;  %v2842_v31 = vor.u32 %v3177_v27, %v2839_v28  ;;  %v3175_v32 = vld [vmem:[%s4605_s1 + $0x54] sm:$0xf]  ;;  %vm427_vm8 = vcmask 523264  }
  0x22   :  { %3228 = vmatpush.bf16.msra.mxu2 %v2838_v5  ;;  %v2831_v33 = vld [vmem:[%s4605_s1 + $0x58] sm:$0xf0]  ;;  %v3173_v35 = vld [vmem:[%s4605_s1 + $0x44] sm:$0xf]  ;;  %v2823_v36 = vld [vmem:[%s4605_s1 + $0x48] sm:$0xf0] }
  0x23   :  { %v2834_v34 = vor.u32 %v3175_v32, %v2831_v33  ;;  %v2826_v37 = vor.u32 %v3173_v35, %v2823_v36  ;;  %v3171_v38 = vld [vmem:[%s4605_s1 + $0x34] sm:$0xf]  ;;  %v2815_v39 = vld [vmem:[%s4605_s1 + $0x38] sm:$0xf0]  ;;  %v3169_v41 = vld [vmem:[%s4605_s1 + $0x24] sm:$0xf] }
  0x24   :  { %v2818_v40 = vor.u32 %v3171_v38, %v2815_v39  ;;  %v2807_v42 = vld [vmem:[%s4605_s1 + $0x28] sm:$0xf0]  ;;  %v3163_v43 = vld [vmem:[%s4604_s0 + $0x10] sm:$0xff]  ;;  %v2799_v46 = vld [vmem:[%s4605_s1 + $0x18] sm:$0xf0] }
  0x25   :  { %3229 = vmatpush.bf16.msra.mxu1 %v2830_v8  ;;  %278 = vmatpush.bf16.msra.mxu0 %v2830_v8  ;;  %v2810_v44 = vor.u32 %v3169_v41, %v2807_v42  ;;  %v3167_v45 = vld [vmem:[%s4605_s1 + $0x14] sm:$0xf]  ;;  %v3165_v48 = vld [vmem:[%s4605_s1 + $0x4] sm:$0xf]  ;;  %v2791_v49 = vld [vmem:[%s4605_s1 + $0x8] sm:$0xf0] }
  0x26   :  { %3230 = vmatpush.bf16.msra.mxu2 %v2830_v8  ;;  %v2802_v47 = vor.u32 %v3167_v45, %v2799_v46  ;;  %v2794_v50 = vor.u32 %v3165_v48, %v2791_v49  ;;  %v166_v53 = vld [vmem:[%s4607_s3] sm:$0x3]  ;;  %s3651_s1 = smov 64   ;;  %v3164_v27 = vld [vmem:[%s4604_s0 + $0x18] sm:$0xff]  ;;  %v2880_v28 = vld [vmem:[#allocation2 + $0x30] sm:$0xf] }
  0x27   :  { %v3862_v55 = vperm.slane %v166_v53, 0  ;;  %v3869_v60 = vperm.slane %v166_v53, 1  ;;  %v2882_v32 = vld [vmem:[#allocation2 + $0x38] sm:$0xf0]  ;;  %v2872_v33 = vld [vmem:[#allocation2 + $0x20] sm:$0xf] }
  0x28   :  { %v3186_v35 = vld [vmem:[#allocation2 + $0x24] sm:$0xf0]  ;;  %v3185_v36 = vld [vmem:[#allocation2 + $0x24] sm:$0xf]  ;;  %v3184_v41 = vld [vmem:[#allocation2 + $0x14] sm:$0xf0] }
  0x29   :  { %3231 = vmatpush.bf16.msra.mxu1 %v2822_v11  ;;  %279 = vmatpush.bf16.msra.mxu0 %v2822_v11  ;;  %v3881_v38 = vor.u32 %v3186_v35, %v2872_v33  ;;  %v3183_v42 = vld [vmem:[#allocation2 + $0x14] sm:$0xf]  ;;  %v2856_v46 = vld [vmem:[#allocation2] sm:$0xf]  ;;  %v3181_v48 = vld [vmem:[#allocation2 + $0x4] sm:$0xf] }
  0x2a   :  { %3232 = vmatpush.bf16.msra.mxu2 %v2822_v11  ;;  %v2858_v49 = vld [vmem:[#allocation2 + $0x8] sm:$0xf0] }
  0x2b   :  { %v3899_v53 = vor.u32 %v3181_v48, %v2858_v49 }
  0x2d   :  { %3233 = vmatpush.bf16.msra.mxu1 %v2814_v14  ;;  %280 = vmatpush.bf16.msra.mxu0 %v2814_v14 }
  0x2e   :  { %3234 = vmatpush.bf16.msra.mxu2 %v2814_v14 }
  0x31   :  { %3235 = vmatpush.bf16.msra.mxu1 %v2806_v17  ;;  %281 = vmatpush.bf16.msra.mxu0 %v2806_v17 }
  0x32   :  { %3236 = vmatpush.bf16.msra.mxu2 %v2806_v17 }
  0x35   :  { %3237 = vmatpush.bf16.msra.mxu1 %v2798_v20  ;;  %282 = vmatpush.bf16.msra.mxu0 %v2798_v20 }
  0x36   :  { %3238 = vmatpush.bf16.msra.mxu2 %v2798_v20 }
  0x39   :  { %3239 = vmatpush.bf16.msra.mxu1 %v2790_v25  ;;  %283 = vmatpush.bf16.msra.mxu0 %v2790_v25 }
  0x3a   :  { %3240 = vmatpush.bf16.msra.mxu2 %v2790_v25 }
  0x3c   :  { %289 = vmatmul.bf16.vlgmr.msra.gmra.mxu1 %v3162_v29  ;;  %284 = vmatmul.bf16.vlgmr.msra.gmra.mxu0 %v3161_v30 }
  0x3d   :  { %305 = vmatpush.bf16.msrb.mxu1 %v2850_v26  ;;  %299 = vmatmul.bf16.vlgmr.msra.gmra.mxu2 %v3164_v27 }
  0x41   :  { %306 = vmatpush.bf16.msrb.mxu1 %v2842_v31  ;;  %v3187_v31 = vld [vmem:[#allocation2 + $0x34] sm:$0xf] }
  0x45   :  { %307 = vmatpush.bf16.msrb.mxu1 %v2834_v34  ;;  %v3878_v34 = vor.u32 %v3187_v31, %v2882_v32 }
  0x47   :  { %448 = vmatpush.bf16.msra.mxu3 %v3878_v34 }
  0x49   :  { %308 = vmatpush.bf16.msrb.mxu1 %v2826_v37  ;;  %v2874_v37 = vld [vmem:[#allocation2 + $0x28] sm:$0xf0] }
  0x4a   :  { %v3885_v39 = vor.u32 %v3185_v36, %v2874_v37 }
  0x4c   :  { %294 = vmatmul.bf16.gmra.mxu1 %v3163_v43  ;;  %449 = vmatpush.bf16.msra.mxu3 %v3885_v39 }
  0x4d   :  { %309 = vmatpush.bf16.msrb.mxu1 %v2818_v40  ;;  %v2864_v40 = vld [vmem:[#allocation2 + $0x10] sm:$0xf] }
  0x51   :  { %310 = vmatpush.bf16.msrb.mxu1 %v2810_v44  ;;  %v3888_v44 = vor.u32 %v3184_v41, %v2864_v40 }
  0x55   :  { %311 = vmatpush.bf16.msrb.mxu1 %v2802_v47  ;;  %v3182_v47 = vld [vmem:[#allocation2 + $0x4] sm:$0xf0] }
  0x59   :  { %312 = vmatpush.bf16.msrb.mxu1 %v2794_v50  ;;  %v3895_v50 = vor.u32 %v3182_v47, %v2856_v46 }
  0x5c   :  { %313 = vmatmul.bf16.vlgmr.msrb.gmra.mxu1 %v3161_v30 }
  0x6c   :  { %318 = vmatmul.bf16.gmra.mxu1 %v3162_v29  ;;  %v3188_v29 = vld [vmem:[#allocation2 + $0x34] sm:$0xf0] }
  0x6d   :  { %v3876_v30 = vor.u32 %v3188_v29, %v2880_v28 }
  0x6f   :  { %435 = vmatpush.bf16.msrb.mxu2 %v3876_v30  ;;  %855 = vmatpush.bf16.msrb.mxu0 %v3876_v30 }
  0x73   :  { %436 = vmatpush.bf16.msrb.mxu2 %v3881_v38  ;;  %856 = vmatpush.bf16.msrb.mxu0 %v3881_v38 }
  0x77   :  { %437 = vmatpush.bf16.msrb.mxu2 %v3888_v44  ;;  %857 = vmatpush.bf16.msrb.mxu0 %v3888_v44 }
  0x7b   :  { %438 = vmatpush.bf16.msrb.mxu2 %v3895_v50  ;;  %858 = vmatpush.bf16.msrb.mxu0 %v3895_v50 }
  0x7c   :  { %323 = vmatmul.bf16.gmra.mxu1 %v3163_v43  ;;  %v2866_v43 = vld [vmem:[#allocation2 + $0x18] sm:$0xf0] }
  0x7d   :  { %v3892_v45 = vor.u32 %v3183_v42, %v2866_v43 }
  0x7f   :  { %450 = vmatpush.bf16.msra.mxu3 %v3892_v45  ;;  %519 = vmatpush.bf16.msra.mxu2 %v3876_v30 }
  0x83   :  { %451 = vmatpush.bf16.msra.mxu3 %v3899_v53  ;;  %520 = vmatpush.bf16.msra.mxu2 %v3881_v38 }
  0x87   :  { %532 = vmatpush.bf16.msrb.mxu3 %v3878_v34  ;;  %521 = vmatpush.bf16.msra.mxu2 %v3888_v44 }
  0x8b   :  { %533 = vmatpush.bf16.msrb.mxu3 %v3885_v39  ;;  %522 = vmatpush.bf16.msra.mxu2 %v3895_v50 }
  0x8c   :  { %328 = vmatmul.bf16.gmra.mxu1 %v3164_v27 }
  0x8f   :  { %534 = vmatpush.bf16.msrb.mxu3 %v3892_v45 }
  0x93   :  { %535 = vmatpush.bf16.msrb.mxu3 %v3899_v53 }
  0xb9   :  { %v3855_v51 = vpop.f32.mrf.mxu1  ;;  %v285_v54 = vpop.f32.mrf.mxu0 }
  0xba   :  { %v286_v57 = vadd.f32 %v285_v54, %v3862_v55 }
  0xbc   :  { %v2851_v58 = vmul.f32 -1.442695, %v286_v57 }
  0xbe   :  { %3251 = vpow2.f32 %v2851_v58 }
  0xc1   :  { %v3857_v52 = vpop.f32.mrf.mxu1 }
  0xc4   :  { %v3252_v61 = vpop.eup %3251 }
  0xc5   :  { %v340_v0 = vadd.f32 1.0, %v3252_v61 }
  0xc7   :  { %vm347_vm0 = vweird.f32 %v340_v0  ;;  %v353_v14 = vand.u32 2147483648, %v340_v0  ;;  %v351_v16 = vand.u32 2147483647, %v340_v0 }
  0xc9   :  { %v3864_v56 = vpop.f32.mrf.mxu1  ;;  %v354_v20 = vor.u32 1.1754944e-38, %v353_v14  ;;  %vm352_vm7 = vcmp.eq.f32.partialorder %v351_v16, 8.507059e+37 }
  0xd1   :  { %v3867_v59 = vpop.f32.mrf.mxu1 }
  0xd9   :  { %v314_v62 = vpop.f32.mrf.mxu1 }
  0xda   :  { %v315_v63 = vadd.f32 %v314_v62, %v3869_v60 }
  0xdc   :  { %v2852_v1 = vmul.f32 -1.442695, %v315_v63 }
  0xde   :  { %3253 = vpow2.f32 %v2852_v1  ;;  %v3930_v1 = vpop.f32.mrf.mxu2 }
  0xdf   :  { %3255 = vrcp.f32 %v340_v0 }
  0xe4   :  { %v3254_v2 = vpop.eup %3253 }
  0xe5   :  { %v3256_v3 = vpop.eup %3255  ;;  %v341_v4 = vadd.f32 1.0, %v3254_v2 }
  0xe6   :  { %v343_v5 = vmul.f32 %v3256_v3, %v340_v0  ;;  %vm348_vm1 = vweird.f32 %v3256_v3  ;;  %v3932_v2 = vpop.f32.mrf.mxu2 }
  0xe7   :  { %3257 = vrcp.f32 %v341_v4  ;;  %v368_v11 = vand.u32 2147483648, %v341_v4  ;;  %v366_v13 = vand.u32 2147483647, %v341_v4  ;;  %vm349_vm3 = vmor %vm347_vm0, %vm348_vm1  ;;  %vm362_vm4 = vweird.f32 %v341_v4 }
  0xe8   :  { %v344_v6 = vsub.f32 1.0, %v343_v5 }
  0xe9   :  { %v369_v18 = vor.u32 1.1754944e-38, %v368_v11  ;;  %vm367_vm6 = vcmp.eq.f32.partialorder %v366_v13, 8.507059e+37 }
  0xea   :  { %v345_v9 = vmul.f32 %v3256_v3, %v344_v6 }
  0xec   :  { %v346_v15 = vadd.f32 %v3256_v3, %v345_v9 }
  0xed   :  { %v3258_v7 = vpop.eup %3257 }
  0xee   :  { %v358_v8 = vmul.f32 %v3258_v7, %v341_v4  ;;  %vm363_vm2 = vweird.f32 %v3258_v7  ;;  %v350_v22 = vsel %vm349_vm3, %v3256_v3, %v346_v15  ;;  %v287_v3 = vpop.f32.mrf.mxu0  ;;  %v316_v4 = vpop.f32.mrf.mxu1 }
  0xef   :  { %vm364_vm5 = vmor %vm362_vm4, %vm363_vm2  ;;  %v355_v25 = vsel %vm352_vm7, %v354_v20, %v350_v22  ;;  %v288_v5 = vadd.f32 %v287_v3, %v3862_v55  ;;  %v317_v6 = vadd.f32 %v316_v4, %v3869_v60  ;;  %v291_v4 = vadd.f32 %v3855_v51, %v3862_v55 }
  0xf0   :  { %v359_v10 = vsub.f32 1.0, %v358_v8  ;;  %v374_v54 = vmul.f32 0.0, %v355_v25 }
  0xf2   :  { %v360_v12 = vmul.f32 %v3258_v7, %v359_v10 }
  0xf4   :  { %v361_v17 = vadd.f32 %v3258_v7, %v360_v12 }
  0xf6   :  { %v365_v19 = vsel %vm364_vm5, %v3258_v7, %v361_v17 }
  0xf7   :  { %v370_v21 = vsel %vm367_vm6, %v369_v18, %v365_v19 }
  0xf8   :  { %v372_v23 = vmul.f32 2.0, %v370_v21 }
  0xfa   :  { %v2853_v24 = vadd.f32 -1.0, %v372_v23 }
  0xfc   :  { %v375_v26 = vmul.f32 %v2853_v24, %v355_v25 }
  0xfe   :  { %377 = vrot.lane.b32.xlu0 %v375_v26, %s3651_s1 }
 0x170   :  { %v378_v57 = vpop.permute.xlu0 %377 }
 0x171   :  { %v3906_v58 = vadd.f32 %v378_v57, %v374_v54 }
 0x173   :  { %3259 = vtanh.f32 %v3906_v58 }
 0x179   :  { %v3260_v61 = vpop.eup %3259 }
 0x17a   :  { %v3913_v62 = vmul.f32 %v3260_v61, %v370_v21 }
 0x17c   :  { %v383_v63 = vpack.c.bf16 %v3913_v62, %v3913_v62 }
 0x17e   :  { %385 = vrot.lane.b32.xlu0 %v383_v63, %s3651_s1 }
 0x1f0   :  { %v386_v0 = vpop.permute.xlu0 %385 }
 0x1f1   :  { %2886 = vmatmul.msk.bf16.vlgmr.msrb.gmra.mxu2 %vm427_vm8, %v386_v0  ;;  %2887 = vmatmul.msk.bf16.vlgmr.msra.gmra.mxu3 %vm427_vm8, %v386_v0 }
 0x1f2   :  { %616 = vmatpush.bf16.msra.mxu3 %v3878_v34  ;;  %603 = vmatpush.bf16.msrb.mxu2 %v3876_v30 }
 0x1f6   :  { %617 = vmatpush.bf16.msra.mxu3 %v3885_v39  ;;  %604 = vmatpush.bf16.msrb.mxu2 %v3881_v38 }
 0x1fa   :  { %618 = vmatpush.bf16.msra.mxu3 %v3892_v45  ;;  %605 = vmatpush.bf16.msrb.mxu2 %v3888_v44 }
 0x1fe   :  { %619 = vmatpush.bf16.msra.mxu3 %v3899_v53  ;;  %606 = vmatpush.bf16.msrb.mxu2 %v3895_v50 }
 0x274   :  { %v440_v7 = vpop.f32.mrf.mxu2  ;;  %v453_v8 = vpop.f32.mrf.mxu3 }
 0x275   :  { %v457_v9 = vadd.f32 %v440_v7, %v288_v5  ;;  %v458_v10 = vadd.f32 %v453_v8, %v317_v6 }
 0x277   :  { %v2888_v11 = vmul.f32 -1.442695, %v457_v9  ;;  %v2889_v12 = vmul.f32 -1.442695, %v458_v10 }
 0x279   :  { %3261 = vpow2.f32 %v2888_v11 }
 0x27a   :  { %3263 = vpow2.f32 %v2889_v12 }
 0x27c   :  { %v442_v13 = vpop.f32.mrf.mxu2  ;;  %v455_v14 = vpop.f32.mrf.mxu3 }
 0x27f   :  { %v3262_v15 = vpop.eup %3261 }
 0x280   :  { %v3264_v16 = vpop.eup %3263  ;;  %v465_v17 = vadd.f32 1.0, %v3262_v15 }
 0x281   :  { %v466_v18 = vadd.f32 1.0, %v3264_v16 }
 0x282   :  { %3265 = vrcp.f32 %v465_v17  ;;  %v478_v32 = vand.u32 2147483648, %v465_v17  ;;  %vm472_vm13 = vweird.f32 %v465_v17  ;;  %v476_v35 = vand.u32 2147483647, %v465_v17 }
 0x283   :  { %3267 = vrcp.f32 %v466_v18  ;;  %v493_v26 = vand.u32 2147483648, %v466_v18  ;;  %v491_v28 = vand.u32 2147483647, %v466_v18  ;;  %vm487_vm11 = vweird.f32 %v466_v18 }
 0x284   :  { %v479_v42 = vor.u32 1.1754944e-38, %v478_v32  ;;  %vm477_vm0 = vcmp.eq.f32.partialorder %v476_v35, 8.507059e+37 }
 0x285   :  { %v494_v33 = vor.u32 1.1754944e-38, %v493_v26  ;;  %vm492_vm14 = vcmp.eq.f32.partialorder %v491_v28, 8.507059e+37 }
 0x288   :  { %v3266_v19 = vpop.eup %3265 }
 0x289   :  { %v3268_v20 = vpop.eup %3267  ;;  %v468_v21 = vmul.f32 %v3266_v19, %v465_v17  ;;  %vm473_vm10 = vweird.f32 %v3266_v19 }
 0x28a   :  { %v483_v22 = vmul.f32 %v3268_v20, %v466_v18  ;;  %vm488_vm9 = vweird.f32 %v3268_v20  ;;  %vm474_vm15 = vmor %vm472_vm13, %vm473_vm10 }
 0x28b   :  { %v469_v23 = vsub.f32 1.0, %v468_v21  ;;  %vm489_vm12 = vmor %vm487_vm11, %vm488_vm9 }
 0x28c   :  { %v484_v24 = vsub.f32 1.0, %v483_v22 }
 0x28d   :  { %v470_v25 = vmul.f32 %v3266_v19, %v469_v23 }
 0x28e   :  { %v485_v27 = vmul.f32 %v3268_v20, %v484_v24 }
 0x28f   :  { %v471_v29 = vadd.f32 %v3266_v19, %v470_v25 }
 0x290   :  { %v486_v31 = vadd.f32 %v3268_v20, %v485_v27 }
 0x291   :  { %v475_v40 = vsel %vm474_vm15, %v3266_v19, %v471_v29 }
 0x292   :  { %v490_v36 = vsel %vm489_vm12, %v3268_v20, %v486_v31  ;;  %v480_v46 = vsel %vm477_vm0, %v479_v42, %v475_v40 }
 0x293   :  { %v495_v37 = vsel %vm492_vm14, %v494_v33, %v490_v36  ;;  %v499_v48 = vmul.f32 %v480_v46, %v3906_v58  ;;  %v319_v58 = vpop.f32.mrf.mxu1 }
 0x294   :  { %v497_v41 = vmul.f32 2.0, %v495_v37  ;;  %v320_v3 = vadd.f32 %v319_v58, %v3869_v60 }
 0x296   :  { %v2890_v43 = vadd.f32 -1.0, %v497_v41 }
 0x298   :  { %v500_v47 = vmul.f32 %v2890_v43, %v480_v46 }
 0x29a   :  { %502 = vrot.lane.b32.xlu1 %v500_v47, %s3651_s1 }
 0x30c   :  { %v503_v49 = vpop.permute.xlu1 %502 }
 0x30d   :  { %v3938_v54 = vadd.f32 %v503_v49, %v499_v48 }
 0x30f   :  { %3269 = vtanh.f32 %v3938_v54 }
 0x315   :  { %v3270_v57 = vpop.eup %3269 }
 0x316   :  { %v3941_v61 = vmul.f32 %v3270_v57, %v495_v37 }
 0x318   :  { %v508_v63 = vpack.c.bf16 %v3941_v61, %v3941_v61 }
 0x31a   :  { %510 = vrot.lane.b32.xlu1 %v508_v63, %s3651_s1 }
 0x38c   :  { %v511_v0 = vpop.permute.xlu1 %510 }
 0x38d   :  { %2891 = vmatmul.msk.bf16.vlgmr.msra.gmra.mxu2 %vm427_vm8, %v511_v0  ;;  %2892 = vmatmul.msk.bf16.vlgmr.msrb.gmra.mxu3 %vm427_vm8, %v511_v0  ;;  %v293_v0 = vadd.f32 %v3857_v52, %v3862_v55 }
 0x38e   :  { %700 = vmatpush.bf16.msrb.mxu3 %v3878_v34  ;;  %687 = vmatpush.bf16.msra.mxu2 %v3876_v30 }
 0x392   :  { %701 = vmatpush.bf16.msrb.mxu3 %v3885_v39  ;;  %688 = vmatpush.bf16.msra.mxu2 %v3881_v38 }
 0x396   :  { %702 = vmatpush.bf16.msrb.mxu3 %v3892_v45  ;;  %689 = vmatpush.bf16.msra.mxu2 %v3888_v44 }
 0x39a   :  { %703 = vmatpush.bf16.msrb.mxu3 %v3899_v53  ;;  %690 = vmatpush.bf16.msra.mxu2 %v3895_v50 }
 0x410   :  { %v524_v5 = vpop.f32.mrf.mxu2  ;;  %v537_v6 = vpop.f32.mrf.mxu3 }
 0x411   :  { %v541_v7 = vadd.f32 %v524_v5, %v291_v4  ;;  %v542_v8 = vadd.f32 %v537_v6, %v320_v3 }
 0x413   :  { %v2893_v9 = vmul.f32 -1.442695, %v541_v7  ;;  %v2894_v10 = vmul.f32 -1.442695, %v542_v8 }
 0x415   :  { %3271 = vpow2.f32 %v2893_v9 }
 0x416   :  { %3273 = vpow2.f32 %v2894_v10 }
 0x418   :  { %v526_v11 = vpop.f32.mrf.mxu2  ;;  %v539_v12 = vpop.f32.mrf.mxu3 }
 0x41b   :  { %v3272_v13 = vpop.eup %3271 }
 0x41c   :  { %v3274_v14 = vpop.eup %3273  ;;  %v549_v15 = vadd.f32 1.0, %v3272_v13 }
 0x41d   :  { %v550_v16 = vadd.f32 1.0, %v3274_v14 }
 0x41e   :  { %3275 = vrcp.f32 %v549_v15  ;;  %v562_v28 = vand.u32 2147483648, %v549_v15  ;;  %vm556_vm5 = vweird.f32 %v549_v15  ;;  %v560_v31 = vand.u32 2147483647, %v549_v15 }
 0x41f   :  { %3277 = vrcp.f32 %v550_v16  ;;  %v577_v23 = vand.u32 2147483648, %v550_v16  ;;  %v575_v25 = vand.u32 2147483647, %v550_v16  ;;  %vm571_vm3 = vweird.f32 %v550_v16 }
 0x420   :  { %v563_v37 = vor.u32 1.1754944e-38, %v562_v28  ;;  %vm561_vm9 = vcmp.eq.f32.partialorder %v560_v31, 8.507059e+37 }
 0x421   :  { %v578_v29 = vor.u32 1.1754944e-38, %v577_v23  ;;  %vm576_vm6 = vcmp.eq.f32.partialorder %v575_v25, 8.507059e+37 }
 0x424   :  { %v3276_v17 = vpop.eup %3275 }
 0x425   :  { %v3278_v18 = vpop.eup %3277  ;;  %v552_v19 = vmul.f32 %v3276_v17, %v549_v15  ;;  %vm557_vm2 = vweird.f32 %v3276_v17 }
 0x426   :  { %v567_v51 = vmul.f32 %v3278_v18, %v550_v16  ;;  %vm572_vm1 = vweird.f32 %v3278_v18  ;;  %vm558_vm7 = vmor %vm556_vm5, %vm557_vm2 }
 0x427   :  { %v553_v20 = vsub.f32 1.0, %v552_v19  ;;  %vm573_vm4 = vmor %vm571_vm3, %vm572_vm1 }
 0x428   :  { %v568_v21 = vsub.f32 1.0, %v567_v51 }
 0x429   :  { %v554_v22 = vmul.f32 %v3276_v17, %v553_v20 }
 0x42a   :  { %v569_v24 = vmul.f32 %v3278_v18, %v568_v21 }
 0x42b   :  { %v555_v26 = vadd.f32 %v3276_v17, %v554_v22 }
 0x42c   :  { %v570_v27 = vadd.f32 %v3278_v18, %v569_v24 }
 0x42d   :  { %v559_v35 = vsel %vm558_vm7, %v3276_v17, %v555_v26 }
 0x42e   :  { %v574_v32 = vsel %vm573_vm4, %v3278_v18, %v570_v27  ;;  %v564_v41 = vsel %vm561_vm9, %v563_v37, %v559_v35 }
 0x42f   :  { %v579_v33 = vsel %vm576_vm6, %v578_v29, %v574_v32  ;;  %v583_v43 = vmul.f32 %v564_v41, %v3938_v54  ;;  %v321_v54 = vpop.f32.mrf.mxu1 }
 0x430   :  { %v581_v36 = vmul.f32 2.0, %v579_v33  ;;  %v322_v58 = vadd.f32 %v321_v54, %v3869_v60  ;;  %v296_v54 = vadd.f32 %v3864_v56, %v3862_v55 }
 0x432   :  { %v2895_v40 = vadd.f32 -1.0, %v581_v36 }
 0x434   :  { %v584_v42 = vmul.f32 %v2895_v40, %v564_v41 }
 0x436   :  { %586 = vrot.lane.b32.xlu2 %v584_v42, %s3651_s1 }
 0x490   :  { %v587_v46 = vpop.permute.xlu2 %586 }
 0x491   :  { %v3961_v47 = vadd.f32 %v587_v46, %v583_v43 }
 0x493   :  { %3279 = vtanh.f32 %v3961_v47 }
 0x499   :  { %v3280_v48 = vpop.eup %3279 }
 0x49a   :  { %v3964_v49 = vmul.f32 %v3280_v48, %v579_v33 }
 0x49c   :  { %v592_v57 = vpack.c.bf16 %v3964_v49, %v3964_v49 }
 0x49e   :  { %594 = vrot.lane.b32.xlu2 %v592_v57, %s3651_s1 }
 0x4f8   :  { %v595_v63 = vpop.permute.xlu2 %594 }
 0x4f9   :  { %2896 = vmatmul.msk.bf16.vlgmr.msrb.gmra.mxu2 %vm427_vm8, %v595_v63  ;;  %2897 = vmatmul.msk.bf16.vlgmr.msra.gmra.mxu3 %vm427_vm8, %v595_v63 }
 0x4fa   :  { %784 = vmatpush.bf16.msra.mxu3 %v3878_v34  ;;  %771 = vmatpush.bf16.msrb.mxu2 %v3876_v30 }
 0x4fe   :  { %785 = vmatpush.bf16.msra.mxu3 %v3885_v39  ;;  %772 = vmatpush.bf16.msrb.mxu2 %v3881_v38 }
 0x502   :  { %786 = vmatpush.bf16.msra.mxu3 %v3892_v45  ;;  %773 = vmatpush.bf16.msrb.mxu2 %v3888_v44 }
 0x506   :  { %787 = vmatpush.bf16.msra.mxu3 %v3899_v53  ;;  %774 = vmatpush.bf16.msrb.mxu2 %v3895_v50 }
 0x57c   :  { %v608_v3 = vpop.f32.mrf.mxu2  ;;  %v621_v4 = vpop.f32.mrf.mxu3 }
 0x57d   :  { %v625_v5 = vadd.f32 %v608_v3, %v293_v0  ;;  %v626_v6 = vadd.f32 %v621_v4, %v322_v58 }
 0x57f   :  { %v2898_v7 = vmul.f32 -1.442695, %v625_v5  ;;  %v2899_v8 = vmul.f32 -1.442695, %v626_v6 }
 0x581   :  { %3281 = vpow2.f32 %v2898_v7 }
 0x582   :  { %3283 = vpow2.f32 %v2899_v8 }
 0x584   :  { %v610_v9 = vpop.f32.mrf.mxu2  ;;  %v623_v10 = vpop.f32.mrf.mxu3 }
 0x587   :  { %v3282_v11 = vpop.eup %3281 }
 0x588   :  { %v3284_v12 = vpop.eup %3283  ;;  %v633_v13 = vadd.f32 1.0, %v3282_v11 }
 0x589   :  { %v634_v14 = vadd.f32 1.0, %v3284_v12 }
 0x58a   :  { %3285 = vrcp.f32 %v633_v13  ;;  %v646_v25 = vand.u32 2147483648, %v633_v13  ;;  %vm640_vm14 = vweird.f32 %v633_v13  ;;  %v644_v27 = vand.u32 2147483647, %v633_v13 }
 0x58b   :  { %3287 = vrcp.f32 %v634_v14  ;;  %v661_v20 = vand.u32 2147483648, %v634_v14  ;;  %v659_v22 = vand.u32 2147483647, %v634_v14  ;;  %vm655_vm12 = vweird.f32 %v634_v14 }
 0x58c   :  { %v647_v33 = vor.u32 1.1754944e-38, %v646_v25  ;;  %vm645_vm1 = vcmp.eq.f32.partialorder %v644_v27, 8.507059e+37 }
 0x58d   :  { %v662_v26 = vor.u32 1.1754944e-38, %v661_v20  ;;  %vm660_vm15 = vcmp.eq.f32.partialorder %v659_v22, 8.507059e+37 }
 0x590   :  { %v3286_v15 = vpop.eup %3285 }
 0x591   :  { %v3288_v52 = vpop.eup %3287  ;;  %v636_v16 = vmul.f32 %v3286_v15, %v633_v13  ;;  %vm641_vm11 = vweird.f32 %v3286_v15 }
 0x592   :  { %v651_v17 = vmul.f32 %v3288_v52, %v634_v14  ;;  %vm656_vm10 = vweird.f32 %v3288_v52  ;;  %vm642_vm0 = vmor %vm640_vm14, %vm641_vm11 }
 0x593   :  { %v637_v18 = vsub.f32 1.0, %v636_v16  ;;  %vm657_vm13 = vmor %vm655_vm12, %vm656_vm10 }
 0x594   :  { %v652_v19 = vsub.f32 1.0, %v651_v17 }
 0x595   :  { %v638_v51 = vmul.f32 %v3286_v15, %v637_v18 }
 0x596   :  { %v653_v21 = vmul.f32 %v3288_v52, %v652_v19 }
 0x597   :  { %v639_v23 = vadd.f32 %v3286_v15, %v638_v51 }
 0x598   :  { %v654_v24 = vadd.f32 %v3288_v52, %v653_v21 }
 0x599   :  { %v643_v31 = vsel %vm642_vm0, %v3286_v15, %v639_v23 }
 0x59a   :  { %v658_v28 = vsel %vm657_vm13, %v3288_v52, %v654_v24  ;;  %v648_v36 = vsel %vm645_vm1, %v647_v33, %v643_v31  ;;  %v2949_v31 = vld [vmem:[#allocation4 + $0x38] sm:$0xf0] }
 0x59b   :  { %v663_v29 = vsel %vm660_vm15, %v662_v26, %v658_v28  ;;  %v667_v40 = vmul.f32 %v648_v36, %v3961_v47  ;;  %v324_v47 = vpop.f32.mrf.mxu1 }
 0x59c   :  { %v665_v32 = vmul.f32 2.0, %v663_v29  ;;  %v325_v63 = vadd.f32 %v324_v47, %v3869_v60  ;;  %v1012_v47 = vpack.c.bf16 %v3941_v61, %v3913_v62 }
 0x59e   :  { %v2900_v35 = vadd.f32 -1.0, %v665_v32  ;;  %v3193_v32 = vld [vmem:[#allocation4 + $0x24] sm:$0xf] }
 0x5a0   :  { %v668_v37 = vmul.f32 %v2900_v35, %v648_v36  ;;  %v2941_v35 = vld [vmem:[#allocation4 + $0x28] sm:$0xf0] }
 0x5a1   :  { %v2944_v36 = vor.u32 %v3193_v32, %v2941_v35 }
 0x5a2   :  { %670 = vrot.lane.b32.xlu0 %v668_v37, %s3651_s1 }
 0x5a3   :  { %v326_v61 = vpop.f32.mrf.mxu1 }
 0x614   :  { %v671_v41 = vpop.permute.xlu0 %670 }
 0x615   :  { %v3984_v42 = vadd.f32 %v671_v41, %v667_v40 }
 0x617   :  { %3289 = vtanh.f32 %v3984_v42 }
 0x61d   :  { %v3290_v43 = vpop.eup %3289 }
 0x61e   :  { %v3987_v46 = vmul.f32 %v3290_v43, %v663_v29  ;;  %v3195_v29 = vld [vmem:[#allocation4 + $0x34] sm:$0xf] }
 0x61f   :  { %v2952_v33 = vor.u32 %v3195_v29, %v2949_v31 }
 0x620   :  { %v676_v48 = vpack.c.bf16 %v3987_v46, %v3987_v46 }
 0x621   :  { %1135 = vmatpush.bf16.msra.mxu1 %v2952_v33 }
 0x622   :  { %678 = vrot.lane.b32.xlu1 %v676_v48, %s3651_s1 }
 0x625   :  { %1136 = vmatpush.bf16.msra.mxu1 %v2944_v36 }
 0x694   :  { %v679_v57 = vpop.permute.xlu1 %678 }
 0x695   :  { %2901 = vmatmul.msk.bf16.vlgmr.msra.gmra.mxu2 %vm427_vm8, %v679_v57  ;;  %2902 = vmatmul.msk.bf16.vlgmr.msrb.gmra.mxu3 %vm427_vm8, %v679_v57 }
 0x696   :  { %868 = vmatpush.bf16.msrb.mxu3 %v3878_v34  ;;  %939 = vmatpush.bf16.msra.mxu2 %v3876_v30 }
 0x69a   :  { %869 = vmatpush.bf16.msrb.mxu3 %v3885_v39  ;;  %940 = vmatpush.bf16.msra.mxu2 %v3881_v38 }
 0x69e   :  { %870 = vmatpush.bf16.msrb.mxu3 %v3892_v45  ;;  %941 = vmatpush.bf16.msra.mxu2 %v3888_v44 }
 0x6a2   :  { %871 = vmatpush.bf16.msrb.mxu3 %v3899_v53  ;;  %942 = vmatpush.bf16.msra.mxu2 %v3895_v50 }
 0x718   :  { %v692_v0 = vpop.f32.mrf.mxu2  ;;  %v705_v30 = vpop.f32.mrf.mxu3 }
 0x719   :  { %v709_v58 = vadd.f32 %v692_v0, %v296_v54  ;;  %v710_v3 = vadd.f32 %v705_v30, %v325_v63  ;;  %v3191_v63 = vld [vmem:[#allocation4 + $0x14] sm:$0xf]  ;;  %v3189_v0 = vld [vmem:[#allocation4 + $0x4] sm:$0xf]  ;;  %v2925_v30 = vld [vmem:[#allocation4 + $0x8] sm:$0xf0] }
 0x71b   :  { %v2903_v4 = vmul.f32 -1.442695, %v709_v58  ;;  %v2904_v38 = vmul.f32 -1.442695, %v710_v3  ;;  %v2928_v58 = vor.u32 %v3189_v0, %v2925_v30  ;;  %v2923_v30 = vld [vmem:[#allocation4] sm:$0xf] }
 0x71d   :  { %3291 = vpow2.f32 %v2903_v4  ;;  %v298_v4 = vadd.f32 %v3867_v59, %v3862_v55 }
 0x71e   :  { %3293 = vpow2.f32 %v2904_v38  ;;  %v327_v38 = vadd.f32 %v326_v61, %v3869_v60 }
 0x720   :  { %v694_v5 = vpop.f32.mrf.mxu2  ;;  %v707_v44 = vpop.f32.mrf.mxu3 }
 0x723   :  { %v3292_v6 = vpop.eup %3291 }
 0x724   :  { %v3294_v7 = vpop.eup %3293  ;;  %v717_v8 = vadd.f32 1.0, %v3292_v6 }
 0x725   :  { %v718_v50 = vadd.f32 1.0, %v3294_v7 }
 0x726   :  { %3295 = vrcp.f32 %v717_v8  ;;  %v730_v19 = vand.u32 2147483648, %v717_v8  ;;  %vm724_vm6 = vweird.f32 %v717_v8  ;;  %v728_v20 = vand.u32 2147483647, %v717_v8 }
 0x727   :  { %3297 = vrcp.f32 %v718_v50  ;;  %v745_v15 = vand.u32 2147483648, %v718_v50  ;;  %v743_v16 = vand.u32 2147483647, %v718_v50  ;;  %vm739_vm4 = vweird.f32 %v718_v50 }
 0x728   :  { %v731_v25 = vor.u32 1.1754944e-38, %v730_v19  ;;  %vm729_vm10 = vcmp.eq.f32.partialorder %v728_v20, 8.507059e+37 }
 0x729   :  { %v746_v51 = vor.u32 1.1754944e-38, %v745_v15  ;;  %vm744_vm7 = vcmp.eq.f32.partialorder %v743_v16, 8.507059e+37 }
 0x72c   :  { %v3296_v9 = vpop.eup %3295 }
 0x72d   :  { %v3298_v10 = vpop.eup %3297  ;;  %v720_v11 = vmul.f32 %v3296_v9, %v717_v8  ;;  %vm725_vm3 = vweird.f32 %v3296_v9 }
 0x72e   :  { %v735_v56 = vmul.f32 %v3298_v10, %v718_v50  ;;  %vm740_vm2 = vweird.f32 %v3298_v10  ;;  %vm726_vm9 = vmor %vm724_vm6, %vm725_vm3 }
 0x72f   :  { %v721_v12 = vsub.f32 1.0, %v720_v11  ;;  %vm741_vm5 = vmor %vm739_vm4, %vm740_vm2 }
 0x730   :  { %v736_v13 = vsub.f32 1.0, %v735_v56 }
 0x731   :  { %v722_v14 = vmul.f32 %v3296_v9, %v721_v12 }
 0x732   :  { %v737_v52 = vmul.f32 %v3298_v10, %v736_v13 }
 0x733   :  { %v723_v17 = vadd.f32 %v3296_v9, %v722_v14 }
 0x734   :  { %v738_v18 = vadd.f32 %v3298_v10, %v737_v52 }
 0x735   :  { %v727_v23 = vsel %vm726_vm9, %v3296_v9, %v723_v17 }
 0x736   :  { %v742_v21 = vsel %vm741_vm5, %v3298_v10, %v738_v18  ;;  %v732_v27 = vsel %vm729_vm10, %v731_v25, %v727_v23 }
 0x737   :  { %v747_v22 = vsel %vm744_vm7, %v746_v51, %v742_v21  ;;  %v751_v37 = vmul.f32 %v732_v27, %v3984_v42  ;;  %v2933_v42 = vld [vmem:[#allocation4 + $0x18] sm:$0xf0] }
 0x738   :  { %v749_v24 = vmul.f32 2.0, %v747_v22  ;;  %v2936_v54 = vor.u32 %v3191_v63, %v2933_v42  ;;  %v3194_v63 = vld [vmem:[#allocation4 + $0x24] sm:$0xf0]  ;;  %v2931_v42 = vld [vmem:[#allocation4 + $0x10] sm:$0xf] }
 0x73a   :  { %v2905_v26 = vadd.f32 -1.0, %v749_v24  ;;  %1137 = vmatpush.bf16.msra.mxu1 %v2936_v54  ;;  %v3192_v54 = vld [vmem:[#allocation4 + $0x14] sm:$0xf0] }
 0x73b   :  { %v2932_v0 = vor.u32 %v3192_v54, %v2931_v42 }
 0x73c   :  { %v752_v28 = vmul.f32 %v2905_v26, %v732_v27 }
 0x73e   :  { %754 = vrot.lane.b32.xlu2 %v752_v28, %s3651_s1  ;;  %1138 = vmatpush.bf16.msra.mxu1 %v2928_v58  ;;  %v3190_v58 = vld [vmem:[#allocation4 + $0x4] sm:$0xf0] }
 0x798   :  { %v755_v40 = vpop.permute.xlu2 %754 }
 0x799   :  { %v4007_v41 = vadd.f32 %v755_v40, %v751_v37  ;;  %v2947_v40 = vld [vmem:[#allocation4 + $0x30] sm:$0xf] }
 0x79b   :  { %3299 = vtanh.f32 %v4007_v41 }
 0x7a1   :  { %v3300_v43 = vpop.eup %3299 }
 0x7a2   :  { %v4010_v48 = vmul.f32 %v3300_v43, %v747_v22  ;;  %v3196_v43 = vld [vmem:[#allocation4 + $0x34] sm:$0xf0] }
 0x7a4   :  { %v760_v57 = vpack.c.bf16 %v4010_v48, %v4010_v48 }
 0x7a6   :  { %762 = vrot.lane.b32.xlu0 %v760_v57, %s3651_s1  ;;  %v2948_v57 = vor.u32 %v3196_v43, %v2947_v40 }
 0x7a8   :  { %1106 = vmatpush.bf16.msra.mxu0 %v2948_v57 }
 0x7ae   :  { %1042 = vrot.lane.b32.xlu0 %v1012_v47, %s3651_s1  ;;  %v2939_v47 = vld [vmem:[#allocation4 + $0x20] sm:$0xf] }
 0x818   :  { %v763_v3 = vpop.permute.xlu0 %762 }
 0x819   :  { %2906 = vmatmul.msk.bf16.vlgmr.msrb.gmra.mxu2 %vm427_vm8, %v763_v3  ;;  %2907 = vmatmul.msk.bf16.vlgmr.msra.gmra.mxu3 %vm427_vm8, %v763_v3  ;;  %v2924_v3 = vor.u32 %v3190_v58, %v2923_v30 }
 0x81a   :  { %952 = vmatpush.bf16.msra.mxu3 %v3878_v34 }
 0x81e   :  { %953 = vmatpush.bf16.msra.mxu3 %v3885_v39 }
 0x820   :  { %v4022_v62 = vpop.permute.xlu0 %1042 }
 0x821   :  { %2957 = vmatmul.msk.bf16.vlgmr.msra.gmra.mxu1 %vm427_vm8, %v4022_v62 }
 0x822   :  { %954 = vmatpush.bf16.msra.mxu3 %v3892_v45 }
 0x826   :  { %955 = vmatpush.bf16.msra.mxu3 %v3899_v53 }
 0x89c   :  { %v776_v5 = vpop.f32.mrf.mxu2  ;;  %v789_v44 = vpop.f32.mrf.mxu3 }
 0x89d   :  { %v793_v34 = vadd.f32 %v776_v5, %v298_v4  ;;  %v794_v6 = vadd.f32 %v789_v44, %v327_v38  ;;  %v329_v4 = vpop.f32.mrf.mxu1  ;;  %v1032_v5 = vld [vmem:[%s4610_s6] sm:$0x3] }
 0x89e   :  { %v4050_v44 = vperm.slane %v1032_v5, 1 }
 0x89f   :  { %v2908_v39 = vmul.f32 -1.442695, %v793_v34  ;;  %v2909_v7 = vmul.f32 -1.442695, %v794_v6 }
 0x8a1   :  { %3301 = vpow2.f32 %v2908_v39 }
 0x8a2   :  { %3303 = vpow2.f32 %v2909_v7  ;;  %v301_v7 = vadd.f32 %v3930_v1, %v3862_v55 }
 0x8a4   :  { %v778_v8 = vpop.f32.mrf.mxu2  ;;  %v791_v50 = vpop.f32.mrf.mxu3 }
 0x8a5   :  { %v4045_v38 = vpop.f32.mrf.mxu1 }
 0x8a7   :  { %v3302_v9 = vpop.eup %3301 }
 0x8a8   :  { %v3304_v45 = vpop.eup %3303  ;;  %v801_v10 = vadd.f32 1.0, %v3302_v9  ;;  %v330_v9 = vadd.f32 %v329_v4, %v3869_v60 }
 0x8a9   :  { %v802_v53 = vadd.f32 1.0, %v3304_v45 }
 0x8aa   :  { %3305 = vrcp.f32 %v801_v10  ;;  %v814_v51 = vand.u32 2147483648, %v801_v10  ;;  %vm808_vm15 = vweird.f32 %v801_v10  ;;  %v812_v21 = vand.u32 2147483647, %v801_v10 }
 0x8ab   :  { %3307 = vrcp.f32 %v802_v53  ;;  %v829_v52 = vand.u32 2147483648, %v802_v53  ;;  %v827_v17 = vand.u32 2147483647, %v802_v53  ;;  %vm823_vm13 = vweird.f32 %v802_v53 }
 0x8ac   :  { %v815_v26 = vor.u32 1.1754944e-38, %v814_v51  ;;  %vm813_vm2 = vcmp.eq.f32.partialorder %v812_v21, 8.507059e+37 }
 0x8ad   :  { %v830_v20 = vor.u32 1.1754944e-38, %v829_v52  ;;  %vm828_vm0 = vcmp.eq.f32.partialorder %v827_v17, 8.507059e+37  ;;  %v1140_v34 = vpop.f32.mrf.mxu1 }
 0x8ae   :  { %v1141_v6 = vadd.f32 %v1140_v34, %v4050_v44 }
 0x8b0   :  { %v3306_v11 = vpop.eup %3305  ;;  %v2962_v39 = vmul.f32 -1.442695, %v1141_v6 }
 0x8b1   :  { %v3308_v59 = vpop.eup %3307  ;;  %v804_v56 = vmul.f32 %v3306_v11, %v801_v10  ;;  %vm809_vm12 = vweird.f32 %v3306_v11 }
 0x8b2   :  { %v819_v12 = vmul.f32 %v3308_v59, %v802_v53  ;;  %vm824_vm11 = vweird.f32 %v3308_v59  ;;  %vm810_vm1 = vmor %vm808_vm15, %vm809_vm12 }
 0x8b3   :  { %v805_v13 = vsub.f32 1.0, %v804_v56  ;;  %vm825_vm14 = vmor %vm823_vm13, %vm824_vm11 }
 0x8b4   :  { %v820_v14 = vsub.f32 1.0, %v819_v12 }
 0x8b5   :  { %v806_v15 = vmul.f32 %v3306_v11, %v805_v13 }
 0x8b6   :  { %v821_v16 = vmul.f32 %v3308_v59, %v820_v14  ;;  %v4056_v14 = vperm.slane %v1032_v5, 0 }
 0x8b7   :  { %v807_v18 = vadd.f32 %v3306_v11, %v806_v15 }
 0x8b8   :  { %v822_v19 = vadd.f32 %v3308_v59, %v821_v16 }
 0x8b9   :  { %v811_v24 = vsel %vm810_vm1, %v3306_v11, %v807_v18 }
 0x8ba   :  { %v826_v22 = vsel %vm825_vm14, %v3308_v59, %v822_v19  ;;  %v816_v28 = vsel %vm813_vm2, %v815_v26, %v811_v24 }
 0x8bb   :  { %v831_v23 = vsel %vm828_vm0, %v830_v20, %v826_v22  ;;  %v835_v31 = vmul.f32 %v816_v28, %v4007_v41  ;;  %v2940_v41 = vor.u32 %v3194_v63, %v2939_v47 }
 0x8bc   :  { %v833_v25 = vmul.f32 2.0, %v831_v23 }
 0x8bd   :  { %1107 = vmatpush.bf16.msra.mxu0 %v2940_v41  ;;  %v3200_v41 = vld [vmem:[#allocation6 + $0x14] sm:$0xf0] }
 0x8be   :  { %v2910_v27 = vadd.f32 -1.0, %v833_v25 }
 0x8c0   :  { %v836_v29 = vmul.f32 %v2910_v27, %v816_v28 }
 0x8c1   :  { %1108 = vmatpush.bf16.msra.mxu0 %v2932_v0 }
 0x8c2   :  { %838 = vrot.lane.b32.xlu1 %v836_v29, %s3651_s1 }
 0x8c5   :  { %1109 = vmatpush.bf16.msra.mxu0 %v2924_v3 }
 0x934   :  { %v839_v32 = vpop.permute.xlu1 %838 }
 0x935   :  { %v4033_v33 = vadd.f32 %v839_v32, %v835_v31 }
 0x937   :  { %3309 = vtanh.f32 %v4033_v33 }
 0x938   :  { %3311 = vpow2.f32 %v2962_v39 }
 0x93d   :  { %v3310_v35 = vpop.eup %3309 }
 0x93e   :  { %v4036_v36 = vmul.f32 %v3310_v35, %v831_v23 }
 0x940   :  { %v844_v37 = vpack.c.bf16 %v4036_v36, %v4036_v36 }
 0x942   :  { %846 = vrot.lane.b32.xlu2 %v844_v37, %s3651_s1 }
 0x99c   :  { %v847_v61 = vpop.permute.xlu2 %846 }
 0x99d   :  { %2911 = vmatmul.msk.bf16.vlgmr.msrb.gmra.mxu0 %vm427_vm8, %v847_v61  ;;  %2912 = vmatmul.msk.bf16.vlgmr.msrb.gmra.mxu3 %vm427_vm8, %v847_v61 }
 0x9ad   :  { %2953 = vmatmul.msk.bf16.vlgmr.msra.gmra.mxu0 %vm427_vm8, %v4022_v62  ;;  %v3312_v62 = vpop.eup %3311 }
 0x9ae   :  { %v1167_v10 = vadd.f32 1.0, %v3312_v62 }
 0x9b0   :  { %v1194_v32 = vand.u32 2147483648, %v1167_v10  ;;  %vm1188_vm5 = vweird.f32 %v1167_v10  ;;  %v1192_v57 = vand.u32 2147483647, %v1167_v10 }
 0x9b2   :  { %v1195_v30 = vor.u32 1.1754944e-38, %v1194_v32  ;;  %vm1193_vm14 = vcmp.eq.f32.partialorder %v1192_v57, 8.507059e+37  ;;  %v3201_v32 = vld [vmem:[#allocation6 + $0x24] sm:$0xf]  ;;  %v3199_v57 = vld [vmem:[#allocation6 + $0x14] sm:$0xf] }
 0xa1a   :  { %v860_v8 = vpop.f32.mrf.mxu0 }
 0xa1b   :  { %v877_v50 = vadd.f32 %v860_v8, %v301_v7 }
 0xa1d   :  { %v2913_v45 = vmul.f32 -1.442695, %v877_v50 }
 0xa1f   :  { %3313 = vpow2.f32 %v2913_v45 }
 0xa20   :  { %v873_v53 = vpop.f32.mrf.mxu3  ;;  %3315 = vrcp.f32 %v1167_v10 }
 0xa21   :  { %v878_v11 = vadd.f32 %v873_v53, %v330_v9 }
 0xa22   :  { %v862_v59 = vpop.f32.mrf.mxu0 }
 0xa23   :  { %v2914_v56 = vmul.f32 -1.442695, %v878_v11 }
 0xa25   :  { %v3314_v12 = vpop.eup %3313  ;;  %3317 = vpow2.f32 %v2914_v56 }
 0xa26   :  { %v885_v13 = vadd.f32 1.0, %v3314_v12  ;;  %v3316_v15 = vpop.eup %3315 }
 0xa27   :  { %v1184_v18 = vmul.f32 %v3316_v15, %v1167_v10  ;;  %vm1189_vm3 = vweird.f32 %v3316_v15 }
 0xa28   :  { %3319 = vrcp.f32 %v885_v13  ;;  %v875_v1 = vpop.f32.mrf.mxu3  ;;  %vm4059_vm9 = vmor %vm1188_vm5, %vm1189_vm3  ;;  %v898_v42 = vand.u32 2147483648, %v885_v13  ;;  %vm892_vm11 = vweird.f32 %v885_v13  ;;  %v896_v58 = vand.u32 2147483647, %v885_v13 }
 0xa29   :  { %v1185_v22 = vsub.f32 1.0, %v1184_v18 }
 0xa2a   :  { %v1111_v52 = vpop.f32.mrf.mxu0  ;;  %v899_v7 = vor.u32 1.1754944e-38, %v898_v42  ;;  %vm897_vm15 = vcmp.eq.f32.partialorder %v896_v58, 8.507059e+37  ;;  %v2966_v58 = vld [vmem:[#allocation6] sm:$0xf] }
 0xa2b   :  { %v3318_v16 = vpop.eup %3317  ;;  %v1112_v17 = vadd.f32 %v1111_v52, %v4056_v14  ;;  %v1186_v25 = vmul.f32 %v3316_v15, %v1185_v22 }
 0xa2c   :  { %v886_v19 = vadd.f32 1.0, %v3318_v16 }
 0xa2d   :  { %v2961_v51 = vmul.f32 -1.442695, %v1112_v17  ;;  %v1187_v37 = vadd.f32 %v3316_v15, %v1186_v25 }
 0xa2e   :  { %v3320_v20 = vpop.eup %3319  ;;  %3321 = vrcp.f32 %v886_v19  ;;  %v913_v35 = vand.u32 2147483648, %v886_v19  ;;  %v911_v43 = vand.u32 2147483647, %v886_v19  ;;  %vm907_vm7 = vweird.f32 %v886_v19 }
 0xa2f   :  { %v888_v21 = vmul.f32 %v3320_v20, %v885_v13  ;;  %3323 = vpow2.f32 %v2961_v51  ;;  %vm893_vm6 = vweird.f32 %v3320_v20  ;;  %v1191_v0 = vsel %vm4059_vm9, %v3316_v15, %v1187_v37  ;;  %v3202_v37 = vld [vmem:[#allocation6 + $0x24] sm:$0xf0] }
 0xa30   :  { %v914_v54 = vor.u32 1.1754944e-38, %v913_v35  ;;  %vm912_vm12 = vcmp.eq.f32.partialorder %v911_v43, 8.507059e+37  ;;  %vm894_vm13 = vmor %vm892_vm11, %vm893_vm6  ;;  %v1196_v39 = vsel %vm1193_vm14, %v1195_v30, %v1191_v0  ;;  %v2982_v35 = vld [vmem:[#allocation6 + $0x20] sm:$0xf]  ;;  %v3197_v0 = vld [vmem:[#allocation6 + $0x4] sm:$0xf] }
 0xa31   :  { %v889_v23 = vsub.f32 1.0, %v888_v21  ;;  %v1198_v45 = vmul.f32 2.0, %v1196_v39  ;;  %v4096_v43 = vor.u32 %v3202_v37, %v2982_v35  ;;  %v2968_v30 = vld [vmem:[#allocation6 + $0x8] sm:$0xf0] }
 0xa33   :  { %v890_v31 = vmul.f32 %v3320_v20, %v889_v23  ;;  %v2963_v13 = vadd.f32 -1.0, %v1198_v45  ;;  %v1013_v23 = vpack.c.bf16 %v3987_v46, %v3964_v49  ;;  %v2984_v49 = vld [vmem:[#allocation6 + $0x28] sm:$0xf0] }
 0xa34   :  { %v3322_v24 = vpop.eup %3321 }
 0xa35   :  { %v3324_v26 = vpop.eup %3323  ;;  %v903_v27 = vmul.f32 %v3322_v24, %v886_v19  ;;  %vm908_vm4 = vweird.f32 %v3322_v24  ;;  %v891_v47 = vadd.f32 %v3320_v20, %v890_v31  ;;  %v3204_v31 = vld [vmem:[#allocation6 + $0x34] sm:$0xf0] }
 0xa36   :  { %v1166_v28 = vadd.f32 1.0, %v3324_v26  ;;  %vm909_vm10 = vmor %vm907_vm7, %vm908_vm4 }
 0xa37   :  { %v904_v29 = vsub.f32 1.0, %v903_v27  ;;  %v895_v34 = vsel %vm894_vm13, %v3320_v20, %v891_v47  ;;  %v3203_v27 = vld [vmem:[#allocation6 + $0x34] sm:$0xf]  ;;  %v2976_v47 = vld [vmem:[#allocation6 + $0x18] sm:$0xf0] }
 0xa38   :  { %3325 = vrcp.f32 %v1166_v28  ;;  %v900_v62 = vsel %vm897_vm15, %v899_v7, %v895_v34  ;;  %v1179_v9 = vand.u32 2147483648, %v1166_v28  ;;  %v1177_v11 = vand.u32 2147483647, %v1166_v28 }
 0xa39   :  { %v905_v40 = vmul.f32 %v3322_v24, %v904_v29  ;;  %vm1173_vm1 = vweird.f32 %v1166_v28  ;;  %v919_v20 = vmul.f32 %v900_v62, %v4033_v33  ;;  %v2992_v33 = vld [vmem:[#allocation6 + $0x38] sm:$0xf0]  ;;  %v4100_v42 = vor.u32 %v3199_v57, %v2976_v47 }
 0xa3a   :  { %v1180_v56 = vor.u32 1.1754944e-38, %v1179_v9  ;;  %vm1178_vm3 = vcmp.eq.f32.partialorder %v1177_v11, 8.507059e+37  ;;  %v4087_v29 = vor.u32 %v3203_v27, %v2992_v33  ;;  %v1113_v9 = vpop.f32.mrf.mxu0 }
 0xa3b   :  { %v906_v63 = vadd.f32 %v3322_v24, %v905_v40  ;;  %v4092_v40 = vor.u32 %v3201_v32, %v2984_v49 }
 0xa3c   :  { %1273 = vmatpush.bf16.msrb.mxu3 %v4087_v29  ;;  %1609 = vmatpush.bf16.msrb.mxu1 %v4087_v29 }
 0xa3d   :  { %v910_v3 = vsel %vm909_vm10, %v3322_v24, %v906_v63  ;;  %v2974_v63 = vld [vmem:[#allocation6 + $0x10] sm:$0xf] }
 0xa3e   :  { %v3326_v61 = vpop.eup %3325  ;;  %v915_v4 = vsel %vm912_vm12, %v914_v54, %v910_v3  ;;  %v4104_v54 = vor.u32 %v3200_v41, %v2974_v63  ;;  %v3198_v3 = vld [vmem:[#allocation6 + $0x4] sm:$0xf0] }
 0xa3f   :  { %v1169_v5 = vmul.f32 %v3326_v61, %v1166_v28  ;;  %v917_v6 = vmul.f32 2.0, %v915_v4  ;;  %vm1174_vm0 = vweird.f32 %v3326_v61  ;;  %v2990_v28 = vld [vmem:[#allocation6 + $0x30] sm:$0xf] }
 0xa40   :  { %vm1175_vm2 = vmor %vm1173_vm1, %vm1174_vm0  ;;  %v4089_v46 = vor.u32 %v3204_v31, %v2990_v28  ;;  %1274 = vmatpush.bf16.msrb.mxu3 %v4092_v40  ;;  %1610 = vmatpush.bf16.msrb.mxu1 %v4092_v40 }
 0xa41   :  { %v2915_v8 = vadd.f32 -1.0, %v917_v6  ;;  %v1170_v50 = vsub.f32 1.0, %v1169_v5 }
 0xa42   :  { %1260 = vmatpush.bf16.msrb.mxu2 %v4089_v46  ;;  %1596 = vmatpush.bf16.msrb.mxu0 %v4089_v46 }
 0xa43   :  { %v920_v10 = vmul.f32 %v2915_v8, %v900_v62  ;;  %v1171_v53 = vmul.f32 %v3326_v61, %v1170_v50  ;;  %v1142_v62 = vpop.f32.mrf.mxu1 }
 0xa44   :  { %1275 = vmatpush.bf16.msrb.mxu3 %v4100_v42  ;;  %1611 = vmatpush.bf16.msrb.mxu1 %v4100_v42  ;;  %v1143_v45 = vadd.f32 %v1142_v62, %v4050_v44 }
 0xa45   :  { %922 = vrot.lane.b32.xlu1 %v920_v10, %s3651_s1  ;;  %v1172_v59 = vadd.f32 %v3326_v61, %v1171_v53  ;;  %v1114_v10 = vadd.f32 %v1113_v9, %v4056_v14 }
 0xa46   :  { %1261 = vmatpush.bf16.msrb.mxu2 %v4096_v43  ;;  %1597 = vmatpush.bf16.msrb.mxu0 %v4096_v43 }
 0xa47   :  { %v1176_v12 = vsel %vm1175_vm2, %v3326_v61, %v1172_v59  ;;  %v4108_v61 = vor.u32 %v3197_v0, %v2968_v30 }
 0xa48   :  { %v1181_v1 = vsel %vm1178_vm3, %v1180_v56, %v1176_v12 }
 0xa49   :  { %v1201_v15 = vmul.f32 %v2963_v13, %v1181_v1  ;;  %v1200_v52 = vmul.f32 0.0, %v1181_v1  ;;  %1276 = vmatpush.bf16.msrb.mxu3 %v4108_v61  ;;  %1612 = vmatpush.bf16.msrb.mxu1 %v4108_v61 }
 0xa4a   :  { %1262 = vmatpush.bf16.msrb.mxu2 %v4104_v54  ;;  %1598 = vmatpush.bf16.msrb.mxu0 %v4104_v54 }
 0xa4b   :  { %1203 = vrot.lane.b32.xlu2 %v1201_v15, %s3651_s1 }
 0xa4d   :  { %1777 = vmatpush.bf16.msra.mxu1 %v4087_v29 }
 0xa51   :  { %1778 = vmatpush.bf16.msra.mxu1 %v4092_v40 }
 0xa55   :  { %1779 = vmatpush.bf16.msra.mxu1 %v4100_v42 }
 0xa59   :  { %1780 = vmatpush.bf16.msra.mxu1 %v4108_v61 }
 0xaa5   :  { %v1204_v16 = vpop.permute.xlu2 %1203 }
 0xaa6   :  { %v4067_v17 = vadd.f32 %v1204_v16, %v1200_v52 }
 0xaa8   :  { %3327 = vtanh.f32 %v4067_v17 }
 0xaae   :  { %v3328_v18 = vpop.eup %3327 }
 0xaaf   :  { %v4070_v19 = vmul.f32 %v3328_v18, %v1196_v39 }
 0xab1   :  { %v1209_v51 = vpack.c.bf16 %v4070_v19, %v4070_v19 }
 0xab3   :  { %1211 = vrot.lane.b32.xlu1 %v1209_v51, %s3651_s1 }
 0xab7   :  { %v923_v21 = vpop.permute.xlu1 %922 }
 0xab8   :  { %v4076_v22 = vadd.f32 %v923_v21, %v919_v20 }
 0xaba   :  { %3329 = vtanh.f32 %v4076_v22 }
 0xabb   :  { %1044 = vrot.lane.b32.xlu1 %v1013_v23, %s3651_s1 }
 0xac0   :  { %v3330_v24 = vpop.eup %3329 }
 0xac1   :  { %v4082_v25 = vmul.f32 %v3330_v24, %v915_v4  ;;  %v4112_v4 = vor.u32 %v3198_v3, %v2966_v58 }
 0xac3   :  { %v928_v26 = vpack.c.bf16 %v4082_v25, %v4082_v25  ;;  %1263 = vmatpush.bf16.msrb.mxu2 %v4112_v4  ;;  %1599 = vmatpush.bf16.msrb.mxu0 %v4112_v4 }
 0xac5   :  { %930 = vrot.lane.b32.xlu0 %v928_v26, %s3651_s1 }
 0xac7   :  { %1764 = vmatpush.bf16.msra.mxu0 %v4089_v46 }
 0xacb   :  { %1765 = vmatpush.bf16.msra.mxu0 %v4096_v43 }
 0xacf   :  { %1766 = vmatpush.bf16.msra.mxu0 %v4104_v54 }
 0xad3   :  { %1767 = vmatpush.bf16.msra.mxu0 %v4112_v4 }
 0xb25   :  { %v1212_v5 = vpop.permute.xlu1 %1211 }
 0xb2d   :  { %v1045_v34 = vpop.permute.xlu1 %1044 }
 0xb2e   :  { %2954 = vmatmul.msk.bf16.gmra.mxu0 %vm427_vm8, %v1045_v34  ;;  %2958 = vmatmul.msk.bf16.gmra.mxu1 %vm427_vm8, %v1045_v34 }
 0xb37   :  { %v931_v6 = vpop.permute.xlu0 %930 }
 0xb38   :  { %2916 = vmatmul.msk.bf16.vlgmr.msra.gmra.mxu2 %vm427_vm8, %v931_v6  ;;  %2917 = vmatmul.msk.bf16.vlgmr.msra.gmra.mxu3 %vm427_vm8, %v931_v6 }
 0xb39   :  { %1357 = vmatpush.bf16.msra.mxu3 %v4087_v29  ;;  %1344 = vmatpush.bf16.msra.mxu2 %v4089_v46 }
 0xb3d   :  { %1358 = vmatpush.bf16.msra.mxu3 %v4092_v40  ;;  %1345 = vmatpush.bf16.msra.mxu2 %v4096_v43 }
 0xb41   :  { %1359 = vmatpush.bf16.msra.mxu3 %v4100_v42  ;;  %1346 = vmatpush.bf16.msra.mxu2 %v4104_v54 }
 0xb45   :  { %1360 = vmatpush.bf16.msra.mxu3 %v4108_v61  ;;  %1347 = vmatpush.bf16.msra.mxu2 %v4112_v4 }
 0xb48   :  { %2996 = vmatmul.msk.bf16.vlgmr.msrb.gmra.mxu2 %vm427_vm8, %v1212_v5  ;;  %2997 = vmatmul.msk.bf16.vlgmr.msrb.gmra.mxu3 %vm427_vm8, %v1212_v5 }
 0xb49   :  { %1441 = vmatpush.bf16.msrb.mxu3 %v4087_v29  ;;  %1428 = vmatpush.bf16.msrb.mxu2 %v4089_v46 }
 0xb4d   :  { %1442 = vmatpush.bf16.msrb.mxu3 %v4092_v40  ;;  %1429 = vmatpush.bf16.msrb.mxu2 %v4096_v43 }
 0xb51   :  { %1443 = vmatpush.bf16.msrb.mxu3 %v4100_v42  ;;  %1430 = vmatpush.bf16.msrb.mxu2 %v4104_v54 }
 0xb55   :  { %1444 = vmatpush.bf16.msrb.mxu3 %v4108_v61  ;;  %1431 = vmatpush.bf16.msrb.mxu2 %v4112_v4 }
 0xbbb   :  { %v4149_v39 = vpop.f32.mrf.mxu2  ;;  %v4151_v7 = vpop.f32.mrf.mxu3 }
 0xbc3   :  { %v946_v8 = vpop.f32.mrf.mxu2  ;;  %v959_v50 = vpop.f32.mrf.mxu3 }
 0xbcb   :  { %v1265_v53 = vpop.f32.mrf.mxu2  ;;  %v1278_v11 = vpop.f32.mrf.mxu3 }
 0xbcc   :  { %v1282_v59 = vadd.f32 %v1265_v53, %v1114_v10  ;;  %v1283_v56 = vadd.f32 %v1278_v11, %v1143_v45  ;;  %v1145_v53 = vpop.f32.mrf.mxu1 }
 0xbce   :  { %v2998_v12 = vmul.f32 -1.442695, %v1282_v59  ;;  %v2999_v13 = vmul.f32 -1.442695, %v1283_v56  ;;  %v1146_v59 = vadd.f32 %v1145_v53, %v4050_v44 }
 0xbd0   :  { %3331 = vpow2.f32 %v2998_v12 }
 0xbd1   :  { %3333 = vpow2.f32 %v2999_v13 }
 0xbd3   :  { %v1267_v1 = vpop.f32.mrf.mxu2  ;;  %v1280_v15 = vpop.f32.mrf.mxu3 }
 0xbd6   :  { %v3332_v52 = vpop.eup %3331 }
 0xbd7   :  { %v3334_v16 = vpop.eup %3333  ;;  %v1290_v18 = vadd.f32 1.0, %v3332_v52 }
 0xbd8   :  { %v1291_v51 = vadd.f32 1.0, %v3334_v16 }
 0xbd9   :  { %3335 = vrcp.f32 %v1290_v18  ;;  %v1303_v37 = vand.u32 2147483648, %v1290_v18  ;;  %vm1297_vm9 = vweird.f32 %v1290_v18  ;;  %v1301_v47 = vand.u32 2147483647, %v1290_v18 }
 0xbda   :  { %3337 = vrcp.f32 %v1291_v51  ;;  %v1318_v28 = vand.u32 2147483648, %v1291_v51  ;;  %v1316_v32 = vand.u32 2147483647, %v1291_v51  ;;  %vm1312_vm6 = vweird.f32 %v1291_v51 }
 0xbdb   :  { %v1304_v58 = vor.u32 1.1754944e-38, %v1303_v37  ;;  %vm1302_vm12 = vcmp.eq.f32.partialorder %v1301_v47, 8.507059e+37 }
 0xbdc   :  { %v1319_v57 = vor.u32 1.1754944e-38, %v1318_v28  ;;  %vm1317_vm10 = vcmp.eq.f32.partialorder %v1316_v32, 8.507059e+37 }
 0xbdf   :  { %v3336_v20 = vpop.eup %3335 }
 0xbe0   :  { %v3338_v21 = vpop.eup %3337  ;;  %v1293_v23 = vmul.f32 %v3336_v20, %v1290_v18  ;;  %vm1298_vm5 = vweird.f32 %v3336_v20 }
 0xbe1   :  { %v1308_v24 = vmul.f32 %v3338_v21, %v1291_v51  ;;  %vm1313_vm4 = vweird.f32 %v3338_v21  ;;  %vm1299_vm11 = vmor %vm1297_vm9, %vm1298_vm5 }
 0xbe2   :  { %v1294_v26 = vsub.f32 1.0, %v1293_v23  ;;  %vm1314_vm7 = vmor %vm1312_vm6, %vm1313_vm4 }
 0xbe3   :  { %v1309_v27 = vsub.f32 1.0, %v1308_v24 }
 0xbe4   :  { %v1295_v33 = vmul.f32 %v3336_v20, %v1294_v26 }
 0xbe5   :  { %v1310_v31 = vmul.f32 %v3338_v21, %v1309_v27 }
 0xbe6   :  { %v1296_v49 = vadd.f32 %v3336_v20, %v1295_v33 }
 0xbe7   :  { %v1311_v35 = vadd.f32 %v3338_v21, %v1310_v31 }
 0xbe8   :  { %v1300_v0 = vsel %vm1299_vm11, %v3336_v20, %v1296_v49 }
 0xbe9   :  { %v1315_v63 = vsel %vm1314_vm7, %v3338_v21, %v1311_v35  ;;  %v1305_v5 = vsel %vm1302_vm12, %v1304_v58, %v1300_v0 }
 0xbea   :  { %v1320_v41 = vsel %vm1317_vm10, %v1319_v57, %v1315_v63  ;;  %v1324_v6 = vmul.f32 %v1305_v5, %v4067_v17  ;;  %v1116_v17 = vpop.f32.mrf.mxu0 }
 0xbeb   :  { %v1322_v30 = vmul.f32 2.0, %v1320_v41  ;;  %v1117_v11 = vadd.f32 %v1116_v17, %v4056_v14 }
 0xbed   :  { %v3000_v3 = vadd.f32 -1.0, %v1322_v30 }
 0xbef   :  { %v1325_v34 = vmul.f32 %v3000_v3, %v1305_v5 }
 0xbf1   :  { %1327 = vrot.lane.b32.xlu2 %v1325_v34, %s3651_s1 }
 0xc4b   :  { %v1328_v8 = vpop.permute.xlu2 %1327 }
 0xc4c   :  { %v4157_v50 = vadd.f32 %v1328_v8, %v1324_v6 }
 0xc4e   :  { %3339 = vtanh.f32 %v4157_v50 }
 0xc54   :  { %v3340_v62 = vpop.eup %3339 }
 0xc55   :  { %v4160_v9 = vmul.f32 %v3340_v62, %v1320_v41 }
 0xc57   :  { %v1333_v45 = vpack.c.bf16 %v4160_v9, %v4160_v9 }
 0xc59   :  { %1335 = vrot.lane.b32.xlu0 %v1333_v45, %s3651_s1 }
 0xccb   :  { %v1336_v10 = vpop.permute.xlu0 %1335 }
 0xccc   :  { %3001 = vmatmul.msk.bf16.vlgmr.msra.gmra.mxu2 %vm427_vm8, %v1336_v10  ;;  %3002 = vmatmul.msk.bf16.vlgmr.msra.gmra.mxu3 %vm427_vm8, %v1336_v10 }
 0xccd   :  { %1525 = vmatpush.bf16.msra.mxu3 %v4087_v29  ;;  %1512 = vmatpush.bf16.msra.mxu2 %v4089_v46 }
 0xcd1   :  { %1526 = vmatpush.bf16.msra.mxu3 %v4092_v40  ;;  %1513 = vmatpush.bf16.msra.mxu2 %v4096_v43 }
 0xcd5   :  { %1527 = vmatpush.bf16.msra.mxu3 %v4100_v42  ;;  %1514 = vmatpush.bf16.msra.mxu2 %v4104_v54 }
 0xcd9   :  { %1528 = vmatpush.bf16.msra.mxu3 %v4108_v61  ;;  %1515 = vmatpush.bf16.msra.mxu2 %v4112_v4 }
 0xd4f   :  { %v1349_v56 = vpop.f32.mrf.mxu2  ;;  %v1362_v12 = vpop.f32.mrf.mxu3 }
 0xd50   :  { %v1366_v13 = vadd.f32 %v1349_v56, %v1117_v11  ;;  %v1367_v1 = vadd.f32 %v1362_v12, %v1146_v59  ;;  %v1014_v56 = vpack.c.bf16 %v4036_v36, %v4010_v48  ;;  %v332_v48 = vadd.f32 %v4045_v38, %v3869_v60 }
 0xd52   :  { %v3003_v15 = vmul.f32 -1.442695, %v1366_v13  ;;  %v3004_v52 = vmul.f32 -1.442695, %v1367_v1  ;;  %v962_v36 = vadd.f32 %v4151_v7, %v332_v48 }
 0xd54   :  { %3341 = vpow2.f32 %v3003_v15 }
 0xd55   :  { %3343 = vpow2.f32 %v3004_v52 }
 0xd57   :  { %v1351_v16 = vpop.f32.mrf.mxu2  ;;  %v1364_v18 = vpop.f32.mrf.mxu3 }
 0xd5a   :  { %v3342_v51 = vpop.eup %3341 }
 0xd5b   :  { %v3344_v20 = vpop.eup %3343  ;;  %v1374_v21 = vadd.f32 1.0, %v3342_v51 }
 0xd5c   :  { %v1375_v23 = vadd.f32 1.0, %v3344_v20 }
 0xd5d   :  { %3345 = vrcp.f32 %v1374_v21  ;;  %v1387_v63 = vand.u32 2147483648, %v1374_v21  ;;  %vm1381_vm1 = vweird.f32 %v1374_v21  ;;  %v1385_v0 = vand.u32 2147483647, %v1374_v21 }
 0xd5e   :  { %3347 = vrcp.f32 %v1375_v23  ;;  %v1402_v49 = vand.u32 2147483648, %v1375_v23  ;;  %v1400_v37 = vand.u32 2147483647, %v1375_v23  ;;  %vm1396_vm15 = vweird.f32 %v1375_v23 }
 0xd5f   :  { %v1388_v34 = vor.u32 1.1754944e-38, %v1387_v63  ;;  %vm1386_vm4 = vcmp.eq.f32.partialorder %v1385_v0, 8.507059e+37 }
 0xd60   :  { %v1403_v41 = vor.u32 1.1754944e-38, %v1402_v49  ;;  %vm1401_vm2 = vcmp.eq.f32.partialorder %v1400_v37, 8.507059e+37 }
 0xd63   :  { %v3346_v24 = vpop.eup %3345 }
 0xd64   :  { %v3348_v26 = vpop.eup %3347  ;;  %v1377_v27 = vmul.f32 %v3346_v24, %v1374_v21  ;;  %vm1382_vm14 = vweird.f32 %v3346_v24 }
 0xd65   :  { %v1392_v33 = vmul.f32 %v3348_v26, %v1375_v23  ;;  %vm1397_vm13 = vweird.f32 %v3348_v26  ;;  %vm1383_vm3 = vmor %vm1381_vm1, %vm1382_vm14 }
 0xd66   :  { %v1378_v28 = vsub.f32 1.0, %v1377_v27  ;;  %vm1398_vm0 = vmor %vm1396_vm15, %vm1397_vm13 }
 0xd67   :  { %v1393_v31 = vsub.f32 1.0, %v1392_v33 }
 0xd68   :  { %v1379_v32 = vmul.f32 %v3346_v24, %v1378_v28 }
 0xd69   :  { %v1394_v35 = vmul.f32 %v3348_v26, %v1393_v31 }
 0xd6a   :  { %v1380_v57 = vadd.f32 %v3346_v24, %v1379_v32 }
 0xd6b   :  { %v1395_v47 = vadd.f32 %v3348_v26, %v1394_v35 }
 0xd6c   :  { %v1384_v3 = vsel %vm1383_vm3, %v3346_v24, %v1380_v57 }
 0xd6d   :  { %v1399_v30 = vsel %vm1398_vm0, %v3348_v26, %v1395_v47  ;;  %v1389_v8 = vsel %vm1386_vm4, %v1388_v34, %v1384_v3 }
 0xd6e   :  { %v1404_v58 = vsel %vm1401_vm2, %v1403_v41, %v1399_v30  ;;  %v1408_v45 = vmul.f32 %v1389_v8, %v4157_v50 }
 0xd6f   :  { %v1406_v5 = vmul.f32 2.0, %v1404_v58 }
 0xd71   :  { %v3005_v6 = vadd.f32 -1.0, %v1406_v5 }
 0xd73   :  { %v1409_v62 = vmul.f32 %v3005_v6, %v1389_v8 }
 0xd75   :  { %1411 = vrot.lane.b32.xlu2 %v1409_v62, %s3651_s1 }
 0xdcf   :  { %v1412_v10 = vpop.permute.xlu2 %1411 }
 0xdd0   :  { %v4179_v17 = vadd.f32 %v1412_v10, %v1408_v45 }
 0xdd2   :  { %3349 = vtanh.f32 %v4179_v17 }
 0xdd8   :  { %v3350_v53 = vpop.eup %3349 }
 0xdd9   :  { %v4182_v11 = vmul.f32 %v3350_v53, %v1404_v58 }
 0xddb   :  { %v1417_v59 = vpack.c.bf16 %v4182_v11, %v4182_v11 }
 0xddd   :  { %1419 = vrot.lane.b32.xlu0 %v1417_v59, %s3651_s1 }
 0xde5   :  { %1046 = vrot.lane.b32.xlu0 %v1014_v56, %s3651_s1 }
 0xe4f   :  { %v1420_v12 = vpop.permute.xlu0 %1419 }
 0xe50   :  { %3006 = vmatmul.msk.bf16.vlgmr.msrb.gmra.mxu2 %vm427_vm8, %v1420_v12  ;;  %3007 = vmatmul.msk.bf16.vlgmr.msrb.gmra.mxu3 %vm427_vm8, %v1420_v12 }
 0xe51   :  { %1693 = vmatpush.bf16.msrb.mxu3 %v4087_v29  ;;  %1680 = vmatpush.bf16.msrb.mxu2 %v4089_v46  ;;  %v2919_v29 = vmul.f32 -1.442695, %v962_v36  ;;  %v303_v46 = vadd.f32 %v3932_v2, %v3862_v55 }
 0xe53   :  { %3351 = vpow2.f32 %v2919_v29 }
 0xe55   :  { %1694 = vmatpush.bf16.msrb.mxu3 %v4092_v40  ;;  %1681 = vmatpush.bf16.msrb.mxu2 %v4096_v43  ;;  %v961_v40 = vadd.f32 %v4149_v39, %v303_v46  ;;  %v1118_v43 = vpop.f32.mrf.mxu0 }
 0xe57   :  { %v1047_v50 = vpop.permute.xlu0 %1046  ;;  %v2918_v13 = vmul.f32 -1.442695, %v961_v40 }
 0xe58   :  { %2955 = vmatmul.msk.bf16.gmra.mxu0 %vm427_vm8, %v1047_v50  ;;  %2959 = vmatmul.msk.bf16.gmra.mxu1 %vm427_vm8, %v1047_v50 }
 0xe59   :  { %1695 = vmatpush.bf16.msrb.mxu3 %v4100_v42  ;;  %1682 = vmatpush.bf16.msrb.mxu2 %v4104_v54  ;;  %v1147_v42 = vpop.f32.mrf.mxu1  ;;  %v3352_v54 = vpop.eup %3351  ;;  %3353 = vpow2.f32 %v2918_v13 }
 0xe5a   :  { %v4210_v1 = vadd.f32 1.0, %v3352_v54 }
 0xe5c   :  { %3355 = vrcp.f32 %v4210_v1  ;;  %vm991_vm7 = vweird.f32 %v4210_v1  ;;  %v995_v5 = vand.u32 2147483647, %v4210_v1  ;;  %v997_v34 = vand.u32 2147483648, %v4210_v1 }
 0xe5d   :  { %1696 = vmatpush.bf16.msrb.mxu3 %v4108_v61  ;;  %1683 = vmatpush.bf16.msrb.mxu2 %v4112_v4  ;;  %v1119_v61 = vadd.f32 %v1118_v43, %v4056_v14  ;;  %v1148_v4 = vadd.f32 %v1147_v42, %v4050_v44 }
 0xe5e   :  { %v998_v50 = vor.u32 1.1754944e-38, %v997_v34  ;;  %vm996_vm0 = vcmp.eq.f32.partialorder %v995_v5, 8.507059e+37 }
 0xe5f   :  { %v3354_v2 = vpop.eup %3353 }
 0xe60   :  { %v4213_v18 = vadd.f32 1.0, %v3354_v2 }
 0xe62   :  { %v3356_v51 = vpop.eup %3355  ;;  %vm976_vm3 = vweird.f32 %v4213_v18 }
 0xe63   :  { %v987_v24 = vmul.f32 %v3356_v51, %v4210_v1  ;;  %vm992_vm5 = vweird.f32 %v3356_v51  ;;  %v980_v1 = vand.u32 2147483647, %v4213_v18 }
 0xe64   :  { %vm4221_vm11 = vmor %vm991_vm7, %vm992_vm5 }
 0xe65   :  { %v988_v27 = vsub.f32 1.0, %v987_v24  ;;  %vm981_vm5 = vcmp.eq.f32.partialorder %v980_v1, 8.507059e+37 }
 0xe67   :  { %v989_v49 = vmul.f32 %v3356_v51, %v988_v27 }
 0xe69   :  { %v990_v0 = vadd.f32 %v3356_v51, %v989_v49 }
 0xe6b   :  { %v994_v53 = vsel %vm4221_vm11, %v3356_v51, %v990_v0 }
 0xe6c   :  { %v999_v40 = vsel %vm996_vm0, %v998_v50, %v994_v53 }
 0xed3   :  { %v1433_v60 = vpop.f32.mrf.mxu2  ;;  %v1446_v38 = vpop.f32.mrf.mxu3 }
 0xed4   :  { %v1450_v7 = vadd.f32 %v1433_v60, %v1119_v61  ;;  %v1451_v15 = vadd.f32 %v1446_v38, %v1148_v4  ;;  %v1001_v61 = vmul.f32 2.0, %v999_v40  ;;  %v982_v4 = vand.u32 2147483648, %v4213_v18 }
 0xed6   :  { %v3008_v52 = vmul.f32 -1.442695, %v1450_v7  ;;  %v3009_v55 = vmul.f32 -1.442695, %v1451_v15  ;;  %v2920_v38 = vadd.f32 -1.0, %v1001_v61  ;;  %v983_v7 = vor.u32 1.1754944e-38, %v982_v4 }
 0xed8   :  { %3357 = vpow2.f32 %v3008_v52 }
 0xed9   :  { %3359 = vpow2.f32 %v3009_v55 }
 0xeda   :  { %3361 = vrcp.f32 %v4213_v18 }
 0xedb   :  { %v1435_v39 = vpop.f32.mrf.mxu2  ;;  %v1448_v16 = vpop.f32.mrf.mxu3 }
 0xede   :  { %v3358_v20 = vpop.eup %3357 }
 0xedf   :  { %v3360_v21 = vpop.eup %3359  ;;  %v1458_v23 = vadd.f32 1.0, %v3358_v20 }
 0xee0   :  { %v1459_v26 = vadd.f32 1.0, %v3360_v21  ;;  %v3362_v33 = vpop.eup %3361 }
 0xee1   :  { %3363 = vrcp.f32 %v1458_v23  ;;  %v972_v37 = vmul.f32 %v3362_v33, %v4213_v18  ;;  %v1471_v45 = vand.u32 2147483648, %v1458_v23  ;;  %vm1465_vm13 = vweird.f32 %v1458_v23 }
 0xee2   :  { %3365 = vrcp.f32 %v1459_v26  ;;  %v1486_v41 = vand.u32 2147483648, %v1459_v26  ;;  %v1484_v58 = vand.u32 2147483647, %v1459_v26  ;;  %vm1480_vm10 = vweird.f32 %v1459_v26 }
 0xee3   :  { %v973_v3 = vsub.f32 1.0, %v972_v37  ;;  %v1469_v59 = vand.u32 2147483647, %v1458_v23  ;;  %v1472_v46 = vor.u32 1.1754944e-38, %v1471_v45  ;;  %vm977_vm2 = vweird.f32 %v3362_v33 }
 0xee4   :  { %v1487_v10 = vor.u32 1.1754944e-38, %v1486_v41  ;;  %vm1485_vm14 = vcmp.eq.f32.partialorder %v1484_v58, 8.507059e+37  ;;  %vm978_vm4 = vmor %vm976_vm3, %vm977_vm2 }
 0xee5   :  { %v974_v29 = vmul.f32 %v3362_v33, %v973_v3  ;;  %vm1470_vm1 = vcmp.eq.f32.partialorder %v1469_v59, 8.507059e+37 }
 0xee7   :  { %v3364_v28 = vpop.eup %3363  ;;  %v975_v54 = vadd.f32 %v3362_v33, %v974_v29 }
 0xee8   :  { %v3366_v31 = vpop.eup %3365  ;;  %v1461_v32 = vmul.f32 %v3364_v28, %v1458_v23  ;;  %vm1466_vm9 = vweird.f32 %v3364_v28 }
 0xee9   :  { %v1476_v35 = vmul.f32 %v3366_v31, %v1459_v26  ;;  %vm1481_vm6 = vweird.f32 %v3366_v31  ;;  %vm1467_vm15 = vmor %vm1465_vm13, %vm1466_vm9  ;;  %v979_v60 = vsel %vm978_vm4, %v3362_v33, %v975_v54  ;;  %v1121_v33 = vpop.f32.mrf.mxu0 }
 0xeea   :  { %v1462_v57 = vsub.f32 1.0, %v1461_v32  ;;  %vm1482_vm12 = vmor %vm1480_vm10, %vm1481_vm6  ;;  %v984_v15 = vsel %vm981_vm5, %v983_v7, %v979_v60 }
 0xeeb   :  { %v1477_v47 = vsub.f32 1.0, %v1476_v35  ;;  %v1004_v52 = vmul.f32 %v2920_v38, %v984_v15  ;;  %v1003_v16 = vmul.f32 %v984_v15, %v4076_v22 }
 0xeec   :  { %v1463_v63 = vmul.f32 %v3364_v28, %v1462_v57 }
 0xeed   :  { %v1478_v30 = vmul.f32 %v3366_v31, %v1477_v47 }
 0xeee   :  { %v1464_v6 = vadd.f32 %v3364_v28, %v1463_v63 }
 0xeef   :  { %v1479_v8 = vadd.f32 %v3366_v31, %v1478_v30 }
 0xef0   :  { %v1468_v48 = vsel %vm1467_vm15, %v3364_v28, %v1464_v6  ;;  %v1150_v28 = vpop.f32.mrf.mxu1 }
 0xef1   :  { %v1483_v56 = vsel %vm1482_vm12, %v3366_v31, %v1479_v8  ;;  %v1473_v42 = vsel %vm1470_vm1, %v1472_v46, %v1468_v48  ;;  %v1122_v31 = vadd.f32 %v1121_v33, %v4056_v14  ;;  %v1151_v32 = vadd.f32 %v1150_v28, %v4050_v44 }
 0xef2   :  { %v1488_v12 = vsel %vm1485_vm14, %v1487_v10, %v1483_v56  ;;  %v1492_v55 = vmul.f32 %v1473_v42, %v4179_v17 }
 0xef3   :  { %v1490_v36 = vmul.f32 2.0, %v1488_v12 }
 0xef5   :  { %v3010_v43 = vadd.f32 -1.0, %v1490_v36 }
 0xef7   :  { %v1493_v13 = vmul.f32 %v3010_v43, %v1473_v42 }
 0xef9   :  { %1495 = vrot.lane.b32.xlu1 %v1493_v13, %s3651_s1 }
 0xf01   :  { %1006 = vrot.lane.b32.xlu1 %v1004_v52, %s3651_s1 }
 0xf6b   :  { %v1496_v2 = vpop.permute.xlu1 %1495 }
 0xf6c   :  { %v4233_v39 = vadd.f32 %v1496_v2, %v1492_v55  ;;  %v1837_v55 = vpack.c.bf16 %v4160_v9, %v4070_v19 }
 0xf6e   :  { %3367 = vtanh.f32 %v4233_v39 }
 0xf73   :  { %v1007_v51 = vpop.permute.xlu1 %1006 }
 0xf74   :  { %v3368_v18 = vpop.eup %3367  ;;  %v1009_v20 = vadd.f32 %v1007_v51, %v1003_v16  ;;  %v1152_v16 = vpop.f32.mrf.mxu1 }
 0xf75   :  { %v4237_v21 = vmul.f32 %v3368_v18, %v1488_v12  ;;  %v1153_v19 = vadd.f32 %v1152_v16, %v4050_v44 }
 0xf76   :  { %3369 = vtanh.f32 %v1009_v20 }
 0xf77   :  { %v1501_v23 = vpack.c.bf16 %v4237_v21, %v4237_v21 }
 0xf79   :  { %1503 = vrot.lane.b32.xlu2 %v1501_v23, %s3651_s1 }
 0xf7c   :  { %v3370_v24 = vpop.eup %3369 }
 0xf7d   :  { %v1011_v17 = vmul.f32 %v3370_v24, %v999_v40 }
 0xf7f   :  { %v1015_v26 = vpack.c.bf16 %v1011_v17, %v4082_v25 }
 0xf81   :  { %1048 = vrot.lane.b32.xlu0 %v1015_v26, %s3651_s1 }
 0xfd3   :  { %v1504_v27 = vpop.permute.xlu2 %1503 }
 0xfd4   :  { %3011 = vmatmul.msk.bf16.vlgmr.msra.gmra.mxu2 %vm427_vm8, %v1504_v27  ;;  %3012 = vmatmul.msk.bf16.vlgmr.msra.gmra.mxu3 %vm427_vm8, %v1504_v27 }
 0xff3   :  { %v1049_v22 = vpop.permute.xlu0 %1048 }
 0xff4   :  { %2956 = vmatmul.msk.bf16.gmra.mxu0 %vm427_vm8, %v1049_v22  ;;  %2960 = vmatmul.msk.bf16.gmra.mxu1 %vm427_vm8, %v1049_v22 }
0x1057   :  { %v1517_v49 = vpop.f32.mrf.mxu2  ;;  %v1530_v25 = vpop.f32.mrf.mxu3 }
0x1058   :  { %v1534_v35 = vadd.f32 %v1517_v49, %v1122_v31  ;;  %v1535_v37 = vadd.f32 %v1530_v25, %v1151_v32 }
0x105a   :  { %v3013_v57 = vmul.f32 -1.442695, %v1534_v35  ;;  %v3014_v47 = vmul.f32 -1.442695, %v1535_v37 }
0x105c   :  { %3371 = vpow2.f32 %v3013_v57 }
0x105d   :  { %3373 = vpow2.f32 %v3014_v47 }
0x105f   :  { %v1519_v63 = vpop.f32.mrf.mxu2  ;;  %v1532_v41 = vpop.f32.mrf.mxu3 }
0x1062   :  { %v3372_v0 = vpop.eup %3371 }
0x1063   :  { %v3374_v30 = vpop.eup %3373  ;;  %v1542_v58 = vadd.f32 1.0, %v3372_v0 }
0x1064   :  { %v1543_v3 = vadd.f32 1.0, %v3374_v30 }
0x1065   :  { %3375 = vrcp.f32 %v1542_v58  ;;  %v1555_v48 = vand.u32 2147483648, %v1542_v58  ;;  %vm1549_vm11 = vweird.f32 %v1542_v58  ;;  %v1553_v29 = vand.u32 2147483647, %v1542_v58 }
0x1066   :  { %3377 = vrcp.f32 %v1543_v3  ;;  %v1570_v53 = vand.u32 2147483648, %v1543_v3  ;;  %v1568_v56 = vand.u32 2147483647, %v1543_v3  ;;  %vm1564_vm9 = vweird.f32 %v1543_v3 }
0x1067   :  { %v1556_v13 = vor.u32 1.1754944e-38, %v1555_v48  ;;  %vm1554_vm14 = vcmp.eq.f32.partialorder %v1553_v29, 8.507059e+37 }
0x1068   :  { %v1571_v36 = vor.u32 1.1754944e-38, %v1570_v53  ;;  %vm1569_vm12 = vcmp.eq.f32.partialorder %v1568_v56, 8.507059e+37 }
0x106b   :  { %v3376_v5 = vpop.eup %3375 }
0x106c   :  { %v3378_v34 = vpop.eup %3377  ;;  %v1545_v6 = vmul.f32 %v3376_v5, %v1542_v58  ;;  %vm1550_vm7 = vweird.f32 %v3376_v5 }
0x106d   :  { %v1560_v8 = vmul.f32 %v3378_v34, %v1543_v3  ;;  %vm1565_vm6 = vweird.f32 %v3378_v34  ;;  %vm1551_vm13 = vmor %vm1549_vm11, %vm1550_vm7 }
0x106e   :  { %v1546_v62 = vsub.f32 1.0, %v1545_v6  ;;  %vm1566_vm10 = vmor %vm1564_vm9, %vm1565_vm6 }
0x106f   :  { %v1561_v45 = vsub.f32 1.0, %v1560_v8 }
0x1070   :  { %v1547_v10 = vmul.f32 %v3376_v5, %v1546_v62 }
0x1071   :  { %v1562_v59 = vmul.f32 %v3378_v34, %v1561_v45  ;;  %v4267_v18 = vpop.f32.mrf.mxu1 }
0x1072   :  { %v1548_v12 = vadd.f32 %v3376_v5, %v1547_v10 }
0x1073   :  { %v1563_v50 = vadd.f32 %v3378_v34, %v1562_v59 }
0x1074   :  { %v1552_v43 = vsel %vm1551_vm13, %v3376_v5, %v1548_v12 }
0x1075   :  { %v1567_v46 = vsel %vm1566_vm10, %v3378_v34, %v1563_v50  ;;  %v1557_v61 = vsel %vm1554_vm14, %v1556_v13, %v1552_v43 }
0x1076   :  { %v1572_v40 = vsel %vm1569_vm12, %v1571_v36, %v1567_v46  ;;  %v1576_v1 = vmul.f32 %v1557_v61, %v4233_v39  ;;  %v1123_v39 = vpop.f32.mrf.mxu0 }
0x1077   :  { %v1574_v42 = vmul.f32 2.0, %v1572_v40  ;;  %v1124_v24 = vadd.f32 %v1123_v39, %v4056_v14  ;;  %v3210_v39 = vld [vmem:[#allocation7 + $0x24] sm:$0xf0] }
0x1079   :  { %v3015_v54 = vadd.f32 -1.0, %v1574_v42  ;;  %v4271_v23 = vpop.f32.mrf.mxu1 }
0x107b   :  { %v1577_v4 = vmul.f32 %v3015_v54, %v1557_v61  ;;  %v3211_v54 = vld [vmem:[#allocation7 + $0x34] sm:$0xf]  ;;  %v3059_v61 = vld [vmem:[#allocation7 + $0x38] sm:$0xf0] }
0x107d   :  { %1579 = vrot.lane.b32.xlu2 %v1577_v4, %s3651_s1  ;;  %v3057_v4 = vld [vmem:[#allocation7 + $0x30] sm:$0xf] }
0x107e   :  { %v4265_v51 = vpop.f32.mrf.mxu0 }
0x1086   :  { %v4269_v20 = vpop.f32.mrf.mxu0 }
0x10d7   :  { %v1580_v60 = vpop.permute.xlu2 %1579 }
0x10d8   :  { %v4252_v38 = vadd.f32 %v1580_v60, %v1576_v1  ;;  %v3062_v1 = vor.u32 %v3211_v54, %v3059_v61  ;;  %v3212_v60 = vld [vmem:[#allocation7 + $0x34] sm:$0xf0] }
0x10da   :  { %3379 = vtanh.f32 %v4252_v38  ;;  %1960 = vmatpush.bf16.msra.mxu3 %v3062_v1 }
0x10e0   :  { %v3380_v7 = vpop.eup %3379 }
0x10e1   :  { %v4255_v15 = vmul.f32 %v3380_v7, %v1572_v40  ;;  %v3058_v7 = vor.u32 %v3212_v60, %v3057_v4 }
0x10e3   :  { %v1585_v52 = vpack.c.bf16 %v4255_v15, %v4255_v15  ;;  %1931 = vmatpush.bf16.msra.mxu2 %v3058_v7 }
0x10e5   :  { %1587 = vrot.lane.b32.xlu1 %v1585_v52, %s3651_s1  ;;  %v3051_v52 = vld [vmem:[#allocation7 + $0x28] sm:$0xf0] }
0x10ed   :  { %1867 = vrot.lane.b32.xlu1 %v1837_v55, %s3651_s1  ;;  %v3049_v55 = vld [vmem:[#allocation7 + $0x20] sm:$0xf] }
0x10ee   :  { %v3050_v16 = vor.u32 %v3210_v39, %v3049_v55 }
0x10f0   :  { %1932 = vmatpush.bf16.msra.mxu2 %v3050_v16 }
0x1157   :  { %v1588_v2 = vpop.permute.xlu1 %1587 }
0x1158   :  { %3016 = vmatmul.msk.bf16.vlgmr.msrb.gmra.mxu0 %vm427_vm8, %v1588_v2  ;;  %3017 = vmatmul.msk.bf16.vlgmr.msrb.gmra.mxu1 %vm427_vm8, %v1588_v2 }
0x11d5   :  { %v1601_v9 = vpop.f32.mrf.mxu0  ;;  %v1614_v17 = vpop.f32.mrf.mxu1 }
0x11d6   :  { %v1618_v26 = vadd.f32 %v1601_v9, %v1124_v24  ;;  %v1619_v27 = vadd.f32 %v1614_v17, %v1153_v19  ;;  %v3207_v24 = vld [vmem:[#allocation7 + $0x14] sm:$0xf]  ;;  %v3043_v19 = vld [vmem:[#allocation7 + $0x18] sm:$0xf0]  ;;  %v3041_v9 = vld [vmem:[#allocation7 + $0x10] sm:$0xf] }
0x11d7   :  { %v3208_v17 = vld [vmem:[#allocation7 + $0x14] sm:$0xf0] }
0x11d8   :  { %v3018_v22 = vmul.f32 -1.442695, %v1618_v26  ;;  %v3019_v33 = vmul.f32 -1.442695, %v1619_v27  ;;  %v3046_v26 = vor.u32 %v3207_v24, %v3043_v19  ;;  %v3042_v27 = vor.u32 %v3208_v17, %v3041_v9 }
0x11da   :  { %3381 = vpow2.f32 %v3018_v22  ;;  %v3205_v22 = vld [vmem:[#allocation7 + $0x4] sm:$0xf]  ;;  %1933 = vmatpush.bf16.msra.mxu2 %v3042_v27 }
0x11db   :  { %3383 = vpow2.f32 %v3019_v33  ;;  %v3035_v33 = vld [vmem:[#allocation7 + $0x8] sm:$0xf0] }
0x11dd   :  { %v1603_v28 = vpop.f32.mrf.mxu0  ;;  %v1616_v31 = vpop.f32.mrf.mxu1 }
0x11de   :  { %v3033_v28 = vld [vmem:[#allocation7] sm:$0xf]  ;;  %v3206_v31 = vld [vmem:[#allocation7 + $0x4] sm:$0xf0] }
0x11e0   :  { %v3382_v32 = vpop.eup %3381 }
0x11e1   :  { %v3384_v49 = vpop.eup %3383  ;;  %v1626_v25 = vadd.f32 1.0, %v3382_v32  ;;  %v3038_v32 = vor.u32 %v3205_v22, %v3035_v33 }
0x11e2   :  { %v1627_v35 = vadd.f32 1.0, %v3384_v49  ;;  %v3034_v49 = vor.u32 %v3206_v31, %v3033_v28 }
0x11e3   :  { %3385 = vrcp.f32 %v1626_v25  ;;  %v1639_v8 = vand.u32 2147483648, %v1626_v25  ;;  %vm1633_vm3 = vweird.f32 %v1626_v25  ;;  %v1637_v45 = vand.u32 2147483647, %v1626_v25 }
0x11e4   :  { %3387 = vrcp.f32 %v1627_v35  ;;  %v1654_v58 = vand.u32 2147483648, %v1627_v35  ;;  %v1652_v5 = vand.u32 2147483647, %v1627_v35  ;;  %vm1648_vm1 = vweird.f32 %v1627_v35  ;;  %1934 = vmatpush.bf16.msra.mxu2 %v3034_v49 }
0x11e5   :  { %v1640_v12 = vor.u32 1.1754944e-38, %v1639_v8  ;;  %vm1638_vm6 = vcmp.eq.f32.partialorder %v1637_v45, 8.507059e+37 }
0x11e6   :  { %v1655_v62 = vor.u32 1.1754944e-38, %v1654_v58  ;;  %vm1653_vm4 = vcmp.eq.f32.partialorder %v1652_v5, 8.507059e+37 }
0x11e9   :  { %v3386_v37 = vpop.eup %3385 }
0x11ea   :  { %v3388_v57 = vpop.eup %3387  ;;  %v1629_v47 = vmul.f32 %v3386_v37, %v1626_v25  ;;  %vm1634_vm0 = vweird.f32 %v3386_v37 }
0x11eb   :  { %v1644_v63 = vmul.f32 %v3388_v57, %v1627_v35  ;;  %vm1649_vm15 = vweird.f32 %v3388_v57  ;;  %vm1635_vm5 = vmor %vm1633_vm3, %vm1634_vm0  ;;  %v1868_v35 = vpop.permute.xlu1 %1867 }
0x11ec   :  { %v1630_v41 = vsub.f32 1.0, %v1629_v47  ;;  %vm1650_vm2 = vmor %vm1648_vm1, %vm1649_vm15 }
0x11ed   :  { %v1645_v0 = vsub.f32 1.0, %v1644_v63 }
0x11ee   :  { %v1631_v30 = vmul.f32 %v3386_v37, %v1630_v41 }
0x11ef   :  { %v1646_v3 = vmul.f32 %v3388_v57, %v1645_v0 }
0x11f0   :  { %v1632_v34 = vadd.f32 %v3386_v37, %v1631_v30 }
0x11f1   :  { %v1647_v6 = vadd.f32 %v3388_v57, %v1646_v3 }
0x11f2   :  { %v1636_v59 = vsel %vm1635_vm5, %v3386_v37, %v1632_v34  ;;  %v1127_v37 = vadd.f32 %v4265_v51, %v4056_v14  ;;  %v1857_v34 = vld [vmem:[%s4613_s9] sm:$0x3] }
0x11f3   :  { %v1651_v10 = vsel %vm1650_vm2, %v3388_v57, %v1647_v6  ;;  %v1641_v48 = vsel %vm1638_vm6, %v1640_v12, %v1636_v59  ;;  %v1156_v57 = vadd.f32 %v4267_v18, %v4050_v44  ;;  %v4296_v45 = vperm.slane %v1857_v34, 0 }
0x11f4   :  { %v1656_v53 = vsel %vm1653_vm4, %v1655_v62, %v1651_v10  ;;  %v1660_v29 = vmul.f32 %v1641_v48, %v4252_v38  ;;  %v3209_v38 = vld [vmem:[#allocation7 + $0x24] sm:$0xf]  ;;  %v4298_v18 = vperm.slane %v1857_v34, 1 }
0x11f5   :  { %v1658_v56 = vmul.f32 2.0, %v1656_v53  ;;  %v3054_v2 = vor.u32 %v3209_v38, %v3051_v52 }
0x11f7   :  { %v3020_v50 = vadd.f32 -1.0, %v1658_v56  ;;  %1961 = vmatpush.bf16.msra.mxu3 %v3054_v2 }
0x11f9   :  { %v1661_v36 = vmul.f32 %v3020_v50, %v1641_v48 }
0x11fb   :  { %1663 = vrot.lane.b32.xlu2 %v1661_v36, %s3651_s1  ;;  %1962 = vmatpush.bf16.msra.mxu3 %v3046_v26 }
0x11ff   :  { %1963 = vmatpush.bf16.msra.mxu3 %v3038_v32 }
0x1255   :  { %v1664_v46 = vpop.permute.xlu2 %1663 }
0x1256   :  { %v4277_v40 = vadd.f32 %v1664_v46, %v1660_v29 }
0x1258   :  { %3389 = vtanh.f32 %v4277_v40 }
0x125e   :  { %v3390_v43 = vpop.eup %3389 }
0x125f   :  { %v4280_v42 = vmul.f32 %v3390_v43, %v1656_v53 }
0x1261   :  { %v1669_v13 = vpack.c.bf16 %v4280_v42, %v4280_v42 }
0x1263   :  { %1671 = vrot.lane.b32.xlu0 %v1669_v13, %s3651_s1 }
0x12d5   :  { %v1672_v25 = vpop.permute.xlu0 %1671 }
0x12d6   :  { %3021 = vmatmul.msk.bf16.vlgmr.msrb.gmra.mxu2 %vm427_vm8, %v1672_v25  ;;  %3022 = vmatmul.msk.bf16.vlgmr.msrb.gmra.mxu3 %vm427_vm8, %v1672_v25 }
0x12e6   :  { %3063 = vmatmul.msk.bf16.vlgmr.msra.gmra.mxu2 %vm427_vm8, %v1868_v35  ;;  %3067 = vmatmul.msk.bf16.vlgmr.msra.gmra.mxu3 %vm427_vm8, %v1868_v35 }
0x1359   :  { %v1685_v47 = vpop.f32.mrf.mxu2  ;;  %v1698_v63 = vpop.f32.mrf.mxu3 }
0x135a   :  { %v1702_v41 = vadd.f32 %v1685_v47, %v1127_v37  ;;  %v1703_v0 = vadd.f32 %v1698_v63, %v1156_v57 }
0x135c   :  { %v3023_v30 = vmul.f32 -1.442695, %v1702_v41  ;;  %v3024_v58 = vmul.f32 -1.442695, %v1703_v0 }
0x135e   :  { %3391 = vpow2.f32 %v3023_v30 }
0x135f   :  { %3393 = vpow2.f32 %v3024_v58 }
0x1361   :  { %v1687_v3 = vpop.f32.mrf.mxu2  ;;  %v1700_v5 = vpop.f32.mrf.mxu3 }
0x1364   :  { %v3392_v6 = vpop.eup %3391 }
0x1365   :  { %v3394_v8 = vpop.eup %3393  ;;  %v1710_v51 = vadd.f32 1.0, %v3392_v6 }
0x1366   :  { %v1711_v62 = vadd.f32 1.0, %v3394_v8 }
0x1367   :  { %3395 = vrcp.f32 %v1710_v51  ;;  %vm1717_vm11 = vweird.f32 %v1710_v51  ;;  %v1723_v39 = vand.u32 2147483648, %v1710_v51  ;;  %v1721_v24 = vand.u32 2147483647, %v1710_v51 }
0x1368   :  { %3397 = vrcp.f32 %v1711_v62  ;;  %v1738_v61 = vand.u32 2147483648, %v1711_v62  ;;  %v1736_v1 = vand.u32 2147483647, %v1711_v62  ;;  %vm1732_vm9 = vweird.f32 %v1711_v62 }
0x1369   :  { %v1936_v10 = vpop.f32.mrf.mxu2  ;;  %v1965_v53 = vpop.f32.mrf.mxu3  ;;  %v1724_v27 = vor.u32 1.1754944e-38, %v1723_v39  ;;  %vm1722_vm15 = vcmp.eq.f32.partialorder %v1721_v24, 8.507059e+37  ;;  %v3218_v39 = vld [vmem:[#allocation9 + $0x24] sm:$0xf0] }
0x136a   :  { %v1937_v59 = vadd.f32 %v1936_v10, %v4296_v45  ;;  %v1966_v56 = vadd.f32 %v1965_v53, %v4298_v18  ;;  %v1739_v16 = vor.u32 1.1754944e-38, %v1738_v61  ;;  %vm1737_vm13 = vcmp.eq.f32.partialorder %v1736_v1, 8.507059e+37  ;;  %v3219_v1 = vld [vmem:[#allocation9 + $0x34] sm:$0xf] }
0x136c   :  { %v3071_v12 = vmul.f32 -1.442695, %v1937_v59  ;;  %v3072_v50 = vmul.f32 -1.442695, %v1966_v56 }
0x136d   :  { %v3396_v48 = vpop.eup %3395 }
0x136e   :  { %v3398_v36 = vpop.eup %3397  ;;  %v1713_v29 = vmul.f32 %v3396_v48, %v1710_v51  ;;  %3399 = vpow2.f32 %v3071_v12  ;;  %vm1718_vm10 = vweird.f32 %v3396_v48 }
0x136f   :  { %v1728_v46 = vmul.f32 %v3398_v36, %v1711_v62  ;;  %3401 = vpow2.f32 %v3072_v50  ;;  %vm1733_vm7 = vweird.f32 %v3398_v36  ;;  %vm1719_vm14 = vmor %vm1717_vm11, %vm1718_vm10 }
0x1370   :  { %v1714_v43 = vsub.f32 1.0, %v1713_v29  ;;  %vm1734_vm12 = vmor %vm1732_vm9, %vm1733_vm7 }
0x1371   :  { %v1729_v13 = vsub.f32 1.0, %v1728_v46  ;;  %v1838_v46 = vpack.c.bf16 %v4237_v21, %v4182_v11  ;;  %v3220_v21 = vld [vmem:[#allocation9 + $0x34] sm:$0xf0] }
0x1372   :  { %v1715_v54 = vmul.f32 %v3396_v48, %v1714_v43 }
0x1373   :  { %v1730_v4 = vmul.f32 %v3398_v36, %v1729_v13 }
0x1374   :  { %v3400_v60 = vpop.eup %3399  ;;  %v1716_v52 = vadd.f32 %v3396_v48, %v1715_v54 }
0x1375   :  { %v3402_v7 = vpop.eup %3401  ;;  %v1991_v38 = vadd.f32 1.0, %v3400_v60  ;;  %v1731_v55 = vadd.f32 %v3398_v36, %v1730_v4  ;;  %v3102_v60 = vld [vmem:[#allocation9 + $0x38] sm:$0xf0] }
0x1376   :  { %v1992_v2 = vadd.f32 1.0, %v3402_v7  ;;  %v1720_v17 = vsel %vm1719_vm14, %v3396_v48, %v1716_v52  ;;  %v3100_v7 = vld [vmem:[#allocation9 + $0x30] sm:$0xf]  ;;  %v4324_v11 = vor.u32 %v3219_v1, %v3102_v60  ;;  %v3094_v52 = vld [vmem:[#allocation9 + $0x28] sm:$0xf0] }
0x1377   :  { %3403 = vrcp.f32 %v1991_v38  ;;  %v1735_v19 = vsel %vm1734_vm12, %v3398_v36, %v1731_v55  ;;  %v1725_v33 = vsel %vm1722_vm15, %v1724_v27, %v1720_v17  ;;  %v2004_v58 = vand.u32 2147483648, %v1991_v38  ;;  %v3084_v17 = vld [vmem:[#allocation9 + $0x10] sm:$0xf]  ;;  %v3216_v27 = vld [vmem:[#allocation9 + $0x14] sm:$0xf0] }
0x1378   :  { %3405 = vrcp.f32 %v1992_v2  ;;  %v1740_v9 = vsel %vm1737_vm13, %v1739_v16, %v1735_v19  ;;  %v2019_v47 = vand.u32 2147483648, %v1992_v2  ;;  %v2017_v41 = vand.u32 2147483647, %v1992_v2  ;;  %2098 = vmatpush.bf16.msrb.mxu1 %v4324_v11  ;;  %2434 = vmatpush.bf16.msrb.mxu3 %v4324_v11  ;;  %v3215_v19 = vld [vmem:[#allocation9 + $0x14] sm:$0xf] }
0x1379   :  { %v1742_v26 = vmul.f32 2.0, %v1740_v9  ;;  %vm2013_vm2 = vweird.f32 %v1992_v2  ;;  %vm1998_vm4 = vweird.f32 %v1991_v38  ;;  %v2002_v5 = vand.u32 2147483647, %v1991_v38 }
0x137a   :  { %v2020_v3 = vor.u32 1.1754944e-38, %v2019_v47  ;;  %vm2018_vm5 = vcmp.eq.f32.partialorder %v2017_v41, 8.507059e+37  ;;  %v2005_v62 = vor.u32 1.1754944e-38, %v2004_v58  ;;  %v1744_v56 = vmul.f32 %v1725_v33, %v4277_v40  ;;  %v1967_v58 = vpop.f32.mrf.mxu3 }
0x137b   :  { %v3025_v22 = vadd.f32 -1.0, %v1742_v26  ;;  %vm2003_vm7 = vcmp.eq.f32.partialorder %v2002_v5, 8.507059e+37  ;;  %v4326_v55 = vor.u32 %v3220_v21, %v3100_v7  ;;  %v1968_v5 = vadd.f32 %v1967_v58, %v4298_v18 }
0x137d   :  { %v3404_v28 = vpop.eup %3403  ;;  %v1745_v31 = vmul.f32 %v3025_v22, %v1725_v33  ;;  %2085 = vmatpush.bf16.msrb.mxu0 %v4326_v55  ;;  %2421 = vmatpush.bf16.msrb.mxu2 %v4326_v55  ;;  %v3213_v22 = vld [vmem:[#allocation9 + $0x4] sm:$0xf]  ;;  %v3078_v33 = vld [vmem:[#allocation9 + $0x8] sm:$0xf0] }
0x137e   :  { %v3406_v32 = vpop.eup %3405  ;;  %v1994_v49 = vmul.f32 %v3404_v28, %v1991_v38  ;;  %vm1999_vm1 = vweird.f32 %v3404_v28  ;;  %v3217_v38 = vld [vmem:[#allocation9 + $0x24] sm:$0xf] }
0x137f   :  { %v2009_v25 = vmul.f32 %v3406_v32, %v1992_v2  ;;  %1747 = vrot.lane.b32.xlu2 %v1745_v31, %s3651_s1  ;;  %vm2014_vm0 = vweird.f32 %v3406_v32  ;;  %vm2000_vm6 = vmor %vm1998_vm4, %vm1999_vm1  ;;  %v3092_v2 = vld [vmem:[#allocation9 + $0x20] sm:$0xf]  ;;  %v4329_v16 = vor.u32 %v3217_v38, %v3094_v52 }
0x1380   :  { %v1995_v35 = vsub.f32 1.0, %v1994_v49  ;;  %vm2015_vm3 = vmor %vm2013_vm2, %vm2014_vm0  ;;  %v4333_v24 = vor.u32 %v3218_v39, %v3092_v2  ;;  %v3076_v31 = vld [vmem:[#allocation9] sm:$0xf]  ;;  %v4345_v49 = vor.u32 %v3213_v22, %v3078_v33 }
0x1381   :  { %v2010_v37 = vsub.f32 1.0, %v2009_v25  ;;  %2099 = vmatpush.bf16.msrb.mxu1 %v4329_v16  ;;  %2435 = vmatpush.bf16.msrb.mxu3 %v4329_v16 }
0x1382   :  { %v1996_v57 = vmul.f32 %v3404_v28, %v1995_v35  ;;  %2086 = vmatpush.bf16.msrb.mxu0 %v4333_v24  ;;  %2422 = vmatpush.bf16.msrb.mxu2 %v4333_v24 }
0x1383   :  { %v2011_v63 = vmul.f32 %v3406_v32, %v2010_v37 }
0x1384   :  { %v1997_v0 = vadd.f32 %v3404_v28, %v1996_v57 }
0x1385   :  { %v2012_v30 = vadd.f32 %v3406_v32, %v2011_v63 }
0x1386   :  { %v2001_v8 = vsel %vm2000_vm6, %v3404_v28, %v1997_v0  ;;  %v4342_v28 = vor.u32 %v3216_v27, %v3084_v17 }
0x1387   :  { %v2016_v34 = vsel %vm2015_vm3, %v3406_v32, %v2012_v30  ;;  %v2006_v53 = vsel %vm2003_vm7, %v2005_v62, %v2001_v8  ;;  %v3214_v32 = vld [vmem:[#allocation9 + $0x4] sm:$0xf0]  ;;  %v1938_v30 = vpop.f32.mrf.mxu2 }
0x1388   :  { %v2021_v6 = vsel %vm2018_vm5, %v2020_v3, %v2016_v34  ;;  %v2025_v43 = vmul.f32 0.0, %v2006_v53  ;;  %2087 = vmatpush.bf16.msrb.mxu0 %v4342_v28  ;;  %v4349_v25 = vor.u32 %v3214_v32, %v3076_v31  ;;  %2423 = vmatpush.bf16.msrb.mxu2 %v4342_v28  ;;  %v1939_v3 = vadd.f32 %v1938_v30, %v4296_v45 }
0x1389   :  { %v2023_v51 = vmul.f32 2.0, %v2021_v6 }
0x138b   :  { %v3073_v10 = vadd.f32 -1.0, %v2023_v51 }
0x138c   :  { %2088 = vmatpush.bf16.msrb.mxu0 %v4349_v25  ;;  %2424 = vmatpush.bf16.msrb.mxu2 %v4349_v25 }
0x138d   :  { %v2026_v59 = vmul.f32 %v3073_v10, %v2006_v53 }
0x138f   :  { %2028 = vrot.lane.b32.xlu0 %v2026_v59, %s3651_s1 }
0x1390   :  { %2589 = vmatpush.bf16.msra.mxu2 %v4326_v55 }
0x1394   :  { %2590 = vmatpush.bf16.msra.mxu2 %v4333_v24 }
0x1398   :  { %2591 = vmatpush.bf16.msra.mxu2 %v4342_v28 }
0x139c   :  { %2592 = vmatpush.bf16.msra.mxu2 %v4349_v25 }
0x13d9   :  { %v1748_v12 = vpop.permute.xlu2 %1747 }
0x13da   :  { %v4305_v50 = vadd.f32 %v1748_v12, %v1744_v56 }
0x13dc   :  { %3407 = vtanh.f32 %v4305_v50 }
0x13e2   :  { %v3408_v48 = vpop.eup %3407 }
0x13e3   :  { %v4308_v36 = vmul.f32 %v3408_v48, %v1740_v9  ;;  %v3086_v9 = vld [vmem:[#allocation9 + $0x18] sm:$0xf0] }
0x13e4   :  { %v4340_v26 = vor.u32 %v3215_v19, %v3086_v9 }
0x13e5   :  { %v1753_v29 = vpack.c.bf16 %v4308_v36, %v4308_v36 }
0x13e6   :  { %2100 = vmatpush.bf16.msrb.mxu1 %v4340_v26  ;;  %2436 = vmatpush.bf16.msrb.mxu3 %v4340_v26 }
0x13e7   :  { %1755 = vrot.lane.b32.xlu1 %v1753_v29, %s3651_s1 }
0x13ea   :  { %2101 = vmatpush.bf16.msrb.mxu1 %v4345_v49  ;;  %2437 = vmatpush.bf16.msrb.mxu3 %v4345_v49 }
0x13ee   :  { %2602 = vmatpush.bf16.msra.mxu3 %v4324_v11 }
0x13ef   :  { %1869 = vrot.lane.b32.xlu1 %v1838_v46, %s3651_s1 }
0x13f2   :  { %2603 = vmatpush.bf16.msra.mxu3 %v4329_v16 }
0x13f6   :  { %2604 = vmatpush.bf16.msra.mxu3 %v4340_v26 }
0x13fa   :  { %2605 = vmatpush.bf16.msra.mxu3 %v4345_v49 }
0x1401   :  { %v2029_v40 = vpop.permute.xlu0 %2028 }
0x1402   :  { %v4316_v13 = vadd.f32 %v2029_v40, %v2025_v43 }
0x1404   :  { %3409 = vtanh.f32 %v4316_v13 }
0x140a   :  { %v3410_v54 = vpop.eup %3409 }
0x140b   :  { %v4319_v61 = vmul.f32 %v3410_v54, %v2021_v6 }
0x140d   :  { %v2034_v4 = vpack.c.bf16 %v4319_v61, %v4319_v61 }
0x140f   :  { %2036 = vrot.lane.b32.xlu2 %v2034_v4, %s3651_s1 }
0x1459   :  { %v1756_v35 = vpop.permute.xlu1 %1755 }
0x145a   :  { %3026 = vmatmul.msk.bf16.vlgmr.msra.gmra.mxu0 %vm427_vm8, %v1756_v35  ;;  %3027 = vmatmul.msk.bf16.vlgmr.msra.gmra.mxu1 %vm427_vm8, %v1756_v35 }
0x145b   :  { %2182 = vmatpush.bf16.msra.mxu1 %v4324_v11  ;;  %2169 = vmatpush.bf16.msra.mxu0 %v4326_v55 }
0x145f   :  { %2183 = vmatpush.bf16.msra.mxu1 %v4329_v16  ;;  %2170 = vmatpush.bf16.msra.mxu0 %v4333_v24 }
0x1461   :  { %v1870_v37 = vpop.permute.xlu1 %1869 }
0x1462   :  { %3064 = vmatmul.msk.bf16.gmra.mxu2 %vm427_vm8, %v1870_v37  ;;  %3068 = vmatmul.msk.bf16.gmra.mxu3 %vm427_vm8, %v1870_v37 }
0x1463   :  { %2184 = vmatpush.bf16.msra.mxu1 %v4340_v26  ;;  %2171 = vmatpush.bf16.msra.mxu0 %v4342_v28 }
0x1467   :  { %2185 = vmatpush.bf16.msra.mxu1 %v4345_v49  ;;  %2172 = vmatpush.bf16.msra.mxu0 %v4349_v25 }
0x1469   :  { %v2037_v57 = vpop.permute.xlu2 %2036 }
0x146a   :  { %3106 = vmatmul.msk.bf16.vlgmr.msrb.gmra.mxu0 %vm427_vm8, %v2037_v57  ;;  %3107 = vmatmul.msk.bf16.vlgmr.msrb.gmra.mxu1 %vm427_vm8, %v2037_v57 }
0x146b   :  { %2266 = vmatpush.bf16.msrb.mxu1 %v4324_v11  ;;  %2253 = vmatpush.bf16.msrb.mxu0 %v4326_v55 }
0x146f   :  { %2267 = vmatpush.bf16.msrb.mxu1 %v4329_v16  ;;  %2254 = vmatpush.bf16.msrb.mxu0 %v4333_v24 }
0x1473   :  { %2268 = vmatpush.bf16.msrb.mxu1 %v4340_v26  ;;  %2255 = vmatpush.bf16.msrb.mxu0 %v4342_v28 }
0x1477   :  { %2269 = vmatpush.bf16.msrb.mxu1 %v4345_v49  ;;  %2256 = vmatpush.bf16.msrb.mxu0 %v4349_v25 }
0x14d7   :  { %v4386_v47 = vpop.f32.mrf.mxu0  ;;  %v4388_v63 = vpop.f32.mrf.mxu1 }
0x14df   :  { %v1771_v41 = vpop.f32.mrf.mxu0  ;;  %v1784_v0 = vpop.f32.mrf.mxu1 }
0x14e7   :  { %v2090_v34 = vpop.f32.mrf.mxu0  ;;  %v2103_v6 = vpop.f32.mrf.mxu1 }
0x14e8   :  { %v2107_v8 = vadd.f32 %v2090_v34, %v1939_v3  ;;  %v2108_v51 = vadd.f32 %v2103_v6, %v1968_v5  ;;  %v1970_v34 = vpop.f32.mrf.mxu3 }
0x14ea   :  { %v3108_v62 = vmul.f32 -1.442695, %v2107_v8  ;;  %v3109_v10 = vmul.f32 -1.442695, %v2108_v51  ;;  %v1971_v8 = vadd.f32 %v1970_v34, %v4298_v18 }
0x14ec   :  { %3411 = vpow2.f32 %v3108_v62 }
0x14ed   :  { %3413 = vpow2.f32 %v3109_v10 }
0x14ef   :  { %v2092_v53 = vpop.f32.mrf.mxu0  ;;  %v2105_v59 = vpop.f32.mrf.mxu1 }
0x14f2   :  { %v3412_v56 = vpop.eup %3411 }
0x14f3   :  { %v3414_v12 = vpop.eup %3413  ;;  %v2115_v48 = vadd.f32 1.0, %v3412_v56 }
0x14f4   :  { %v2116_v29 = vadd.f32 1.0, %v3414_v12 }
0x14f5   :  { %3415 = vrcp.f32 %v2115_v48  ;;  %v2128_v39 = vand.u32 2147483648, %v2115_v48  ;;  %vm2122_vm13 = vweird.f32 %v2115_v48  ;;  %v2126_v9 = vand.u32 2147483647, %v2115_v48 }
0x14f6   :  { %3417 = vrcp.f32 %v2116_v29  ;;  %v2143_v7 = vand.u32 2147483648, %v2116_v29  ;;  %v2141_v38 = vand.u32 2147483647, %v2116_v29  ;;  %vm2137_vm11 = vweird.f32 %v2116_v29 }
0x14f7   :  { %v2129_v31 = vor.u32 1.1754944e-38, %v2128_v39  ;;  %vm2127_vm0 = vcmp.eq.f32.partialorder %v2126_v9, 8.507059e+37 }
0x14f8   :  { %v2144_v19 = vor.u32 1.1754944e-38, %v2143_v7  ;;  %vm2142_vm14 = vcmp.eq.f32.partialorder %v2141_v38, 8.507059e+37 }
0x14fb   :  { %v3416_v46 = vpop.eup %3415 }
0x14fc   :  { %v3418_v43 = vpop.eup %3417  ;;  %v2118_v40 = vmul.f32 %v3416_v46, %v2115_v48  ;;  %vm2123_vm10 = vweird.f32 %v3416_v46 }
0x14fd   :  { %v2133_v54 = vmul.f32 %v3418_v43, %v2116_v29  ;;  %vm2138_vm9 = vweird.f32 %v3418_v43  ;;  %vm2124_vm15 = vmor %vm2122_vm13, %vm2123_vm10 }
0x14fe   :  { %v2119_v4 = vsub.f32 1.0, %v2118_v40  ;;  %vm2139_vm12 = vmor %vm2137_vm11, %vm2138_vm9 }
0x14ff   :  { %v2134_v1 = vsub.f32 1.0, %v2133_v54 }
0x1500   :  { %v2120_v60 = vmul.f32 %v3416_v46, %v2119_v4 }
0x1501   :  { %v2135_v21 = vmul.f32 %v3418_v43, %v2134_v1 }
0x1502   :  { %v2121_v52 = vadd.f32 %v3416_v46, %v2120_v60 }
0x1503   :  { %v2136_v2 = vadd.f32 %v3418_v43, %v2135_v21 }
0x1504   :  { %v2125_v22 = vsel %vm2124_vm15, %v3416_v46, %v2121_v52 }
0x1505   :  { %v2140_v17 = vsel %vm2139_vm12, %v3418_v43, %v2136_v2  ;;  %v2130_v35 = vsel %vm2127_vm0, %v2129_v31, %v2125_v22 }
0x1506   :  { %v2145_v27 = vsel %vm2142_vm14, %v2144_v19, %v2140_v17  ;;  %v2149_v57 = vmul.f32 %v2130_v35, %v4316_v13  ;;  %v1941_v13 = vpop.f32.mrf.mxu2 }
0x1507   :  { %v2147_v33 = vmul.f32 2.0, %v2145_v27  ;;  %v1942_v6 = vadd.f32 %v1941_v13, %v4296_v45 }
0x1509   :  { %v3110_v32 = vadd.f32 -1.0, %v2147_v33 }
0x150b   :  { %v2150_v37 = vmul.f32 %v3110_v32, %v2130_v35 }
0x150d   :  { %2152 = vrot.lane.b32.xlu0 %v2150_v37, %s3651_s1 }
0x157f   :  { %v2153_v41 = vpop.permute.xlu0 %2152 }
0x1580   :  { %v4394_v0 = vadd.f32 %v2153_v41, %v2149_v57 }
0x1582   :  { %3419 = vtanh.f32 %v4394_v0 }
0x1588   :  { %v3420_v30 = vpop.eup %3419 }
0x1589   :  { %v4397_v58 = vmul.f32 %v3420_v30, %v2145_v27 }
0x158b   :  { %v2158_v3 = vpack.c.bf16 %v4397_v58, %v4397_v58 }
0x158d   :  { %2160 = vrot.lane.b32.xlu2 %v2158_v3, %s3651_s1  ;;  %v1839_v3 = vpack.c.bf16 %v4280_v42, %v4255_v15 }
0x15e7   :  { %v2161_v5 = vpop.permute.xlu2 %2160 }
0x15e8   :  { %3111 = vmatmul.msk.bf16.vlgmr.msra.gmra.mxu0 %vm427_vm8, %v2161_v5  ;;  %3112 = vmatmul.msk.bf16.vlgmr.msra.gmra.mxu1 %vm427_vm8, %v2161_v5 }
0x15e9   :  { %2350 = vmatpush.bf16.msra.mxu1 %v4324_v11  ;;  %2337 = vmatpush.bf16.msra.mxu0 %v4326_v55 }
0x15ed   :  { %2351 = vmatpush.bf16.msra.mxu1 %v4329_v16  ;;  %2338 = vmatpush.bf16.msra.mxu0 %v4333_v24 }
0x15f1   :  { %2352 = vmatpush.bf16.msra.mxu1 %v4340_v26  ;;  %2339 = vmatpush.bf16.msra.mxu0 %v4342_v28 }
0x15f5   :  { %2353 = vmatpush.bf16.msra.mxu1 %v4345_v49  ;;  %2340 = vmatpush.bf16.msra.mxu0 %v4349_v25 }
0x1665   :  { %v2174_v51 = vpop.f32.mrf.mxu0  ;;  %v2187_v62 = vpop.f32.mrf.mxu1 }
0x1666   :  { %v2191_v10 = vadd.f32 %v2174_v51, %v1942_v6  ;;  %v2192_v53 = vadd.f32 %v2187_v62, %v1971_v8 }
0x1668   :  { %v3113_v59 = vmul.f32 -1.442695, %v2191_v10  ;;  %v3114_v56 = vmul.f32 -1.442695, %v2192_v53  ;;  %v1972_v10 = vpop.f32.mrf.mxu3 }
0x166a   :  { %3421 = vpow2.f32 %v3113_v59 }
0x166b   :  { %3423 = vpow2.f32 %v3114_v56 }
0x166d   :  { %v2176_v12 = vpop.f32.mrf.mxu0  ;;  %v2189_v48 = vpop.f32.mrf.mxu1 }
0x1670   :  { %v3422_v29 = vpop.eup %3421 }
0x1671   :  { %v3424_v46 = vpop.eup %3423  ;;  %v2199_v43 = vadd.f32 1.0, %v3422_v29 }
0x1672   :  { %v2200_v40 = vadd.f32 1.0, %v3424_v46 }
0x1673   :  { %3425 = vrcp.f32 %v2199_v43  ;;  %v2212_v17 = vand.u32 2147483648, %v2199_v43  ;;  %vm2206_vm5 = vweird.f32 %v2199_v43  ;;  %v2210_v22 = vand.u32 2147483647, %v2199_v43 }
0x1674   :  { %3427 = vrcp.f32 %v2200_v40  ;;  %v2227_v52 = vand.u32 2147483648, %v2200_v40  ;;  %v2225_v39 = vand.u32 2147483647, %v2200_v40  ;;  %vm2221_vm3 = vweird.f32 %v2200_v40 }
0x1675   :  { %v2213_v37 = vor.u32 1.1754944e-38, %v2212_v17  ;;  %vm2211_vm9 = vcmp.eq.f32.partialorder %v2210_v22, 8.507059e+37 }
0x1676   :  { %v2228_v27 = vor.u32 1.1754944e-38, %v2227_v52  ;;  %vm2226_vm6 = vcmp.eq.f32.partialorder %v2225_v39, 8.507059e+37 }
0x1679   :  { %v3426_v54 = vpop.eup %3425 }
0x167a   :  { %v3428_v4 = vpop.eup %3427  ;;  %v2202_v1 = vmul.f32 %v3426_v54, %v2199_v43  ;;  %vm2207_vm2 = vweird.f32 %v3426_v54 }
0x167b   :  { %v2217_v60 = vmul.f32 %v3428_v4, %v2200_v40  ;;  %vm2222_vm1 = vweird.f32 %v3428_v4  ;;  %vm2208_vm7 = vmor %vm2206_vm5, %vm2207_vm2 }
0x167c   :  { %v2203_v7 = vsub.f32 1.0, %v2202_v1  ;;  %vm2223_vm4 = vmor %vm2221_vm3, %vm2222_vm1 }
0x167d   :  { %v2218_v21 = vsub.f32 1.0, %v2217_v60 }
0x167e   :  { %v2204_v38 = vmul.f32 %v3426_v54, %v2203_v7 }
0x167f   :  { %v2219_v2 = vmul.f32 %v3428_v4, %v2218_v21 }
0x1680   :  { %v2205_v19 = vadd.f32 %v3426_v54, %v2204_v38 }
0x1681   :  { %v2220_v9 = vadd.f32 %v3428_v4, %v2219_v2 }
0x1682   :  { %v2209_v32 = vsel %vm2208_vm7, %v3426_v54, %v2205_v19 }
0x1683   :  { %v2224_v33 = vsel %vm2223_vm4, %v3428_v4, %v2220_v9  ;;  %v2214_v41 = vsel %vm2211_vm9, %v2213_v37, %v2209_v32 }
0x1684   :  { %v2229_v31 = vsel %vm2226_vm6, %v2228_v27, %v2224_v33  ;;  %v2233_v5 = vmul.f32 %v2214_v41, %v4394_v0  ;;  %v1158_v0 = vadd.f32 %v4271_v23, %v4050_v44 }
0x1685   :  { %v2231_v35 = vmul.f32 2.0, %v2229_v31 }
0x1686   :  { %v1787_v62 = vadd.f32 %v4388_v63, %v1158_v0 }
0x1687   :  { %v3115_v57 = vadd.f32 -1.0, %v2231_v35 }
0x1689   :  { %v2234_v30 = vmul.f32 %v3115_v57, %v2214_v41 }
0x168b   :  { %2236 = vrot.lane.b32.xlu0 %v2234_v30, %s3651_s1 }
0x1693   :  { %1871 = vrot.lane.b32.xlu0 %v1839_v3, %s3651_s1 }
0x16fd   :  { %v2237_v13 = vpop.permute.xlu0 %2236 }
0x16fe   :  { %v4419_v34 = vadd.f32 %v2237_v13, %v2233_v5 }
0x1700   :  { %3429 = vtanh.f32 %v4419_v34 }
0x1705   :  { %v1872_v6 = vpop.permute.xlu0 %1871 }
0x1706   :  { %v3430_v8 = vpop.eup %3429  ;;  %3065 = vmatmul.msk.bf16.gmra.mxu2 %vm427_vm8, %v1872_v6  ;;  %3069 = vmatmul.msk.bf16.gmra.mxu3 %vm427_vm8, %v1872_v6 }
0x1707   :  { %v4424_v51 = vmul.f32 %v3430_v8, %v2229_v31 }
0x1709   :  { %v2242_v15 = vpack.c.bf16 %v4424_v51, %v4424_v51 }
0x170b   :  { %2244 = vrot.lane.b32.xlu1 %v2242_v15, %s3651_s1 }
0x177d   :  { %v2245_v42 = vpop.permute.xlu1 %2244 }
0x177e   :  { %3116 = vmatmul.msk.bf16.vlgmr.msrb.gmra.mxu0 %vm427_vm8, %v2245_v42  ;;  %3117 = vmatmul.msk.bf16.vlgmr.msrb.gmra.mxu1 %vm427_vm8, %v2245_v42 }
0x177f   :  { %2518 = vmatpush.bf16.msrb.mxu1 %v4324_v11  ;;  %2505 = vmatpush.bf16.msrb.mxu0 %v4326_v55  ;;  %v3029_v11 = vmul.f32 -1.442695, %v1787_v62  ;;  %v1129_v55 = vadd.f32 %v4269_v20, %v4056_v14 }
0x1781   :  { %3431 = vpow2.f32 %v3029_v11 }
0x1783   :  { %2519 = vmatpush.bf16.msrb.mxu1 %v4329_v16  ;;  %2506 = vmatpush.bf16.msrb.mxu0 %v4333_v24  ;;  %v1786_v16 = vadd.f32 %v4386_v47, %v1129_v55 }
0x1785   :  { %v3028_v24 = vmul.f32 -1.442695, %v1786_v16 }
0x1787   :  { %2520 = vmatpush.bf16.msrb.mxu1 %v4340_v26  ;;  %2507 = vmatpush.bf16.msrb.mxu0 %v4342_v28  ;;  %v1943_v26 = vpop.f32.mrf.mxu2  ;;  %v3432_v28 = vpop.eup %3431  ;;  %3433 = vpow2.f32 %v3028_v24 }
0x1788   :  { %v4447_v53 = vadd.f32 1.0, %v3432_v28 }
0x178a   :  { %3435 = vrcp.f32 %v4447_v53  ;;  %vm1816_vm12 = vweird.f32 %v4447_v53  ;;  %v1820_v35 = vand.u32 2147483647, %v4447_v53  ;;  %v1822_v37 = vand.u32 2147483648, %v4447_v53 }
0x178b   :  { %2521 = vmatpush.bf16.msrb.mxu1 %v4345_v49  ;;  %2508 = vmatpush.bf16.msrb.mxu0 %v4349_v25  ;;  %v1944_v49 = vadd.f32 %v1943_v26, %v4296_v45  ;;  %v1973_v25 = vadd.f32 %v1972_v10, %v4298_v18 }
0x178c   :  { %v1823_v42 = vor.u32 1.1754944e-38, %v1822_v37  ;;  %vm1821_vm4 = vcmp.eq.f32.partialorder %v1820_v35, 8.507059e+37 }
0x178d   :  { %v3434_v20 = vpop.eup %3433 }
0x178e   :  { %v4450_v48 = vadd.f32 1.0, %v3434_v20 }
0x1790   :  { %v3436_v29 = vpop.eup %3435  ;;  %vm1801_vm7 = vweird.f32 %v4450_v48 }
0x1791   :  { %v1812_v54 = vmul.f32 %v3436_v29, %v4447_v53  ;;  %vm1817_vm10 = vweird.f32 %v3436_v29  ;;  %v1805_v53 = vand.u32 2147483647, %v4450_v48 }
0x1792   :  { %vm4458_vm15 = vmor %vm1816_vm12, %vm1817_vm10 }
0x1793   :  { %v1813_v1 = vsub.f32 1.0, %v1812_v54  ;;  %vm1806_vm10 = vcmp.eq.f32.partialorder %v1805_v53, 8.507059e+37 }
0x1795   :  { %v1814_v52 = vmul.f32 %v3436_v29, %v1813_v1 }
0x1797   :  { %v1815_v22 = vadd.f32 %v3436_v29, %v1814_v52 }
0x1799   :  { %v1819_v13 = vsel %vm4458_vm15, %v3436_v29, %v1815_v22 }
0x179a   :  { %v1824_v16 = vsel %vm1821_vm4, %v1823_v42, %v1819_v13 }
0x17fb   :  { %v2258_v44 = vpop.f32.mrf.mxu0  ;;  %v2271_v23 = vpop.f32.mrf.mxu1 }
0x17fc   :  { %v2275_v63 = vadd.f32 %v2258_v44, %v1944_v49  ;;  %v2276_v59 = vadd.f32 %v2271_v23, %v1973_v25  ;;  %v1826_v49 = vmul.f32 2.0, %v1824_v16  ;;  %v1807_v25 = vand.u32 2147483648, %v4450_v48 }
0x17fe   :  { %v3118_v56 = vmul.f32 -1.442695, %v2275_v63  ;;  %v3119_v14 = vmul.f32 -1.442695, %v2276_v59  ;;  %v3030_v23 = vadd.f32 -1.0, %v1826_v49  ;;  %v1808_v63 = vor.u32 1.1754944e-38, %v1807_v25 }
0x1800   :  { %3437 = vpow2.f32 %v3118_v56 }
0x1801   :  { %3439 = vpow2.f32 %v3119_v14 }
0x1802   :  { %3441 = vrcp.f32 %v4450_v48 }
0x1803   :  { %v2260_v47 = vpop.f32.mrf.mxu0  ;;  %v2273_v12 = vpop.f32.mrf.mxu1 }
0x1806   :  { %v3438_v46 = vpop.eup %3437 }
0x1807   :  { %v3440_v43 = vpop.eup %3439  ;;  %v2283_v40 = vadd.f32 1.0, %v3438_v46 }
0x1808   :  { %v2284_v4 = vadd.f32 1.0, %v3440_v43  ;;  %v3442_v60 = vpop.eup %3441 }
0x1809   :  { %3443 = vrcp.f32 %v2283_v40  ;;  %v1797_v39 = vmul.f32 %v3442_v60, %v4450_v48  ;;  %v2296_v3 = vand.u32 2147483648, %v2283_v40  ;;  %vm2290_vm1 = vweird.f32 %v2283_v40 }
0x180a   :  { %3445 = vrcp.f32 %v2284_v4  ;;  %v2311_v27 = vand.u32 2147483648, %v2284_v4  ;;  %v2309_v31 = vand.u32 2147483647, %v2284_v4  ;;  %vm2305_vm14 = vweird.f32 %v2284_v4 }
0x180b   :  { %v1798_v32 = vsub.f32 1.0, %v1797_v39  ;;  %v2294_v6 = vand.u32 2147483647, %v2283_v40  ;;  %v2297_v55 = vor.u32 1.1754944e-38, %v2296_v3  ;;  %vm1802_vm6 = vweird.f32 %v3442_v60 }
0x180c   :  { %v2312_v5 = vor.u32 1.1754944e-38, %v2311_v27  ;;  %vm2310_vm2 = vcmp.eq.f32.partialorder %v2309_v31, 8.507059e+37  ;;  %vm1803_vm9 = vmor %vm1801_vm7, %vm1802_vm6 }
0x180d   :  { %v1799_v11 = vmul.f32 %v3442_v60, %v1798_v32  ;;  %vm2295_vm5 = vcmp.eq.f32.partialorder %v2294_v6, 8.507059e+37 }
0x180f   :  { %v3444_v7 = vpop.eup %3443  ;;  %v1800_v28 = vadd.f32 %v3442_v60, %v1799_v11 }
0x1810   :  { %v3446_v21 = vpop.eup %3445  ;;  %v2286_v38 = vmul.f32 %v3444_v7, %v2283_v40  ;;  %vm2291_vm13 = vweird.f32 %v3444_v7 }
0x1811   :  { %v2301_v2 = vmul.f32 %v3446_v21, %v2284_v4  ;;  %vm2306_vm11 = vweird.f32 %v3446_v21  ;;  %vm2292_vm3 = vmor %vm2290_vm1, %vm2291_vm13  ;;  %v1804_v44 = vsel %vm1803_vm9, %v3442_v60, %v1800_v28  ;;  %v1946_v60 = vpop.f32.mrf.mxu2 }
0x1812   :  { %v2287_v19 = vsub.f32 1.0, %v2286_v38  ;;  %vm2307_vm0 = vmor %vm2305_vm14, %vm2306_vm11  ;;  %v1809_v59 = vsel %vm1806_vm10, %v1808_v63, %v1804_v44 }
0x1813   :  { %v2302_v9 = vsub.f32 1.0, %v2301_v2  ;;  %v1829_v56 = vmul.f32 %v3030_v23, %v1809_v59  ;;  %v1828_v12 = vmul.f32 %v1809_v59, %v4305_v50 }
0x1814   :  { %v2288_v17 = vmul.f32 %v3444_v7, %v2287_v19 }
0x1815   :  { %v2303_v33 = vmul.f32 %v3446_v21, %v2302_v9 }
0x1816   :  { %v2289_v57 = vadd.f32 %v3444_v7, %v2288_v17 }
0x1817   :  { %v2304_v41 = vadd.f32 %v3446_v21, %v2303_v33 }
0x1818   :  { %v2293_v0 = vsel %vm2292_vm3, %v3444_v7, %v2289_v57  ;;  %v1975_v7 = vpop.f32.mrf.mxu3 }
0x1819   :  { %v2308_v8 = vsel %vm2307_vm0, %v3446_v21, %v2304_v41  ;;  %v2298_v26 = vsel %vm2295_vm5, %v2297_v55, %v2293_v0  ;;  %v1947_v21 = vadd.f32 %v1946_v60, %v4296_v45  ;;  %v1976_v38 = vadd.f32 %v1975_v7, %v4298_v18 }
0x181a   :  { %v2313_v15 = vsel %vm2310_vm2, %v2312_v5, %v2308_v8  ;;  %v2317_v14 = vmul.f32 %v2298_v26, %v4419_v34 }
0x181b   :  { %v2315_v62 = vmul.f32 2.0, %v2313_v15 }
0x181d   :  { %v3120_v24 = vadd.f32 -1.0, %v2315_v62 }
0x181f   :  { %v2318_v10 = vmul.f32 %v3120_v24, %v2298_v26 }
0x1821   :  { %2320 = vrot.lane.b32.xlu2 %v2318_v10, %s3651_s1 }
0x1829   :  { %1831 = vrot.lane.b32.xlu2 %v1829_v56, %s3651_s1 }
0x187b   :  { %v2321_v20 = vpop.permute.xlu2 %2320 }
0x187c   :  { %v4470_v47 = vadd.f32 %v2321_v20, %v2317_v14  ;;  %v1948_v20 = vpop.f32.mrf.mxu2 }
0x187e   :  { %3447 = vtanh.f32 %v4470_v47 }
0x1883   :  { %v1832_v29 = vpop.permute.xlu2 %1831 }
0x1884   :  { %v3448_v48 = vpop.eup %3447  ;;  %v1834_v46 = vadd.f32 %v1832_v29, %v1828_v12 }
0x1885   :  { %v4474_v43 = vmul.f32 %v3448_v48, %v2313_v15 }
0x1886   :  { %3449 = vtanh.f32 %v1834_v46 }
0x1887   :  { %v2326_v40 = vpack.c.bf16 %v4474_v43, %v4474_v43 }
0x1889   :  { %2328 = vrot.lane.b32.xlu1 %v2326_v40, %s3651_s1  ;;  %v1949_v40 = vadd.f32 %v1948_v20, %v4296_v45 }
0x188c   :  { %v3450_v54 = vpop.eup %3449 }
0x188d   :  { %v1836_v34 = vmul.f32 %v3450_v54, %v1824_v16 }
0x188f   :  { %v1840_v4 = vpack.c.bf16 %v1836_v34, %v4308_v36 }
0x1891   :  { %1873 = vrot.lane.b32.xlu1 %v1840_v4, %s3651_s1 }
0x18fb   :  { %v2329_v1 = vpop.permute.xlu1 %2328 }
0x18fc   :  { %3121 = vmatmul.msk.bf16.vlgmr.msra.gmra.mxu0 %vm427_vm8, %v2329_v1  ;;  %3122 = vmatmul.msk.bf16.vlgmr.msra.gmra.mxu1 %vm427_vm8, %v2329_v1 }
0x1903   :  { %v1874_v50 = vpop.permute.xlu1 %1873 }
0x1904   :  { %3066 = vmatmul.msk.bf16.gmra.mxu2 %vm427_vm8, %v1874_v50  ;;  %3070 = vmatmul.msk.bf16.gmra.mxu3 %vm427_vm8, %v1874_v50 }
0x1979   :  { %v2342_v52 = vpop.f32.mrf.mxu0  ;;  %v2355_v36 = vpop.f32.mrf.mxu1 }
0x197a   :  { %v2359_v2 = vadd.f32 %v2342_v52, %v1947_v21  ;;  %v2360_v39 = vadd.f32 %v2355_v36, %v1976_v38 }
0x197c   :  { %v3123_v19 = vmul.f32 -1.442695, %v2359_v2  ;;  %v3124_v9 = vmul.f32 -1.442695, %v2360_v39 }
0x197e   :  { %3451 = vpow2.f32 %v3123_v19 }
0x197f   :  { %3453 = vpow2.f32 %v3124_v9 }
0x1981   :  { %v2344_v17 = vpop.f32.mrf.mxu0  ;;  %v2357_v27 = vpop.f32.mrf.mxu1 }
0x1984   :  { %v3452_v22 = vpop.eup %3451 }
0x1985   :  { %v3454_v33 = vpop.eup %3453  ;;  %v2367_v31 = vadd.f32 1.0, %v3452_v22 }
0x1986   :  { %v2368_v32 = vadd.f32 1.0, %v3454_v33 }
0x1987   :  { %3455 = vrcp.f32 %v2367_v31  ;;  %v2380_v0 = vand.u32 2147483648, %v2367_v31  ;;  %vm2374_vm15 = vweird.f32 %v2367_v31  ;;  %v2378_v11 = vand.u32 2147483647, %v2367_v31  ;;  %v4499_v12 = vpop.f32.mrf.mxu2 }
0x1988   :  { %3457 = vrcp.f32 %v2368_v32  ;;  %v2395_v13 = vand.u32 2147483648, %v2368_v32  ;;  %v2393_v8 = vand.u32 2147483647, %v2368_v32  ;;  %vm2389_vm13 = vweird.f32 %v2368_v32 }
0x1989   :  { %v2381_v10 = vor.u32 1.1754944e-38, %v2380_v0  ;;  %vm2379_vm2 = vcmp.eq.f32.partialorder %v2378_v11, 8.507059e+37 }
0x198a   :  { %v2396_v62 = vor.u32 1.1754944e-38, %v2395_v13  ;;  %vm2394_vm0 = vcmp.eq.f32.partialorder %v2393_v8, 8.507059e+37 }
0x198d   :  { %v3456_v35 = vpop.eup %3455 }
0x198e   :  { %v3458_v37 = vpop.eup %3457  ;;  %v2370_v57 = vmul.f32 %v3456_v35, %v2367_v31  ;;  %vm2375_vm12 = vweird.f32 %v3456_v35 }
0x198f   :  { %v2385_v41 = vmul.f32 %v3458_v37, %v2368_v32  ;;  %vm2390_vm11 = vweird.f32 %v3458_v37  ;;  %vm2376_vm1 = vmor %vm2374_vm15, %vm2375_vm12  ;;  %v4503_v48 = vpop.f32.mrf.mxu2 }
0x1990   :  { %v2371_v30 = vsub.f32 1.0, %v2370_v57  ;;  %vm2391_vm14 = vmor %vm2389_vm13, %vm2390_vm11 }
0x1991   :  { %v2386_v3 = vsub.f32 1.0, %v2385_v41 }
0x1992   :  { %v2372_v5 = vmul.f32 %v3456_v35, %v2371_v30 }
0x1993   :  { %v2387_v6 = vmul.f32 %v3458_v37, %v2386_v3 }
0x1994   :  { %v2373_v15 = vadd.f32 %v3456_v35, %v2372_v5 }
0x1995   :  { %v2388_v42 = vadd.f32 %v3458_v37, %v2387_v6 }
0x1996   :  { %v2377_v24 = vsel %vm2376_vm1, %v3456_v35, %v2373_v15 }
0x1997   :  { %v2392_v55 = vsel %vm2391_vm14, %v3458_v37, %v2388_v42  ;;  %v2382_v49 = vsel %vm2379_vm2, %v2381_v10, %v2377_v24 }
0x1998   :  { %v2397_v16 = vsel %vm2394_vm0, %v2396_v62, %v2392_v55  ;;  %v2401_v53 = vmul.f32 %v2382_v49, %v4470_v47  ;;  %v1977_v47 = vpop.f32.mrf.mxu3 }
0x1999   :  { %v2399_v26 = vmul.f32 2.0, %v2397_v16  ;;  %v1978_v54 = vadd.f32 %v1977_v47, %v4298_v18 }
0x199b   :  { %v3125_v28 = vadd.f32 -1.0, %v2399_v26 }
0x199d   :  { %v2402_v25 = vmul.f32 %v3125_v28, %v2382_v49 }
0x199f   :  { %2404 = vrot.lane.b32.xlu0 %v2402_v25, %s3651_s1  ;;  %v1952_v25 = vadd.f32 %v4499_v12, %v4296_v45  ;;  %v3224_v12 = vld [vmem:[%s4614_s10 + $0x18] sm:$0xff] }
0x19a0   :  { %v4501_v29 = vpop.f32.mrf.mxu3  ;;  %2730 = vmatpush.bf16.msra.mxu0 %v3224_v12 }
0x19a8   :  { %v4505_v46 = vpop.f32.mrf.mxu3 }
0x1a11   :  { %v2405_v44 = vpop.permute.xlu0 %2404 }
0x1a12   :  { %v4489_v23 = vadd.f32 %v2405_v44, %v2401_v53  ;;  %v1981_v53 = vadd.f32 %v4501_v29, %v4298_v18  ;;  %v3223_v29 = vld [vmem:[%s4614_s10 + $0x10] sm:$0xff] }
0x1a13   :  { %2731 = vmatpush.bf16.msra.mxu0 %v3223_v29 }
0x1a14   :  { %3459 = vtanh.f32 %v4489_v23 }
0x1a1a   :  { %v3460_v63 = vpop.eup %3459 }
0x1a1b   :  { %v4492_v59 = vmul.f32 %v3460_v63, %v2397_v16 }
0x1a1d   :  { %v2410_v56 = vpack.c.bf16 %v4492_v59, %v4492_v59 }
0x1a1f   :  { %2412 = vrot.lane.b32.xlu2 %v2410_v56, %s3651_s1 }
0x1a79   :  { %v2413_v14 = vpop.permute.xlu2 %2412 }
0x1a7a   :  { %3126 = vmatmul.msk.bf16.vlgmr.msrb.gmra.mxu2 %vm427_vm8, %v2413_v14  ;;  %3127 = vmatmul.msk.bf16.vlgmr.msrb.gmra.mxu3 %vm427_vm8, %v2413_v14 }
0x1afd   :  { %v2426_v34 = vpop.f32.mrf.mxu2  ;;  %v2439_v4 = vpop.f32.mrf.mxu3 }
0x1afe   :  { %v2443_v1 = vadd.f32 %v2426_v34, %v1949_v40  ;;  %v2444_v50 = vadd.f32 %v2439_v4, %v1978_v54 }
0x1b00   :  { %v3128_v60 = vmul.f32 -1.442695, %v2443_v1  ;;  %v3129_v7 = vmul.f32 -1.442695, %v2444_v50 }
0x1b02   :  { %3461 = vpow2.f32 %v3128_v60 }
0x1b03   :  { %3463 = vpow2.f32 %v3129_v7 }
0x1b05   :  { %v2428_v21 = vpop.f32.mrf.mxu2  ;;  %v2441_v38 = vpop.f32.mrf.mxu3 }
0x1b08   :  { %v3462_v52 = vpop.eup %3461 }
0x1b09   :  { %v3464_v36 = vpop.eup %3463  ;;  %v2451_v2 = vadd.f32 1.0, %v3462_v52 }
0x1b0a   :  { %v2452_v39 = vadd.f32 1.0, %v3464_v36 }
0x1b0b   :  { %3465 = vrcp.f32 %v2451_v2  ;;  %v2464_v30 = vand.u32 2147483648, %v2451_v2  ;;  %vm2458_vm7 = vweird.f32 %v2451_v2  ;;  %v2462_v5 = vand.u32 2147483647, %v2451_v2 }
0x1b0c   :  { %3467 = vrcp.f32 %v2452_v39  ;;  %v2479_v32 = vand.u32 2147483648, %v2452_v39  ;;  %v2477_v37 = vand.u32 2147483647, %v2452_v39  ;;  %vm2473_vm5 = vweird.f32 %v2452_v39 }
0x1b0d   :  { %v2465_v42 = vor.u32 1.1754944e-38, %v2464_v30  ;;  %vm2463_vm11 = vcmp.eq.f32.partialorder %v2462_v5, 8.507059e+37  ;;  %v2662_v5 = vpack.c.bf16 %v4397_v58, %v4319_v61 }
0x1b0e   :  { %v2480_v3 = vor.u32 1.1754944e-38, %v2479_v32  ;;  %vm2478_vm9 = vcmp.eq.f32.partialorder %v2477_v37, 8.507059e+37 }
0x1b11   :  { %v3466_v19 = vpop.eup %3465 }
0x1b12   :  { %v3468_v9 = vpop.eup %3467  ;;  %v2454_v17 = vmul.f32 %v3466_v19, %v2451_v2  ;;  %vm2459_vm4 = vweird.f32 %v3466_v19 }
0x1b13   :  { %v2469_v27 = vmul.f32 %v3468_v9, %v2452_v39  ;;  %vm2474_vm3 = vweird.f32 %v3468_v9  ;;  %vm2460_vm10 = vmor %vm2458_vm7, %vm2459_vm4 }
0x1b14   :  { %v2455_v22 = vsub.f32 1.0, %v2454_v17  ;;  %vm2475_vm6 = vmor %vm2473_vm5, %vm2474_vm3 }
0x1b15   :  { %v2470_v33 = vsub.f32 1.0, %v2469_v27 }
0x1b16   :  { %v2456_v31 = vmul.f32 %v3466_v19, %v2455_v22 }
0x1b17   :  { %v2471_v35 = vmul.f32 %v3468_v9, %v2470_v33 }
0x1b18   :  { %v2457_v57 = vadd.f32 %v3466_v19, %v2456_v31 }
0x1b19   :  { %v2472_v41 = vadd.f32 %v3468_v9, %v2471_v35 }
0x1b1a   :  { %v2461_v8 = vsel %vm2460_vm10, %v3466_v19, %v2457_v57 }
0x1b1b   :  { %v2476_v13 = vsel %vm2475_vm6, %v3468_v9, %v2472_v41  ;;  %v2466_v62 = vsel %vm2463_vm11, %v2465_v42, %v2461_v8 }
0x1b1c   :  { %v2481_v6 = vsel %vm2478_vm9, %v2480_v3, %v2476_v13  ;;  %v2485_v55 = vmul.f32 %v2466_v62, %v4489_v23  ;;  %v3222_v13 = vld [vmem:[%s4614_s10 + $0x8] sm:$0xff] }
0x1b1d   :  { %v2483_v15 = vmul.f32 2.0, %v2481_v6  ;;  %2732 = vmatpush.bf16.msra.mxu0 %v3222_v13 }
0x1b1f   :  { %v3130_v0 = vadd.f32 -1.0, %v2483_v15 }
0x1b21   :  { %v2486_v11 = vmul.f32 %v3130_v0, %v2466_v62 }
0x1b23   :  { %2488 = vrot.lane.b32.xlu0 %v2486_v11, %s3651_s1  ;;  %v2663_v11 = vpack.c.bf16 %v4474_v43, %v4424_v51 }
0x1b95   :  { %v2489_v16 = vpop.permute.xlu0 %2488 }
0x1b96   :  { %v4511_v24 = vadd.f32 %v2489_v16, %v2485_v55  ;;  %v4556_v16 = vld [vmem:[#allocation10] ss:$0 sm:$0xff] }
0x1b98   :  { %3469 = vtanh.f32 %v4511_v24 }
0x1b9e   :  { %v3470_v26 = vpop.eup %3469 }
0x1b9f   :  { %v4514_v10 = vmul.f32 %v3470_v26, %v2481_v6  ;;  %v3221_v6 = vld [vmem:[%s4614_s10] sm:$0xff] }
0x1ba0   :  { %2733 = vmatpush.bf16.msra.mxu0 %v3221_v6 }
0x1ba1   :  { %v2494_v28 = vpack.c.bf16 %v4514_v10, %v4514_v10 }
0x1ba3   :  { %2496 = vrot.lane.b32.xlu1 %v2494_v28, %s3651_s1 }
0x1c15   :  { %v2497_v49 = vpop.permute.xlu1 %2496 }
0x1c16   :  { %3131 = vmatmul.msk.bf16.vlgmr.msrb.gmra.mxu0 %vm427_vm8, %v2497_v49  ;;  %3132 = vmatmul.msk.bf16.vlgmr.msrb.gmra.mxu1 %vm427_vm8, %v2497_v49  ;;  %v1954_v49 = vadd.f32 %v4503_v48, %v4296_v45 }
0x1c93   :  { %v2510_v44 = vpop.f32.mrf.mxu0  ;;  %v2523_v23 = vpop.f32.mrf.mxu1 }
0x1c94   :  { %v2527_v63 = vadd.f32 %v2510_v44, %v1952_v25  ;;  %v2528_v56 = vadd.f32 %v2523_v23, %v1981_v53  ;;  %v1983_v25 = vadd.f32 %v4505_v46, %v4298_v18 }
0x1c96   :  { %v3133_v14 = vmul.f32 -1.442695, %v2527_v63  ;;  %v3134_v20 = vmul.f32 -1.442695, %v2528_v56 }
0x1c98   :  { %3471 = vpow2.f32 %v3133_v14 }
0x1c99   :  { %3473 = vpow2.f32 %v3134_v20 }
0x1c9b   :  { %v2512_v47 = vpop.f32.mrf.mxu0  ;;  %v2525_v40 = vpop.f32.mrf.mxu1 }
0x1c9e   :  { %v3472_v54 = vpop.eup %3471 }
0x1c9f   :  { %v3474_v34 = vpop.eup %3473  ;;  %v2535_v4 = vadd.f32 1.0, %v3472_v54 }
0x1ca0   :  { %v2536_v1 = vadd.f32 1.0, %v3474_v34 }
0x1ca1   :  { %3475 = vrcp.f32 %v2535_v4  ;;  %v2548_v27 = vand.u32 2147483648, %v2535_v4  ;;  %vm2542_vm0 = vweird.f32 %v2535_v4  ;;  %v2546_v33 = vand.u32 2147483647, %v2535_v4 }
0x1ca2   :  { %3477 = vrcp.f32 %v2536_v1  ;;  %v2563_v2 = vand.u32 2147483648, %v2536_v1  ;;  %v2561_v19 = vand.u32 2147483647, %v2536_v1  ;;  %vm2557_vm14 = vweird.f32 %v2536_v1 }
0x1ca3   :  { %v2549_v57 = vor.u32 1.1754944e-38, %v2548_v27  ;;  %vm2547_vm3 = vcmp.eq.f32.partialorder %v2546_v33, 8.507059e+37 }
0x1ca4   :  { %v2564_v22 = vor.u32 1.1754944e-38, %v2563_v2  ;;  %vm2562_vm1 = vcmp.eq.f32.partialorder %v2561_v19, 8.507059e+37 }
0x1ca7   :  { %v3476_v50 = vpop.eup %3475 }
0x1ca8   :  { %v3478_v60 = vpop.eup %3477  ;;  %v2538_v7 = vmul.f32 %v3476_v50, %v2535_v4  ;;  %vm2543_vm13 = vweird.f32 %v3476_v50 }
0x1ca9   :  { %v2553_v21 = vmul.f32 %v3478_v60, %v2536_v1  ;;  %vm2558_vm12 = vweird.f32 %v3478_v60  ;;  %vm2544_vm2 = vmor %vm2542_vm0, %vm2543_vm13 }
0x1caa   :  { %v2539_v38 = vsub.f32 1.0, %v2538_v7  ;;  %vm2559_vm15 = vmor %vm2557_vm14, %vm2558_vm12 }
0x1cab   :  { %v2554_v52 = vsub.f32 1.0, %v2553_v21 }
0x1cac   :  { %v2540_v36 = vmul.f32 %v3476_v50, %v2539_v38 }
0x1cad   :  { %v2555_v39 = vmul.f32 %v3478_v60, %v2554_v52 }
0x1cae   :  { %v2541_v9 = vadd.f32 %v3476_v50, %v2540_v36 }
0x1caf   :  { %v2556_v17 = vadd.f32 %v3478_v60, %v2555_v39 }
0x1cb0   :  { %v2545_v35 = vsel %vm2544_vm2, %v3476_v50, %v2541_v9 }
0x1cb1   :  { %v2560_v31 = vsel %vm2559_vm15, %v3478_v60, %v2556_v17  ;;  %v2550_v30 = vsel %vm2547_vm3, %v2549_v57, %v2545_v35 }
0x1cb2   :  { %v2565_v32 = vsel %vm2562_vm1, %v2564_v22, %v2560_v31  ;;  %v2569_v8 = vmul.f32 %v2550_v30, %v4511_v24 }
0x1cb3   :  { %v2567_v37 = vmul.f32 2.0, %v2565_v32 }
0x1cb5   :  { %v3135_v41 = vadd.f32 -1.0, %v2567_v37 }
0x1cb7   :  { %v2570_v3 = vmul.f32 %v3135_v41, %v2550_v30  ;;  %v2664_v41 = vpack.c.bf16 %v4514_v10, %v4492_v59 }
0x1cb9   :  { %2572 = vrot.lane.b32.xlu2 %v2570_v3, %s3651_s1 }
0x1cc1   :  { %2682 = vrot.lane.b32.xlu2 %v2662_v5, %s3651_s1 }
0x1d13   :  { %v2573_v15 = vpop.permute.xlu2 %2572 }
0x1d14   :  { %v4542_v42 = vadd.f32 %v2573_v15, %v2569_v8 }
0x1d16   :  { %3479 = vtanh.f32 %v4542_v42 }
0x1d1b   :  { %v2683_v61 = vpop.permute.xlu2 %2682 }
0x1d1c   :  { %v3480_v58 = vpop.eup %3479  ;;  %3157 = vmatmul.msk.bf16.vlgmr.msra.gmra.mxu0 %vm427_vm8, %v2683_v61 }
0x1d1d   :  { %v4546_v0 = vmul.f32 %v3480_v58, %v2565_v32 }
0x1d1f   :  { %v2578_v62 = vpack.c.bf16 %v4546_v0, %v4546_v0 }
0x1d21   :  { %2580 = vrot.lane.b32.xlu0 %v2578_v62, %s3651_s1 }
0x1d29   :  { %2684 = vrot.lane.b32.xlu0 %v2663_v11, %s3651_s1 }
0x1d93   :  { %v2581_v55 = vpop.permute.xlu0 %2580 }
0x1d94   :  { %3136 = vmatmul.msk.bf16.vlgmr.msra.gmra.mxu2 %vm427_vm8, %v2581_v55  ;;  %3137 = vmatmul.msk.bf16.vlgmr.msra.gmra.mxu3 %vm427_vm8, %v2581_v55 }
0x1d99   :  { %v2735_v24 = vpop.f32.mrf.mxu0 }
0x1d9a   :  { %v2736_v26 = vadd.f32 %v4556_v16, %v2735_v24 }
0x1d9b   :  { %v2685_v28 = vpop.permute.xlu0 %2684 }
0x1d9c   :  { %2755 = vst [vmem:[%s4616_s12] sm:$0xff] %v2736_v26  ;;  %3158 = vmatmul.msk.bf16.gmra.mxu0 %vm427_vm8, %v2685_v28 }
0x1da1   :  { %v2737_v51 = vpop.f32.mrf.mxu0 }
0x1da2   :  { %v2738_v43 = vadd.f32 %v4556_v16, %v2737_v51 }
0x1da4   :  { %2756 = vst [vmem:[%s4616_s12 + $0x8] sm:$0xff] %v2738_v43 }
0x1e17   :  { %v2594_v53 = vpop.f32.mrf.mxu2  ;;  %v2607_v44 = vpop.f32.mrf.mxu3 }
0x1e18   :  { %v2611_v23 = vadd.f32 %v2594_v53, %v1954_v49  ;;  %v2612_v63 = vadd.f32 %v2607_v44, %v1983_v25 }
0x1e19   :  { %v2740_v56 = vpop.f32.mrf.mxu0 }
0x1e1a   :  { %v3138_v14 = vmul.f32 -1.442695, %v2611_v23  ;;  %v3139_v20 = vmul.f32 -1.442695, %v2612_v63  ;;  %v2741_v47 = vadd.f32 %v4556_v16, %v2740_v56 }
0x1e1c   :  { %3481 = vpow2.f32 %v3138_v14  ;;  %2757 = vst [vmem:[%s4616_s12 + $0x10] sm:$0xff] %v2741_v47 }
0x1e1d   :  { %3483 = vpow2.f32 %v3139_v20 }
0x1e1f   :  { %v2596_v40 = vpop.f32.mrf.mxu2  ;;  %v2609_v45 = vpop.f32.mrf.mxu3 }
0x1e21   :  { %v2742_v48 = vpop.f32.mrf.mxu0 }
0x1e22   :  { %v3482_v54 = vpop.eup %3481  ;;  %v2743_v18 = vadd.f32 %v4556_v16, %v2742_v48 }
0x1e23   :  { %v3484_v46 = vpop.eup %3483  ;;  %v2619_v34 = vadd.f32 1.0, %v3482_v54 }
0x1e24   :  { %v2620_v4 = vadd.f32 1.0, %v3484_v46  ;;  %2758 = vst [vmem:[%s4616_s12 + $0x18] sm:$0xff] %v2743_v18 }
0x1e25   :  { %3485 = vrcp.f32 %v2619_v34  ;;  %v2632_v19 = vand.u32 2147483648, %v2619_v34  ;;  %vm2626_vm9 = vweird.f32 %v2619_v34  ;;  %v2630_v17 = vand.u32 2147483647, %v2619_v34 }
0x1e26   :  { %3487 = vrcp.f32 %v2620_v4  ;;  %v2647_v38 = vand.u32 2147483648, %v2620_v4  ;;  %v2645_v36 = vand.u32 2147483647, %v2620_v4  ;;  %vm2641_vm6 = vweird.f32 %v2620_v4 }
0x1e27   :  { %v2633_v32 = vor.u32 1.1754944e-38, %v2632_v19  ;;  %vm2631_vm12 = vcmp.eq.f32.partialorder %v2630_v17, 8.507059e+37 }
0x1e28   :  { %v2648_v9 = vor.u32 1.1754944e-38, %v2647_v38  ;;  %vm2646_vm10 = vcmp.eq.f32.partialorder %v2645_v36, 8.507059e+37 }
0x1e2b   :  { %v3486_v1 = vpop.eup %3485 }
0x1e2c   :  { %v3488_v12 = vpop.eup %3487  ;;  %v2622_v29 = vmul.f32 %v3486_v1, %v2619_v34  ;;  %vm2627_vm5 = vweird.f32 %v3486_v1 }
0x1e2d   :  { %v2637_v50 = vmul.f32 %v3488_v12, %v2620_v4  ;;  %vm2642_vm4 = vweird.f32 %v3488_v12  ;;  %vm2628_vm11 = vmor %vm2626_vm9, %vm2627_vm5 }
0x1e2e   :  { %v2623_v60 = vsub.f32 1.0, %v2622_v29  ;;  %vm2643_vm7 = vmor %vm2641_vm6, %vm2642_vm4 }
0x1e2f   :  { %v2638_v7 = vsub.f32 1.0, %v2637_v50 }
0x1e30   :  { %v2624_v21 = vmul.f32 %v3486_v1, %v2623_v60 }
0x1e31   :  { %v2639_v52 = vmul.f32 %v3488_v12, %v2638_v7 }
0x1e32   :  { %v2625_v2 = vadd.f32 %v3486_v1, %v2624_v21 }
0x1e33   :  { %v2640_v39 = vadd.f32 %v3488_v12, %v2639_v52 }
0x1e34   :  { %v2629_v33 = vsel %vm2628_vm11, %v3486_v1, %v2625_v2 }
0x1e35   :  { %v2644_v27 = vsel %vm2643_vm7, %v3488_v12, %v2640_v39  ;;  %v2634_v37 = vsel %vm2631_vm12, %v2633_v32, %v2629_v33 }
0x1e36   :  { %v2649_v22 = vsel %vm2646_vm10, %v2648_v9, %v2644_v27  ;;  %v2653_v30 = vmul.f32 %v2634_v37, %v4542_v42 }
0x1e37   :  { %v2651_v31 = vmul.f32 2.0, %v2649_v22 }
0x1e39   :  { %v3140_v35 = vadd.f32 -1.0, %v2651_v31 }
0x1e3b   :  { %v2654_v57 = vmul.f32 %v3140_v35, %v2634_v37 }
0x1e3d   :  { %2656 = vrot.lane.b32.xlu1 %v2654_v57, %s3651_s1 }
0x1e45   :  { %2686 = vrot.lane.b32.xlu1 %v2664_v41, %s3651_s1 }
0x1eaf   :  { %v2657_v3 = vpop.permute.xlu1 %2656 }
0x1eb0   :  { %v2659_v5 = vadd.f32 %v2657_v3, %v2653_v30 }
0x1eb2   :  { %3489 = vtanh.f32 %v2659_v5 }
0x1eb7   :  { %v2687_v13 = vpop.permute.xlu1 %2686 }
0x1eb8   :  { %v3490_v6 = vpop.eup %3489  ;;  %3159 = vmatmul.msk.bf16.gmra.mxu0 %vm427_vm8, %v2687_v13 }
0x1eb9   :  { %v2661_v8 = vmul.f32 %v3490_v6, %v2649_v22 }
0x1ebb   :  { %v2665_v15 = vpack.c.bf16 %v2661_v8, %v4546_v0 }
0x1ebd   :  { %2688 = vrot.lane.b32.xlu2 %v2665_v15, %s3651_s1 }
0x1f17   :  { %v2689_v61 = vpop.permute.xlu2 %2688 }
0x1f18   :  { %3160 = vmatmul.msk.bf16.gmra.mxu0 %vm427_vm8, %v2689_v61 }
0x1f35   :  { %v2745_v59 = vpop.f32.mrf.mxu0 }
0x1f36   :  { %v2746_v10 = vadd.f32 %v4556_v16, %v2745_v59 }
0x1f38   :  { %2759 = vst [vmem:[%s4616_s12 + $0x20] sm:$0xff] %v2746_v10 }
0x1f3d   :  { %v2747_v42 = vpop.f32.mrf.mxu0 }
0x1f3e   :  { %v2748_v58 = vadd.f32 %v4556_v16, %v2747_v42 }
0x1f40   :  { %2760 = vst [vmem:[%s4616_s12 + $0x28] sm:$0xff] %v2748_v58 }
0x1f95   :  { %v2750_v0 = vpop.f32.mrf.mxu0 }
0x1f96   :  { %v2751_v62 = vadd.f32 %v4556_v16, %v2750_v0 }
0x1f98   :  { %2761 = vst [vmem:[%s4616_s12 + $0x30] sm:$0xff] %v2751_v62 }
0x1f9d   :  { %v2752_v11 = vpop.f32.mrf.mxu0 }
0x1f9e   :  { %v2753_v55 = vadd.f32 %v4556_v16, %v2752_v11 }
0x1fa0   :  { %2762 = vst [vmem:[%s4616_s12 + $0x38] sm:$0xff] %v2753_v55 }
0x1fa1   :  { %2767 = vsyncpa [#allocation3], 1 }
0x1fa2   :  { %2768 = vsyncpa [#allocation5], 1 }
0x1fa3   :  { %2769 = vsyncpa [#allocation8], 1 }
0x1fa4   :  { %2770 = vsyncpa [#allocation11], 1 }

</bundles_post_ra>
